<compile_context>
chip_gen: v5e
topology: v5e:2x2
jax: 0.10.0
libtpu: 0.0.40
codegen_flags: <defaults>
</compile_context>

<pallas_src>
import numpy as np
import jax
import jax.numpy as jnp
from jax import lax
from jax.experimental import pallas as pl
from jax.experimental.pallas import tpu as pltpu

# ----------------------------- module constants -----------------------------
FOCAL = 1015.0
CENTER = 112.0
CAMERA_DISTANCE = 10.0
INIT_LIT = np.array([0.8, 0, 0, 0, 0, 0, 0, 0, 0], dtype=np.float32)
SH_A = (float(np.pi), float(2 * np.pi / np.sqrt(3.0)), float(2 * np.pi / np.sqrt(8.0)))
SH_C = (float(1 / np.sqrt(4 * np.pi)),
        float(np.sqrt(3.0) / np.sqrt(4 * np.pi)),
        float(3 * np.sqrt(5.0) / np.sqrt(12 * np.pi)))

ID_DIM, EXP_DIM, TEX_DIM = 80, 64, 80
LANE_PAD = 1024        # per-component padding; multiple of 8*128 so N/8 is lane aligned
BASIS_TN_CAP = 9216    # kernel A lane-tile cap (~10 MB double-buffered working set)
LANE_TILE_CAP = 8192   # kernels B/C lane-tile cap (8 sublanes x 8192 lanes = 64K elems)


def _round_up(x, m):
    return (x + m - 1) // m * m


def _largest_tile(width, cap):
    """Largest multiple-of-128 tile <= cap that divides `width` (width % 128 == 0)."""
    if width <= cap:
        return width
    for t in range(cap, 0, -128):
        if width % t == 0:
            return t
    return 128


# ----------------------------- plain JAX glue --------------------------------
def compute_rotation(angles):
    """angles (B, 3) radians -> (B, 3, 3); matches BFM2Mesh.compute_rotation."""
    B = angles.shape[0]
    x, y, z = angles[:, 0], angles[:, 1], angles[:, 2]
    ones = jnp.ones_like(x)
    zeros = jnp.zeros_like(x)
    rot_x = jnp.stack([ones, zeros, zeros,
                       zeros, jnp.cos(x), -jnp.sin(x),
                       zeros, jnp.sin(x), jnp.cos(x)], axis=1).reshape(B, 3, 3)
    rot_y = jnp.stack([jnp.cos(y), zeros, jnp.sin(y),
                       zeros, ones, zeros,
                       -jnp.sin(y), zeros, jnp.cos(y)], axis=1).reshape(B, 3, 3)
    rot_z = jnp.stack([jnp.cos(z), -jnp.sin(z), zeros,
                       jnp.sin(z), jnp.cos(z), zeros,
                       zeros, zeros, ones], axis=1).reshape(B, 3, 3)
    rot = rot_z @ rot_y @ rot_x
    return jnp.transpose(rot, (0, 2, 1))


def prepare_params(params):
    """One-time preprocessing (analogue of buffer setup in BFM2Mesh.__init__).

    Bases (3N, K) / means (3N,) are permuted from interleaved (x,y,z,...) rows into
    component-major blocked columns [all-x | all-y | all-z], padded to a multiple of
    LANE_PAD per component.  id/exp bases are concatenated (one matmul), bases are
    stored bf16 (halves kernel A's HBM traffic), tex base/mean are pre-scaled by
    1/255, and means stay f32.  Kernel A's flat output reshapes for free into
    (B, 3, N_pad).
    """
    id_base, exp_base, tex_base = (params['id_base'], params['exp_base'],
                                   params['tex_base'])
    three_n = id_base.shape[0]
    n_ver = three_n // 3
    n_pad = _round_up(n_ver, LANE_PAD)

    def base_cm(base, scale=1.0):                        # (3N, K) -> (K, 3*n_pad) bf16
        K = base.shape[1]
        b = jnp.transpose(base.reshape(n_ver, 3, K), (2, 1, 0))   # (K, 3, N)
        b = jnp.pad(b, ((0, 0), (0, 0), (0, n_pad - n_ver)))
        return (scale * b).reshape(K, 3 * n_pad).astype(jnp.bfloat16)

    def mean_cm(mean, scale=1.0):                        # (3N,) -> (1, 3*n_pad) f32
        m = jnp.transpose(mean.reshape(n_ver, 3), (1, 0))
        m = jnp.pad(m, ((0, 0), (0, n_pad - n_ver)))
        return (scale * m).reshape(1, 3 * n_pad).astype(jnp.float32)

    return dict(
        base_se=jnp.concatenate([base_cm(id_base), base_cm(exp_base)], axis=0),
        base_tex=base_cm(tex_base, 1.0 / 255.0),
        mean_shape_cm=mean_cm(params['mean_shape']),
        mean_tex_cm=mean_cm(params['mean_tex'], 1.0 / 255.0),
        face_buf=jnp.asarray(params['face_buf'], jnp.int32),
        point_buf=jnp.asarray(params['point_buf'], jnp.int32),
    )


# ----------------------------- kernel A: basis matmuls -----------------------
def _basis_kernel(cse_ref, ct_ref, bse_ref, bt_ref, ms_ref, mt_ref,
                  shape_out_ref, tex_out_ref):
    # bf16 coef x bf16 base -> f32 accumulate; means added in f32.
    shape_out_ref[...] = (
        jnp.dot(cse_ref[...], bse_ref[...], preferred_element_type=jnp.float32)
        + ms_ref[...])
    tex_out_ref[...] = (
        jnp.dot(ct_ref[...], bt_ref[...], preferred_element_type=jnp.float32)
        + mt_ref[...])


def basis_call(coef_se, coef_t, base_se, base_t, mean_s, mean_t, tn):
    BP = coef_se.shape[0]
    width = base_se.shape[1]
    assert width % tn == 0
    cse_spec = pl.BlockSpec(coef_se.shape, lambda j: (0, 0))
    ct_spec = pl.BlockSpec(coef_t.shape, lambda j: (0, 0))
    bse_spec = pl.BlockSpec((base_se.shape[0], tn), lambda j: (0, j))
    bt_spec = pl.BlockSpec((base_t.shape[0], tn), lambda j: (0, j))
    mean_spec = pl.BlockSpec((1, tn), lambda j: (0, j))
    out_spec = pl.BlockSpec((BP, tn), lambda j: (0, j))
    return pl.pallas_call(
        _basis_kernel,
        grid=(width // tn,),
        in_specs=[cse_spec, ct_spec, bse_spec, bt_spec, mean_spec, mean_spec],
        out_specs=(out_spec, out_spec),
        out_shape=(jax.ShapeDtypeStruct((BP, width), jnp.float32),) * 2,
        compiler_params=pltpu.CompilerParams(dimension_semantics=("parallel",)),
    )(coef_se, coef_t, base_se, base_t, mean_s, mean_t)


# ----------------------------- kernel B: per-face normals --------------------
def _face_norm_kernel(v1_ref, v2_ref, v3_ref, fn_ref):
    # layout: (3, 8, L) -- xyz components, each a dense (8 sublane, L lane) slab.
    e1 = v1_ref[...] - v2_ref[...]
    e2 = v2_ref[...] - v3_ref[...]
    cx = e1[1] * e2[2] - e1[2] * e2[1]
    cy = e1[2] * e2[0] - e1[0] * e2[2]
    cz = e1[0] * e2[1] - e1[1] * e2[0]
    inv = lax.rsqrt(jnp.maximum(cx * cx + cy * cy + cz * cz, 1e-24))  # EUP slot
    fn_ref[0] = cx * inv
    fn_ref[1] = cy * inv
    fn_ref[2] = cz * inv


def face_norm_call(v1, v2, v3, tile):
    B, _, _, Lw = v1.shape                               # (B, 3, 8, F_pad/8)
    assert Lw % tile == 0
    spec = pl.BlockSpec((None, 3, 8, tile), lambda b, j: (b, 0, 0, j))
    return pl.pallas_call(
        _face_norm_kernel,
        grid=(B, Lw // tile),
        in_specs=[spec, spec, spec],
        out_specs=spec,
        out_shape=jax.ShapeDtypeStruct((B, 3, 8, Lw), jnp.float32),
        compiler_params=pltpu.CompilerParams(
            dimension_semantics=("parallel", "parallel")),
    )(v1, v2, v3)


# ---------------- kernel C: transform + vertex normals + SH color ------------
def _vertex_kernel(fs_ref, tex_ref, vns_ref, rot_ref, trans_ref, gamma_ref,
                   vert_ref, color_ref):
    # layout: (3, 8, L) -- xyz components as dense (8, L) slabs.
    # rot_ref (B, 9), trans_ref (B, 3), gamma_ref (B, 27) are SMEM scalar tables.
    b = pl.program_id(0)

    def rot_apply(x, y, z):                              # v @ rot, per component
        return [x * rot_ref[b, 0 + c] + y * rot_ref[b, 3 + c] + z * rot_ref[b, 6 + c]
                for c in range(3)]

    # --- transform: face_shape @ rot + trans, then to_camera on z ---
    fs = fs_ref[...]
    tx, ty, tz = rot_apply(fs[0], fs[1], fs[2])
    vert_ref[0] = tx + trans_ref[b, 0]
    vert_ref[1] = ty + trans_ref[b, 1]
    vert_ref[2] = CAMERA_DISTANCE - (tz + trans_ref[b, 2])

    # --- vertex normals: l2-normalize the precomputed adjacency sum, rotate ---
    vns = vns_ref[...]
    inv = lax.rsqrt(jnp.maximum(vns[0] * vns[0] + vns[1] * vns[1] + vns[2] * vns[2],
                                1e-24))                  # EUP slot
    nx, ny, nz = rot_apply(vns[0] * inv, vns[1] * inv, vns[2] * inv)

    # --- SH lighting (constant Y0 term folded into a scalar add) ---
    a0, a1, a2 = SH_A
    c0, c1, c2 = SH_C
    Y = [-a1 * c1 * ny,
         a1 * c1 * nz,
         -a1 * c1 * nx,
         a2 * c2 * nx * ny,
         -a2 * c2 * ny * nz,
         (0.5 * a2 * c2 / float(np.sqrt(3.0))) * (3.0 * nz * nz - 1.0),
         -a2 * c2 * nx * nz,
         0.5 * a2 * c2 * (nx * nx - ny * ny)]            # Y[1..8]
    tex = tex_ref[...]
    for ch in range(3):
        acc = Y[0] * gamma_ref[b, 3 + ch]
        for i in range(2, 9):
            acc = acc + Y[i - 1] * gamma_ref[b, 3 * i + ch]
        acc = acc + (a0 * c0) * gamma_ref[b, ch]
        color_ref[ch] = acc * tex[ch]


def vertex_call(fs, tex, vns, rot_flat, trans, gamma_flat, tile):
    B, _, _, Lw = fs.shape                               # (B, 3, 8, n_pad/8)
    assert Lw % tile == 0
    spec = pl.BlockSpec((None, 3, 8, tile), lambda b, j: (b, 0, 0, j))
    smem = pl.BlockSpec(memory_space=pltpu.MemorySpace.SMEM)
    return pl.pallas_call(
        _vertex_kernel,
        grid=(B, Lw // tile),
        in_specs=[spec, spec, spec, smem, smem, smem],
        out_specs=(spec, spec),
        out_shape=(jax.ShapeDtypeStruct((B, 3, 8, Lw), jnp.float32),) * 2,
        compiler_params=pltpu.CompilerParams(
            dimension_semantics=("parallel", "parallel")),
    )(fs, tex, vns, rot_flat, trans, gamma_flat)


# ----------------------------- full forward ----------------------------------
@jax.jit
def bfm2mesh_forward(prep, id_c, exp_c, angle, trans, tex_c, gamma):
    B = id_c.shape[0]
    n_ver = prep['point_buf'].shape[0]
    width = prep['base_se'].shape[1]
    n_pad = width // 3
    F = prep['face_buf'].shape[0]

    # --- kernel A: basis matmuls (bf16 bases, id+exp fused, no K padding) ---
    BP = _round_up(max(B, 8), 8)
    coef_se = jnp.pad(jnp.concatenate([id_c, exp_c], axis=1),
                      ((0, BP - B), (0, 0))).astype(jnp.bfloat16)
    coef_t = jnp.pad(tex_c, ((0, BP - B), (0, 0))).astype(jnp.bfloat16)
    tn = _largest_tile(width, BASIS_TN_CAP)
    shape_flat, tex_flat = basis_call(coef_se, coef_t, prep['base_se'],
                                      prep['base_tex'], prep['mean_shape_cm'],
                                      prep['mean_tex_cm'], tn)
    # Blocked column layout -> component-major view for free (no transpose).
    shape_cm = shape_flat[:B].reshape(B, 3, n_pad)
    tex_cm = tex_flat[:B].reshape(B, 3, n_pad)

    # --- rotation (tiny trig -> plain JAX glue) ---
    rot = compute_rotation(angle)                                 # (B, 3, 3)

    # --- kernel B: per-face normals ---
    # TODO(synk): face_buf / point_buf gathers stay in XLA (no clean lane-axis Pallas
    # gather); at real BFM sizes fusing these gathers into kernels B/C is the next win.
    fb = prep['face_buf']
    F_pad = _round_up(F + 1, LANE_PAD)        # +1 guarantees a zero column at index F
    Fp8 = F_pad // 8
    tile_f = _largest_tile(Fp8, LANE_TILE_CAP)

    def gather_pad(idx):
        g = shape_cm[:, :, idx]                                   # (B, 3, F)
        g = jnp.pad(g, ((0, 0), (0, 0), (0, F_pad - F)))
        return g.reshape(B, 3, 8, Fp8)                            # dense (8, L) slabs

    fn4 = face_norm_call(gather_pad(fb[:, 0]), gather_pad(fb[:, 1]),
                         gather_pad(fb[:, 2]), tile_f)            # (B, 3, 8, Fp8)
    fn_cm = fn4.reshape(B, 3, F_pad)

    # --- point_buf gather fused with the K-adjacency sum (no (B,K,3,N) tensor) ---
    pb = prep['point_buf']
    pb_pad = jnp.pad(pb, ((0, n_pad - n_ver), (0, 0)), constant_values=F)
    vn_sum = jnp.sum(fn_cm[:, :, pb_pad], axis=-1)                # (B, 3, n_pad)

    # --- kernel C: transform/to_camera + vertex-normal normalize + SH color ---
    gamma_p = gamma.reshape(B, 3, 9) + jnp.asarray(INIT_LIT).reshape(1, 1, 9)
    gamma_p = jnp.transpose(gamma_p, (0, 2, 1)).reshape(B, 27)    # row i -> (r, g, b)
    Np8 = n_pad // 8
    tile_n = _largest_tile(Np8, LANE_TILE_CAP)
    to_slab = lambda x: x.reshape(B, 3, 8, Np8)
    vert4, color4 = vertex_call(to_slab(shape_cm), to_slab(tex_cm), to_slab(vn_sum),
                                rot.reshape(B, 9), trans, gamma_p, tile_n)

    def to_bn3(x):
        return jnp.transpose(x.reshape(B, 3, n_pad), (0, 2, 1))[:, :n_ver, :]
    return to_bn3(vert4), to_bn3(tex_cm), to_bn3(color4)


# ----------------------------- pure JAX reference ----------------------------
def bfm2mesh_ref(params, id_c, exp_c, angle, trans, tex_c, gamma):
    B = id_c.shape[0]
    face_shape = (id_c @ params['id_base'].T + exp_c @ params['exp_base'].T
                  + params['mean_shape'].reshape(1, -1)).reshape(B, -1, 3)
    rot = compute_rotation(angle)
    fst = jnp.einsum('bnk,bkc->bnc', face_shape, rot) + trans[:, None, :]
    face_vertex = fst.at[..., -1].set(CAMERA_DISTANCE - fst[..., -1])
    face_texture = ((tex_c @ params['tex_base'].T
                     + params['mean_tex'].reshape(1, -1)) / 255.0).reshape(B, -1, 3)
    fb, pb = params['face_buf'], params['point_buf']
    v1 = face_shape[:, fb[:, 0]]
    v2 = face_shape[:, fb[:, 1]]
    v3 = face_shape[:, fb[:, 2]]
    fn = jnp.cross(v1 - v2, v2 - v3)
    fn = fn / jnp.maximum(jnp.linalg.norm(fn, axis=-1, keepdims=True), 1e-12)
    fn = jnp.concatenate([fn, jnp.zeros((B, 1, 3), fn.dtype)], axis=1)
    vn = jnp.sum(fn[:, pb], axis=2)
    vn = vn / jnp.maximum(jnp.linalg.norm(vn, axis=-1, keepdims=True), 1e-12)
    vnr = jnp.einsum('bnk,bkc->bnc', vn, rot)
    gamma_p = gamma.reshape(B, 3, 9) + jnp.asarray(INIT_LIT).reshape(1, 1, 9)
    gamma_p = jnp.transpose(gamma_p, (0, 2, 1))                   # (B, 9, 3)
    a0, a1, a2 = SH_A
    c0, c1, c2 = SH_C
    nx, ny, nz = vnr[..., :1], vnr[..., 1:2], vnr[..., 2:]
    Y = jnp.concatenate([
        a0 * c0 * jnp.ones_like(nx), -a1 * c1 * ny, a1 * c1 * nz, -a1 * c1 * nx,
        a2 * c2 * nx * ny, -a2 * c2 * ny * nz,
        0.5 * a2 * c2 / np.sqrt(3.0) * (3.0 * nz ** 2 - 1.0),
        -a2 * c2 * nx * nz, 0.5 * a2 * c2 * (nx ** 2 - ny ** 2)], axis=-1)
    rgb = jnp.einsum('bni,bic->bnc', Y, gamma_p)
    return face_vertex, face_texture, rgb * face_texture


# ----------------------------- main -------------------------------------------
if __name__ == "__main__":
    B, N_VER, N_FACE, K_ADJ = 2, 256, 512, 8          # small synthetic BFM
    key = jax.random.PRNGKey(0)
    k = jax.random.split(key, 13)

    # deterministic synthetic BFM (no .pt/.pth load); indices already 0-based
    mean_shape = 0.5 * jax.random.normal(k[0], (3 * N_VER,), jnp.float32)
    ms = mean_shape.reshape(-1, 3)
    mean_shape = (ms - jnp.mean(ms, axis=0, keepdims=True)).reshape(-1)   # recenter

    # Triangles with three DISTINCT vertex indices (degenerate triangles have a
    # zero cross product whose normalization amplifies fp rounding differences).
    f0 = jax.random.randint(k[5], (N_FACE,), 0, N_VER)
    face_buf = jnp.stack([f0, (f0 + 1) % N_VER, (f0 + 2) % N_VER], axis=1)

    params = dict(
        mean_shape=mean_shape,
        id_base=0.01 * jax.random.normal(k[1], (3 * N_VER, ID_DIM), jnp.float32),
        exp_base=0.01 * jax.random.normal(k[2], (3 * N_VER, EXP_DIM), jnp.float32),
        mean_tex=255.0 * jax.random.uniform(k[3], (3 * N_VER,), jnp.float32),
        tex_base=0.5 * jax.random.normal(k[4], (3 * N_VER, TEX_DIM), jnp.float32),
        face_buf=face_buf,
        point_buf=jax.random.randint(k[6], (N_VER, K_ADJ), 0, N_FACE + 1),
    )
    prep = prepare_params(params)     # one-time param preprocessing (init-time)

    id_c = jax.random.normal(k[7], (B, ID_DIM), jnp.float32)
    exp_c = jax.random.normal(k[8], (B, EXP_DIM), jnp.float32)
    angle = 0.3 * jax.random.normal(k[9], (B, 3), jnp.float32)
    trans = 0.1 * jax.random.normal(k[10], (B, 3), jnp.float32)
    tex_c = jax.random.normal(k[11], (B, TEX_DIM), jnp.float32)
    gamma = 0.1 * jax.random.normal(k[12], (B, 27), jnp.float32)

    outs = bfm2mesh_forward(prep, id_c, exp_c, angle, trans, tex_c, gamma)
    outs = jax.block_until_ready(outs)

    refs = bfm2mesh_ref(params, id_c, exp_c, angle, trans, tex_c, gamma)
    for got, want, name in zip(outs, refs, ("face_vertex", "face_texture", "face_color")):
        np.testing.assert_allclose(np.asarray(got), np.asarray(want),
                                   rtol=1e-2, atol=1e-2, err_msg=name)
    print("KERNEL_OK")
</pallas_src>

<mosaic_0001>
module attributes {stable_mosaic.version = 11 : i64} {
  func.func @_basis_kernel(%arg0: i32, %arg1: memref<8x144xbf16, #tpu.memory_space<vmem>>, %arg2: memref<8x80xbf16, #tpu.memory_space<vmem>>, %arg3: memref<144x3072xbf16, #tpu.memory_space<vmem>>, %arg4: memref<80x3072xbf16, #tpu.memory_space<vmem>>, %arg5: memref<1x3072xf32, #tpu.memory_space<vmem>>, %arg6: memref<1x3072xf32, #tpu.memory_space<vmem>>, %arg7: memref<8x3072xf32, #tpu.memory_space<vmem>>, %arg8: memref<8x3072xf32, #tpu.memory_space<vmem>>) attributes {dimension_semantics = [#tpu.dimension_semantics<parallel>], iteration_bounds = array<i64: 1>, scalar_prefetch = 0 : i64, scratch_operands = 0 : i64, tpu.core_type = #tpu.core_type<tc>, window_params = [{pipeline_mode = #tpu.pipeline_mode<synchronous>, transform_indices = @transform_0, window_bounds = array<i64: 8, 144>}, {pipeline_mode = #tpu.pipeline_mode<synchronous>, transform_indices = @transform_1, window_bounds = array<i64: 8, 80>}, {transform_indices = @transform_2, window_bounds = array<i64: 144, 3072>}, {transform_indices = @transform_3, window_bounds = array<i64: 80, 3072>}, {transform_indices = @transform_4, window_bounds = array<i64: 1, 3072>}, {transform_indices = @transform_5, window_bounds = array<i64: 1, 3072>}, {transform_indices = @transform_6, window_bounds = array<i64: 8, 3072>}, {transform_indices = @transform_7, window_bounds = array<i64: 8, 3072>}]} {
    %c0 = arith.constant 0 : index
    %c0_0 = arith.constant 0 : index
    %0 = vector.load %arg1[%c0, %c0_0] : memref<8x144xbf16, #tpu.memory_space<vmem>>, vector<8x144xbf16>
    %c0_1 = arith.constant 0 : index
    %c0_2 = arith.constant 0 : index
    %1 = vector.load %arg3[%c0_1, %c0_2] : memref<144x3072xbf16, #tpu.memory_space<vmem>>, vector<144x3072xbf16>
    %cst = arith.constant dense<0.000000e+00> : vector<8x3072xf32>
    %2 = tpu.matmul %0, %1, %cst {dimension_numbers = #tpu.dot_dimension_numbers<[1], [0], [0], [1], [0, 0, 1, 1], [], []>} : vector<8x144xbf16>, vector<144x3072xbf16>, vector<8x3072xf32> -> vector<8x3072xf32>
    %c0_3 = arith.constant 0 : index
    %c0_4 = arith.constant 0 : index
    %3 = vector.load %arg5[%c0_3, %c0_4] : memref<1x3072xf32, #tpu.memory_space<vmem>>, vector<1x3072xf32>
    %4 = vector.broadcast %3 : vector<1x3072xf32> to vector<8x3072xf32>
    %5 = arith.addf %2, %4 : vector<8x3072xf32>
    %c0_5 = arith.constant 0 : index
    %c0_6 = arith.constant 0 : index
    %6 = vector.load %arg7[%c0_5, %c0_6] : memref<8x3072xf32, #tpu.memory_space<vmem>>, vector<8x3072xf32>
    tpu.vector_store %arg7[%c0_5, %c0_6], %5 {strides = array<i32>} : memref<8x3072xf32, #tpu.memory_space<vmem>>, vector<8x3072xf32>,
    %c0_7 = arith.constant 0 : index
    %c0_8 = arith.constant 0 : index
    %7 = vector.load %arg2[%c0_7, %c0_8] : memref<8x80xbf16, #tpu.memory_space<vmem>>, vector<8x80xbf16>
    %c0_9 = arith.constant 0 : index
    %c0_10 = arith.constant 0 : index
    %8 = vector.load %arg4[%c0_9, %c0_10] : memref<80x3072xbf16, #tpu.memory_space<vmem>>, vector<80x3072xbf16>
    %cst_11 = arith.constant dense<0.000000e+00> : vector<8x3072xf32>
    %9 = tpu.matmul %7, %8, %cst_11 {dimension_numbers = #tpu.dot_dimension_numbers<[1], [0], [0], [1], [0, 0, 1, 1], [], []>} : vector<8x80xbf16>, vector<80x3072xbf16>, vector<8x3072xf32> -> vector<8x3072xf32>
    %c0_12 = arith.constant 0 : index
    %c0_13 = arith.constant 0 : index
    %10 = vector.load %arg6[%c0_12, %c0_13] : memref<1x3072xf32, #tpu.memory_space<vmem>>, vector<1x3072xf32>
    %11 = vector.broadcast %10 : vector<1x3072xf32> to vector<8x3072xf32>
    %12 = arith.addf %9, %11 : vector<8x3072xf32>
    %c0_14 = arith.constant 0 : index
    %c0_15 = arith.constant 0 : index
    %13 = vector.load %arg8[%c0_14, %c0_15] : memref<8x3072xf32, #tpu.memory_space<vmem>>, vector<8x3072xf32>
    tpu.vector_store %arg8[%c0_14, %c0_15], %12 {strides = array<i32>} : memref<8x3072xf32, #tpu.memory_space<vmem>>, vector<8x3072xf32>,
    return
  }
  func.func @transform_0(%arg0: i32) -> (i32, i32) {
    %c0_i32 = arith.constant 0 : i32
    %c0_i32_0 = arith.constant 0 : i32
    %c0_i32_1 = arith.constant 0 : i32
    return %c0_i32, %c0_i32_0 : i32, i32
  }
  func.func @transform_1(%arg0: i32) -> (i32, i32) {
    %c0_i32 = arith.constant 0 : i32
    %c0_i32_0 = arith.constant 0 : i32
    %c0_i32_1 = arith.constant 0 : i32
    return %c0_i32, %c0_i32_0 : i32, i32
  }
  func.func @transform_2(%arg0: i32) -> (i32, i32) {
    %c0_i32 = arith.constant 0 : i32
    %c0_i32_0 = arith.constant 0 : i32
    return %c0_i32, %arg0 : i32, i32
  }
  func.func @transform_3(%arg0: i32) -> (i32, i32) {
    %c0_i32 = arith.constant 0 : i32
    %c0_i32_0 = arith.constant 0 : i32
    return %c0_i32, %arg0 : i32, i32
  }
  func.func @transform_4(%arg0: i32) -> (i32, i32) {
    %c0_i32 = arith.constant 0 : i32
    %c0_i32_0 = arith.constant 0 : i32
    return %c0_i32, %arg0 : i32, i32
  }
  func.func @transform_5(%arg0: i32) -> (i32, i32) {
    %c0_i32 = arith.constant 0 : i32
    %c0_i32_0 = arith.constant 0 : i32
    return %c0_i32, %arg0 : i32, i32
  }
  func.func @transform_6(%arg0: i32) -> (i32, i32) {
    %c0_i32 = arith.constant 0 : i32
    %c0_i32_0 = arith.constant 0 : i32
    return %c0_i32, %arg0 : i32, i32
  }
  func.func @transform_7(%arg0: i32) -> (i32, i32) {
    %c0_i32 = arith.constant 0 : i32
    %c0_i32_0 = arith.constant 0 : i32
    return %c0_i32, %arg0 : i32, i32
  }
}

module attributes {stable_mosaic.version = 11 : i64} {
  func.func @_face_norm_kernel(%arg0: i32, %arg1: i32, %arg2: memref<1x3x8x128xf32, #tpu.memory_space<vmem>>, %arg3: memref<1x3x8x128xf32, #tpu.memory_space<vmem>>, %arg4: memref<1x3x8x128xf32, #tpu.memory_space<vmem>>, %arg5: memref<1x3x8x128xf32, #tpu.memory_space<vmem>>) attributes {dimension_semantics = [#tpu.dimension_semantics<parallel>, #tpu.dimension_semantics<parallel>], iteration_bounds = array<i64: 2, 1>, scalar_prefetch = 0 : i64, scratch_operands = 0 : i64, tpu.core_type = #tpu.core_type<tc>, window_params = [{transform_indices = @transform_0, window_bounds = array<i64: 1, 3, 8, 128>}, {transform_indices = @transform_1, window_bounds = array<i64: 1, 3, 8, 128>}, {transform_indices = @transform_2, window_bounds = array<i64: 1, 3, 8, 128>}, {transform_indices = @transform_3, window_bounds = array<i64: 1, 3, 8, 128>}]} {
    %c0 = arith.constant 0 : index
    %c0_0 = arith.constant 0 : index
    %c0_1 = arith.constant 0 : index
    %c0_2 = arith.constant 0 : index
    %0 = vector.load %arg2[%c0, %c0_0, %c0_1, %c0_2] : memref<1x3x8x128xf32, #tpu.memory_space<vmem>>, vector<1x3x8x128xf32>
    %1 = vector.shape_cast %0 : vector<1x3x8x128xf32> to vector<3x8x128xf32>
    %c0_3 = arith.constant 0 : index
    %c0_4 = arith.constant 0 : index
    %c0_5 = arith.constant 0 : index
    %c0_6 = arith.constant 0 : index
    %2 = vector.load %arg3[%c0_3, %c0_4, %c0_5, %c0_6] : memref<1x3x8x128xf32, #tpu.memory_space<vmem>>, vector<1x3x8x128xf32>
    %3 = vector.shape_cast %2 : vector<1x3x8x128xf32> to vector<3x8x128xf32>
    %4 = arith.subf %1, %3 : vector<3x8x128xf32>
    %c0_7 = arith.constant 0 : index
    %c0_8 = arith.constant 0 : index
    %c0_9 = arith.constant 0 : index
    %c0_10 = arith.constant 0 : index
    %5 = vector.load %arg3[%c0_7, %c0_8, %c0_9, %c0_10] : memref<1x3x8x128xf32, #tpu.memory_space<vmem>>, vector<1x3x8x128xf32>
    %6 = vector.shape_cast %5 : vector<1x3x8x128xf32> to vector<3x8x128xf32>
    %c0_11 = arith.constant 0 : index
    %c0_12 = arith.constant 0 : index
    %c0_13 = arith.constant 0 : index
    %c0_14 = arith.constant 0 : index
    %7 = vector.load %arg4[%c0_11, %c0_12, %c0_13, %c0_14] : memref<1x3x8x128xf32, #tpu.memory_space<vmem>>, vector<1x3x8x128xf32>
    %8 = vector.shape_cast %7 : vector<1x3x8x128xf32> to vector<3x8x128xf32>
    %9 = arith.subf %6, %8 : vector<3x8x128xf32>
    %10 = vector.extract_strided_slice %4 {offsets = [1, 0, 0], sizes = [1, 8, 128], strides = [1, 1, 1]} : vector<3x8x128xf32> to vector<1x8x128xf32>
    %11 = vector.shape_cast %10 : vector<1x8x128xf32> to vector<8x128xf32>
    %12 = vector.extract_strided_slice %9 {offsets = [2, 0, 0], sizes = [1, 8, 128], strides = [1, 1, 1]} : vector<3x8x128xf32> to vector<1x8x128xf32>
    %13 = vector.shape_cast %12 : vector<1x8x128xf32> to vector<8x128xf32>
    %14 = arith.mulf %11, %13 : vector<8x128xf32>
    %15 = vector.extract_strided_slice %4 {offsets = [2, 0, 0], sizes = [1, 8, 128], strides = [1, 1, 1]} : vector<3x8x128xf32> to vector<1x8x128xf32>
    %16 = vector.shape_cast %15 : vector<1x8x128xf32> to vector<8x128xf32>
    %17 = vector.extract_strided_slice %9 {offsets = [1, 0, 0], sizes = [1, 8, 128], strides = [1, 1, 1]} : vector<3x8x128xf32> to vector<1x8x128xf32>
    %18 = vector.shape_cast %17 : vector<1x8x128xf32> to vector<8x128xf32>
    %19 = arith.mulf %16, %18 : vector<8x128xf32>
    %20 = arith.subf %14, %19 : vector<8x128xf32>
    %21 = vector.extract_strided_slice %4 {offsets = [2, 0, 0], sizes = [1, 8, 128], strides = [1, 1, 1]} : vector<3x8x128xf32> to vector<1x8x128xf32>
    %22 = vector.shape_cast %21 : vector<1x8x128xf32> to vector<8x128xf32>
    %23 = vector.extract_strided_slice %9 {offsets = [0, 0, 0], sizes = [1, 8, 128], strides = [1, 1, 1]} : vector<3x8x128xf32> to vector<1x8x128xf32>
    %24 = vector.shape_cast %23 : vector<1x8x128xf32> to vector<8x128xf32>
    %25 = arith.mulf %22, %24 : vector<8x128xf32>
    %26 = vector.extract_strided_slice %4 {offsets = [0, 0, 0], sizes = [1, 8, 128], strides = [1, 1, 1]} : vector<3x8x128xf32> to vector<1x8x128xf32>
    %27 = vector.shape_cast %26 : vector<1x8x128xf32> to vector<8x128xf32>
    %28 = vector.extract_strided_slice %9 {offsets = [2, 0, 0], sizes = [1, 8, 128], strides = [1, 1, 1]} : vector<3x8x128xf32> to vector<1x8x128xf32>
    %29 = vector.shape_cast %28 : vector<1x8x128xf32> to vector<8x128xf32>
    %30 = arith.mulf %27, %29 : vector<8x128xf32>
    %31 = arith.subf %25, %30 : vector<8x128xf32>
    %32 = vector.extract_strided_slice %4 {offsets = [0, 0, 0], sizes = [1, 8, 128], strides = [1, 1, 1]} : vector<3x8x128xf32> to vector<1x8x128xf32>
    %33 = vector.shape_cast %32 : vector<1x8x128xf32> to vector<8x128xf32>
    %34 = vector.extract_strided_slice %9 {offsets = [1, 0, 0], sizes = [1, 8, 128], strides = [1, 1, 1]} : vector<3x8x128xf32> to vector<1x8x128xf32>
    %35 = vector.shape_cast %34 : vector<1x8x128xf32> to vector<8x128xf32>
    %36 = arith.mulf %33, %35 : vector<8x128xf32>
    %37 = vector.extract_strided_slice %4 {offsets = [1, 0, 0], sizes = [1, 8, 128], strides = [1, 1, 1]} : vector<3x8x128xf32> to vector<1x8x128xf32>
    %38 = vector.shape_cast %37 : vector<1x8x128xf32> to vector<8x128xf32>
    %39 = vector.extract_strided_slice %9 {offsets = [0, 0, 0], sizes = [1, 8, 128], strides = [1, 1, 1]} : vector<3x8x128xf32> to vector<1x8x128xf32>
    %40 = vector.shape_cast %39 : vector<1x8x128xf32> to vector<8x128xf32>
    %41 = arith.mulf %38, %40 : vector<8x128xf32>
    %42 = arith.subf %36, %41 : vector<8x128xf32>
    %43 = arith.mulf %20, %20 : vector<8x128xf32>
    %44 = arith.mulf %31, %31 : vector<8x128xf32>
    %45 = arith.addf %43, %44 : vector<8x128xf32>
    %46 = arith.mulf %42, %42 : vector<8x128xf32>
    %47 = arith.addf %45, %46 : vector<8x128xf32>
    %cst = arith.constant 1.000000e-24 : f32
    %48 = vector.broadcast %cst : f32 to vector<8x128xf32>
    %49 = arith.maximumf %47, %48 : vector<8x128xf32>
    %50 = math.rsqrt %49 : vector<8x128xf32>
    %51 = arith.mulf %20, %50 : vector<8x128xf32>
    %c0_15 = arith.constant 0 : index
    %c0_16 = arith.constant 0 : index
    %c0_17 = arith.constant 0 : index
    %c0_18 = arith.constant 0 : index
    %52 = vector.load %arg5[%c0_15, %c0_16, %c0_17, %c0_18] : memref<1x3x8x128xf32, #tpu.memory_space<vmem>>, vector<1x1x8x128xf32>
    %53 = vector.shape_cast %52 : vector<1x1x8x128xf32> to vector<8x128xf32>
    %54 = vector.shape_cast %51 : vector<8x128xf32> to vector<1x1x8x128xf32>
    tpu.vector_store %arg5[%c0_15, %c0_16, %c0_17, %c0_18], %54 {strides = array<i32>} : memref<1x3x8x128xf32, #tpu.memory_space<vmem>>, vector<1x1x8x128xf32>,
    %55 = arith.mulf %31, %50 : vector<8x128xf32>
    %c0_19 = arith.constant 0 : index
    %c1 = arith.constant 1 : index
    %c0_20 = arith.constant 0 : index
    %c0_21 = arith.constant 0 : index
    %56 = vector.load %arg5[%c0_19, %c1, %c0_20, %c0_21] : memref<1x3x8x128xf32, #tpu.memory_space<vmem>>, vector<1x1x8x128xf32>
    %57 = vector.shape_cast %56 : vector<1x1x8x128xf32> to vector<8x128xf32>
    %58 = vector.shape_cast %55 : vector<8x128xf32> to vector<1x1x8x128xf32>
    tpu.vector_store %arg5[%c0_19, %c1, %c0_20, %c0_21], %58 {strides = array<i32>} : memref<1x3x8x128xf32, #tpu.memory_space<vmem>>, vector<1x1x8x128xf32>,
    %59 = arith.mulf %42, %50 : vector<8x128xf32>
    %c0_22 = arith.constant 0 : index
    %c2 = arith.constant 2 : index
    %c0_23 = arith.constant 0 : index
    %c0_24 = arith.constant 0 : index
    %60 = vector.load %arg5[%c0_22, %c2, %c0_23, %c0_24] : memref<1x3x8x128xf32, #tpu.memory_space<vmem>>, vector<1x1x8x128xf32>
    %61 = vector.shape_cast %60 : vector<1x1x8x128xf32> to vector<8x128xf32>
    %62 = vector.shape_cast %59 : vector<8x128xf32> to vector<1x1x8x128xf32>
    tpu.vector_store %arg5[%c0_22, %c2, %c0_23, %c0_24], %62 {strides = array<i32>} : memref<1x3x8x128xf32, #tpu.memory_space<vmem>>, vector<1x1x8x128xf32>,
    return
  }
  func.func @transform_0(%arg0: i32, %arg1: i32) -> (i32, i32, i32, i32) {
    %c0_i32 = arith.constant 0 : i32
    %c0_i32_0 = arith.constant 0 : i32
    %c0_i32_1 = arith.constant 0 : i32
    return %arg0, %c0_i32, %c0_i32_0, %arg1 : i32, i32, i32, i32
  }
  func.func @transform_1(%arg0: i32, %arg1: i32) -> (i32, i32, i32, i32) {
    %c0_i32 = arith.constant 0 : i32
    %c0_i32_0 = arith.constant 0 : i32
    %c0_i32_1 = arith.constant 0 : i32
    return %arg0, %c0_i32, %c0_i32_0, %arg1 : i32, i32, i32, i32
  }
  func.func @transform_2(%arg0: i32, %arg1: i32) -> (i32, i32, i32, i32) {
    %c0_i32 = arith.constant 0 : i32
    %c0_i32_0 = arith.constant 0 : i32
    %c0_i32_1 = arith.constant 0 : i32
    return %arg0, %c0_i32, %c0_i32_0, %arg1 : i32, i32, i32, i32
  }
  func.func @transform_3(%arg0: i32, %arg1: i32) -> (i32, i32, i32, i32) {
    %c0_i32 = arith.constant 0 : i32
    %c0_i32_0 = arith.constant 0 : i32
    %c0_i32_1 = arith.constant 0 : i32
    return %arg0, %c0_i32, %c0_i32_0, %arg1 : i32, i32, i32, i32
  }
}

module attributes {stable_mosaic.version = 11 : i64} {
  func.func @_vertex_kernel(%arg0: i32, %arg1: i32, %arg2: memref<1x3x8x128xf32, #tpu.memory_space<vmem>>, %arg3: memref<1x3x8x128xf32, #tpu.memory_space<vmem>>, %arg4: memref<1x3x8x128xf32, #tpu.memory_space<vmem>>, %arg5: memref<2x9xf32, #tpu.memory_space<smem>>, %arg6: memref<2x3xf32, #tpu.memory_space<smem>>, %arg7: memref<2x27xf32, #tpu.memory_space<smem>>, %arg8: memref<1x3x8x128xf32, #tpu.memory_space<vmem>>, %arg9: memref<1x3x8x128xf32, #tpu.memory_space<vmem>>) attributes {dimension_semantics = [#tpu.dimension_semantics<parallel>, #tpu.dimension_semantics<parallel>], iteration_bounds = array<i64: 2, 1>, scalar_prefetch = 0 : i64, scratch_operands = 0 : i64, tpu.core_type = #tpu.core_type<tc>, window_params = [{transform_indices = @transform_0, window_bounds = array<i64: 1, 3, 8, 128>}, {transform_indices = @transform_1, window_bounds = array<i64: 1, 3, 8, 128>}, {transform_indices = @transform_2, window_bounds = array<i64: 1, 3, 8, 128>}, {transform_indices = @transform_3, window_bounds = array<i64: 2, 9>}, {transform_indices = @transform_4, window_bounds = array<i64: 2, 3>}, {transform_indices = @transform_5, window_bounds = array<i64: 2, 27>}, {transform_indices = @transform_6, window_bounds = array<i64: 1, 3, 8, 128>}, {transform_indices = @transform_7, window_bounds = array<i64: 1, 3, 8, 128>}]} {
    %c0 = arith.constant 0 : index
    %c0_0 = arith.constant 0 : index
    %c0_1 = arith.constant 0 : index
    %c0_2 = arith.constant 0 : index
    %0 = vector.load %arg2[%c0, %c0_0, %c0_1, %c0_2] : memref<1x3x8x128xf32, #tpu.memory_space<vmem>>, vector<1x3x8x128xf32>
    %1 = vector.shape_cast %0 : vector<1x3x8x128xf32> to vector<3x8x128xf32>
    %2 = vector.extract_strided_slice %1 {offsets = [0, 0, 0], sizes = [1, 8, 128], strides = [1, 1, 1]} : vector<3x8x128xf32> to vector<1x8x128xf32>
    %3 = vector.shape_cast %2 : vector<1x8x128xf32> to vector<8x128xf32>
    %4 = vector.extract_strided_slice %1 {offsets = [1, 0, 0], sizes = [1, 8, 128], strides = [1, 1, 1]} : vector<3x8x128xf32> to vector<1x8x128xf32>
    %5 = vector.shape_cast %4 : vector<1x8x128xf32> to vector<8x128xf32>
    %6 = vector.extract_strided_slice %1 {offsets = [2, 0, 0], sizes = [1, 8, 128], strides = [1, 1, 1]} : vector<3x8x128xf32> to vector<1x8x128xf32>
    %7 = vector.shape_cast %6 : vector<1x8x128xf32> to vector<8x128xf32>
    %8 = arith.index_cast %arg0 : i32 to index
    %c0_3 = arith.constant 0 : index
    %9 = memref.load %arg5[%8, %c0_3] : memref<2x9xf32, #tpu.memory_space<smem>>
    %10 = vector.broadcast %9 : f32 to vector<8x128xf32>
    %11 = arith.mulf %3, %10 : vector<8x128xf32>
    %12 = arith.index_cast %arg0 : i32 to index
    %c3 = arith.constant 3 : index
    %13 = memref.load %arg5[%12, %c3] : memref<2x9xf32, #tpu.memory_space<smem>>
    %14 = vector.broadcast %13 : f32 to vector<8x128xf32>
    %15 = arith.mulf %5, %14 : vector<8x128xf32>
    %16 = arith.addf %11, %15 : vector<8x128xf32>
    %17 = arith.index_cast %arg0 : i32 to index
    %c6 = arith.constant 6 : index
    %18 = memref.load %arg5[%17, %c6] : memref<2x9xf32, #tpu.memory_space<smem>>
    %19 = vector.broadcast %18 : f32 to vector<8x128xf32>
    %20 = arith.mulf %7, %19 : vector<8x128xf32>
    %21 = arith.addf %16, %20 : vector<8x128xf32>
    %22 = arith.index_cast %arg0 : i32 to index
    %c1 = arith.constant 1 : index
    %23 = memref.load %arg5[%22, %c1] : memref<2x9xf32, #tpu.memory_space<smem>>
    %24 = vector.broadcast %23 : f32 to vector<8x128xf32>
    %25 = arith.mulf %3, %24 : vector<8x128xf32>
    %26 = arith.index_cast %arg0 : i32 to index
    %c4 = arith.constant 4 : index
    %27 = memref.load %arg5[%26, %c4] : memref<2x9xf32, #tpu.memory_space<smem>>
    %28 = vector.broadcast %27 : f32 to vector<8x128xf32>
    %29 = arith.mulf %5, %28 : vector<8x128xf32>
    %30 = arith.addf %25, %29 : vector<8x128xf32>
    %31 = arith.index_cast %arg0 : i32 to index
    %c7 = arith.constant 7 : index
    %32 = memref.load %arg5[%31, %c7] : memref<2x9xf32, #tpu.memory_space<smem>>
    %33 = vector.broadcast %32 : f32 to vector<8x128xf32>
    %34 = arith.mulf %7, %33 : vector<8x128xf32>
    %35 = arith.addf %30, %34 : vector<8x128xf32>
    %36 = arith.index_cast %arg0 : i32 to index
    %c2 = arith.constant 2 : index
    %37 = memref.load %arg5[%36, %c2] : memref<2x9xf32, #tpu.memory_space<smem>>
    %38 = vector.broadcast %37 : f32 to vector<8x128xf32>
    %39 = arith.mulf %3, %38 : vector<8x128xf32>
    %40 = arith.index_cast %arg0 : i32 to index
    %c5 = arith.constant 5 : index
    %41 = memref.load %arg5[%40, %c5] : memref<2x9xf32, #tpu.memory_space<smem>>
    %42 = vector.broadcast %41 : f32 to vector<8x128xf32>
    %43 = arith.mulf %5, %42 : vector<8x128xf32>
    %44 = arith.addf %39, %43 : vector<8x128xf32>
    %45 = arith.index_cast %arg0 : i32 to index
    %c8 = arith.constant 8 : index
    %46 = memref.load %arg5[%45, %c8] : memref<2x9xf32, #tpu.memory_space<smem>>
    %47 = vector.broadcast %46 : f32 to vector<8x128xf32>
    %48 = arith.mulf %7, %47 : vector<8x128xf32>
    %49 = arith.addf %44, %48 : vector<8x128xf32>
    %50 = arith.index_cast %arg0 : i32 to index
    %c0_4 = arith.constant 0 : index
    %51 = memref.load %arg6[%50, %c0_4] : memref<2x3xf32, #tpu.memory_space<smem>>
    %52 = vector.broadcast %51 : f32 to vector<8x128xf32>
    %53 = arith.addf %21, %52 : vector<8x128xf32>
    %c0_5 = arith.constant 0 : index
    %c0_6 = arith.constant 0 : index
    %c0_7 = arith.constant 0 : index
    %c0_8 = arith.constant 0 : index
    %54 = vector.load %arg8[%c0_5, %c0_6, %c0_7, %c0_8] : memref<1x3x8x128xf32, #tpu.memory_space<vmem>>, vector<1x1x8x128xf32>
    %55 = vector.shape_cast %54 : vector<1x1x8x128xf32> to vector<8x128xf32>
    %56 = vector.shape_cast %53 : vector<8x128xf32> to vector<1x1x8x128xf32>
    tpu.vector_store %arg8[%c0_5, %c0_6, %c0_7, %c0_8], %56 {strides = array<i32>} : memref<1x3x8x128xf32, #tpu.memory_space<vmem>>, vector<1x1x8x128xf32>,
    %57 = arith.index_cast %arg0 : i32 to index
    %c1_9 = arith.constant 1 : index
    %58 = memref.load %arg6[%57, %c1_9] : memref<2x3xf32, #tpu.memory_space<smem>>
    %59 = vector.broadcast %58 : f32 to vector<8x128xf32>
    %60 = arith.addf %35, %59 : vector<8x128xf32>
    %c0_10 = arith.constant 0 : index
    %c1_11 = arith.constant 1 : index
    %c0_12 = arith.constant 0 : index
    %c0_13 = arith.constant 0 : index
    %61 = vector.load %arg8[%c0_10, %c1_11, %c0_12, %c0_13] : memref<1x3x8x128xf32, #tpu.memory_space<vmem>>, vector<1x1x8x128xf32>
    %62 = vector.shape_cast %61 : vector<1x1x8x128xf32> to vector<8x128xf32>
    %63 = vector.shape_cast %60 : vector<8x128xf32> to vector<1x1x8x128xf32>
    tpu.vector_store %arg8[%c0_10, %c1_11, %c0_12, %c0_13], %63 {strides = array<i32>} : memref<1x3x8x128xf32, #tpu.memory_space<vmem>>, vector<1x1x8x128xf32>,
    %64 = arith.index_cast %arg0 : i32 to index
    %c2_14 = arith.constant 2 : index
    %65 = memref.load %arg6[%64, %c2_14] : memref<2x3xf32, #tpu.memory_space<smem>>
    %66 = vector.broadcast %65 : f32 to vector<8x128xf32>
    %67 = arith.addf %49, %66 : vector<8x128xf32>
    %cst = arith.constant 1.000000e+01 : f32
    %68 = vector.broadcast %cst : f32 to vector<8x128xf32>
    %69 = arith.subf %68, %67 : vector<8x128xf32>
    %c0_15 = arith.constant 0 : index
    %c2_16 = arith.constant 2 : index
    %c0_17 = arith.constant 0 : index
    %c0_18 = arith.constant 0 : index
    %70 = vector.load %arg8[%c0_15, %c2_16, %c0_17, %c0_18] : memref<1x3x8x128xf32, #tpu.memory_space<vmem>>, vector<1x1x8x128xf32>
    %71 = vector.shape_cast %70 : vector<1x1x8x128xf32> to vector<8x128xf32>
    %72 = vector.shape_cast %69 : vector<8x128xf32> to vector<1x1x8x128xf32>
    tpu.vector_store %arg8[%c0_15, %c2_16, %c0_17, %c0_18], %72 {strides = array<i32>} : memref<1x3x8x128xf32, #tpu.memory_space<vmem>>, vector<1x1x8x128xf32>,
    %c0_19 = arith.constant 0 : index
    %c0_20 = arith.constant 0 : index
    %c0_21 = arith.constant 0 : index
    %c0_22 = arith.constant 0 : index
    %73 = vector.load %arg4[%c0_19, %c0_20, %c0_21, %c0_22] : memref<1x3x8x128xf32, #tpu.memory_space<vmem>>, vector<1x3x8x128xf32>
    %74 = vector.shape_cast %73 : vector<1x3x8x128xf32> to vector<3x8x128xf32>
    %75 = vector.extract_strided_slice %74 {offsets = [0, 0, 0], sizes = [1, 8, 128], strides = [1, 1, 1]} : vector<3x8x128xf32> to vector<1x8x128xf32>
    %76 = vector.shape_cast %75 : vector<1x8x128xf32> to vector<8x128xf32>
    %77 = vector.extract_strided_slice %74 {offsets = [0, 0, 0], sizes = [1, 8, 128], strides = [1, 1, 1]} : vector<3x8x128xf32> to vector<1x8x128xf32>
    %78 = vector.shape_cast %77 : vector<1x8x128xf32> to vector<8x128xf32>
    %79 = arith.mulf %76, %78 : vector<8x128xf32>
    %80 = vector.extract_strided_slice %74 {offsets = [1, 0, 0], sizes = [1, 8, 128], strides = [1, 1, 1]} : vector<3x8x128xf32> to vector<1x8x128xf32>
    %81 = vector.shape_cast %80 : vector<1x8x128xf32> to vector<8x128xf32>
    %82 = vector.extract_strided_slice %74 {offsets = [1, 0, 0], sizes = [1, 8, 128], strides = [1, 1, 1]} : vector<3x8x128xf32> to vector<1x8x128xf32>
    %83 = vector.shape_cast %82 : vector<1x8x128xf32> to vector<8x128xf32>
    %84 = arith.mulf %81, %83 : vector<8x128xf32>
    %85 = arith.addf %79, %84 : vector<8x128xf32>
    %86 = vector.extract_strided_slice %74 {offsets = [2, 0, 0], sizes = [1, 8, 128], strides = [1, 1, 1]} : vector<3x8x128xf32> to vector<1x8x128xf32>
    %87 = vector.shape_cast %86 : vector<1x8x128xf32> to vector<8x128xf32>
    %88 = vector.extract_strided_slice %74 {offsets = [2, 0, 0], sizes = [1, 8, 128], strides = [1, 1, 1]} : vector<3x8x128xf32> to vector<1x8x128xf32>
    %89 = vector.shape_cast %88 : vector<1x8x128xf32> to vector<8x128xf32>
    %90 = arith.mulf %87, %89 : vector<8x128xf32>
    %91 = arith.addf %85, %90 : vector<8x128xf32>
    %cst_23 = arith.constant 1.000000e-24 : f32
    %92 = vector.broadcast %cst_23 : f32 to vector<8x128xf32>
    %93 = arith.maximumf %91, %92 : vector<8x128xf32>
    %94 = math.rsqrt %93 : vector<8x128xf32>
    %95 = vector.extract_strided_slice %74 {offsets = [0, 0, 0], sizes = [1, 8, 128], strides = [1, 1, 1]} : vector<3x8x128xf32> to vector<1x8x128xf32>
    %96 = vector.shape_cast %95 : vector<1x8x128xf32> to vector<8x128xf32>
    %97 = arith.mulf %96, %94 : vector<8x128xf32>
    %98 = vector.extract_strided_slice %74 {offsets = [1, 0, 0], sizes = [1, 8, 128], strides = [1, 1, 1]} : vector<3x8x128xf32> to vector<1x8x128xf32>
    %99 = vector.shape_cast %98 : vector<1x8x128xf32> to vector<8x128xf32>
    %100 = arith.mulf %99, %94 : vector<8x128xf32>
    %101 = vector.extract_strided_slice %74 {offsets = [2, 0, 0], sizes = [1, 8, 128], strides = [1, 1, 1]} : vector<3x8x128xf32> to vector<1x8x128xf32>
    %102 = vector.shape_cast %101 : vector<1x8x128xf32> to vector<8x128xf32>
    %103 = arith.mulf %102, %94 : vector<8x128xf32>
    %104 = arith.index_cast %arg0 : i32 to index
    %c0_24 = arith.constant 0 : index
    %105 = memref.load %arg5[%104, %c0_24] : memref<2x9xf32, #tpu.memory_space<smem>>
    %106 = vector.broadcast %105 : f32 to vector<8x128xf32>
    %107 = arith.mulf %97, %106 : vector<8x128xf32>
    %108 = arith.index_cast %arg0 : i32 to index
    %c3_25 = arith.constant 3 : index
    %109 = memref.load %arg5[%108, %c3_25] : memref<2x9xf32, #tpu.memory_space<smem>>
    %110 = vector.broadcast %109 : f32 to vector<8x128xf32>
    %111 = arith.mulf %100, %110 : vector<8x128xf32>
    %112 = arith.addf %107, %111 : vector<8x128xf32>
    %113 = arith.index_cast %arg0 : i32 to index
    %c6_26 = arith.constant 6 : index
    %114 = memref.load %arg5[%113, %c6_26] : memref<2x9xf32, #tpu.memory_space<smem>>
    %115 = vector.broadcast %114 : f32 to vector<8x128xf32>
    %116 = arith.mulf %103, %115 : vector<8x128xf32>
    %117 = arith.addf %112, %116 : vector<8x128xf32>
    %118 = arith.index_cast %arg0 : i32 to index
    %c1_27 = arith.constant 1 : index
    %119 = memref.load %arg5[%118, %c1_27] : memref<2x9xf32, #tpu.memory_space<smem>>
    %120 = vector.broadcast %119 : f32 to vector<8x128xf32>
    %121 = arith.mulf %97, %120 : vector<8x128xf32>
    %122 = arith.index_cast %arg0 : i32 to index
    %c4_28 = arith.constant 4 : index
    %123 = memref.load %arg5[%122, %c4_28] : memref<2x9xf32, #tpu.memory_space<smem>>
    %124 = vector.broadcast %123 : f32 to vector<8x128xf32>
    %125 = arith.mulf %100, %124 : vector<8x128xf32>
    %126 = arith.addf %121, %125 : vector<8x128xf32>
    %127 = arith.index_cast %arg0 : i32 to index
    %c7_29 = arith.constant 7 : index
    %128 = memref.load %arg5[%127, %c7_29] : memref<2x9xf32, #tpu.memory_space<smem>>
    %129 = vector.broadcast %128 : f32 to vector<8x128xf32>
    %130 = arith.mulf %103, %129 : vector<8x128xf32>
    %131 = arith.addf %126, %130 : vector<8x128xf32>
    %132 = arith.index_cast %arg0 : i32 to index
    %c2_30 = arith.constant 2 : index
    %133 = memref.load %arg5[%132, %c2_30] : memref<2x9xf32, #tpu.memory_space<smem>>
    %134 = vector.broadcast %133 : f32 to vector<8x128xf32>
    %135 = arith.mulf %97, %134 : vector<8x128xf32>
    %136 = arith.index_cast %arg0 : i32 to index
    %c5_31 = arith.constant 5 : index
    %137 = memref.load %arg5[%136, %c5_31] : memref<2x9xf32, #tpu.memory_space<smem>>
    %138 = vector.broadcast %137 : f32 to vector<8x128xf32>
    %139 = arith.mulf %100, %138 : vector<8x128xf32>
    %140 = arith.addf %135, %139 : vector<8x128xf32>
    %141 = arith.index_cast %arg0 : i32 to index
    %c8_32 = arith.constant 8 : index
    %142 = memref.load %arg5[%141, %c8_32] : memref<2x9xf32, #tpu.memory_space<smem>>
    %143 = vector.broadcast %142 : f32 to vector<8x128xf32>
    %144 = arith.mulf %103, %143 : vector<8x128xf32>
    %145 = arith.addf %140, %144 : vector<8x128xf32>
    %cst_33 = arith.constant -1.7724539 : f32
    %146 = vector.broadcast %cst_33 : f32 to vector<8x128xf32>
    %147 = arith.mulf %146, %131 : vector<8x128xf32>
    %cst_34 = arith.constant 1.7724539 : f32
    %148 = vector.broadcast %cst_34 : f32 to vector<8x128xf32>
    %149 = arith.mulf %148, %145 : vector<8x128xf32>
    %cst_35 = arith.constant -1.7724539 : f32
    %150 = vector.broadcast %cst_35 : f32 to vector<8x128xf32>
    %151 = arith.mulf %150, %117 : vector<8x128xf32>
    %cst_36 = arith.constant 2.42703247 : f32
    %152 = vector.broadcast %cst_36 : f32 to vector<8x128xf32>
    %153 = arith.mulf %152, %117 : vector<8x128xf32>
    %154 = arith.mulf %153, %131 : vector<8x128xf32>
    %cst_37 = arith.constant -2.42703247 : f32
    %155 = vector.broadcast %cst_37 : f32 to vector<8x128xf32>
    %156 = arith.mulf %155, %131 : vector<8x128xf32>
    %157 = arith.mulf %156, %145 : vector<8x128xf32>
    %cst_38 = arith.constant 3.000000e+00 : f32
    %158 = vector.broadcast %cst_38 : f32 to vector<8x128xf32>
    %159 = arith.mulf %158, %145 : vector<8x128xf32>
    %160 = arith.mulf %159, %145 : vector<8x128xf32>
    %cst_39 = arith.constant 1.000000e+00 : f32
    %161 = vector.broadcast %cst_39 : f32 to vector<8x128xf32>
    %162 = arith.subf %160, %161 : vector<8x128xf32>
    %cst_40 = arith.constant 0.700623929 : f32
    %163 = vector.broadcast %cst_40 : f32 to vector<8x128xf32>
    %164 = arith.mulf %163, %162 : vector<8x128xf32>
    %cst_41 = arith.constant -2.42703247 : f32
    %165 = vector.broadcast %cst_41 : f32 to vector<8x128xf32>
    %166 = arith.mulf %165, %117 : vector<8x128xf32>
    %167 = arith.mulf %166, %145 : vector<8x128xf32>
    %168 = arith.mulf %117, %117 : vector<8x128xf32>
    %169 = arith.mulf %131, %131 : vector<8x128xf32>
    %170 = arith.subf %168, %169 : vector<8x128xf32>
    %cst_42 = arith.constant 1.21351624 : f32
    %171 = vector.broadcast %cst_42 : f32 to vector<8x128xf32>
    %172 = arith.mulf %171, %170 : vector<8x128xf32>
    %c0_43 = arith.constant 0 : index
    %c0_44 = arith.constant 0 : index
    %c0_45 = arith.constant 0 : index
    %c0_46 = arith.constant 0 : index
    %173 = vector.load %arg3[%c0_43, %c0_44, %c0_45, %c0_46] : memref<1x3x8x128xf32, #tpu.memory_space<vmem>>, vector<1x3x8x128xf32>
    %174 = vector.shape_cast %173 : vector<1x3x8x128xf32> to vector<3x8x128xf32>
    %175 = arith.index_cast %arg0 : i32 to index
    %c3_47 = arith.constant 3 : index
    %176 = memref.load %arg7[%175, %c3_47] : memref<2x27xf32, #tpu.memory_space<smem>>
    %177 = vector.broadcast %176 : f32 to vector<8x128xf32>
    %178 = arith.mulf %147, %177 : vector<8x128xf32>
    %179 = arith.index_cast %arg0 : i32 to index
    %c6_48 = arith.constant 6 : index
    %180 = memref.load %arg7[%179, %c6_48] : memref<2x27xf32, #tpu.memory_space<smem>>
    %181 = vector.broadcast %180 : f32 to vector<8x128xf32>
    %182 = arith.mulf %149, %181 : vector<8x128xf32>
    %183 = arith.addf %178, %182 : vector<8x128xf32>
    %184 = arith.index_cast %arg0 : i32 to index
    %c9 = arith.constant 9 : index
    %185 = memref.load %arg7[%184, %c9] : memref<2x27xf32, #tpu.memory_space<smem>>
    %186 = vector.broadcast %185 : f32 to vector<8x128xf32>
    %187 = arith.mulf %151, %186 : vector<8x128xf32>
    %188 = arith.addf %183, %187 : vector<8x128xf32>
    %189 = arith.index_cast %arg0 : i32 to index
    %c12 = arith.constant 12 : index
    %190 = memref.load %arg7[%189, %c12] : memref<2x27xf32, #tpu.memory_space<smem>>
    %191 = vector.broadcast %190 : f32 to vector<8x128xf32>
    %192 = arith.mulf %154, %191 : vector<8x128xf32>
    %193 = arith.addf %188, %192 : vector<8x128xf32>
    %194 = arith.index_cast %arg0 : i32 to index
    %c15 = arith.constant 15 : index
    %195 = memref.load %arg7[%194, %c15] : memref<2x27xf32, #tpu.memory_space<smem>>
    %196 = vector.broadcast %195 : f32 to vector<8x128xf32>
    %197 = arith.mulf %157, %196 : vector<8x128xf32>
    %198 = arith.addf %193, %197 : vector<8x128xf32>
    %199 = arith.index_cast %arg0 : i32 to index
    %c18 = arith.constant 18 : index
    %200 = memref.load %arg7[%199, %c18] : memref<2x27xf32, #tpu.memory_space<smem>>
    %201 = vector.broadcast %200 : f32 to vector<8x128xf32>
    %202 = arith.mulf %164, %201 : vector<8x128xf32>
    %203 = arith.addf %198, %202 : vector<8x128xf32>
    %204 = arith.index_cast %arg0 : i32 to index
    %c21 = arith.constant 21 : index
    %205 = memref.load %arg7[%204, %c21] : memref<2x27xf32, #tpu.memory_space<smem>>
    %206 = vector.broadcast %205 : f32 to vector<8x128xf32>
    %207 = arith.mulf %167, %206 : vector<8x128xf32>
    %208 = arith.addf %203, %207 : vector<8x128xf32>
    %209 = arith.index_cast %arg0 : i32 to index
    %c24 = arith.constant 24 : index
    %210 = memref.load %arg7[%209, %c24] : memref<2x27xf32, #tpu.memory_space<smem>>
    %211 = vector.broadcast %210 : f32 to vector<8x128xf32>
    %212 = arith.mulf %172, %211 : vector<8x128xf32>
    %213 = arith.addf %208, %212 : vector<8x128xf32>
    %214 = arith.index_cast %arg0 : i32 to index
    %c0_49 = arith.constant 0 : index
    %215 = memref.load %arg7[%214, %c0_49] : memref<2x27xf32, #tpu.memory_space<smem>>
    %cst_50 = arith.constant 0.886226952 : f32
    %216 = arith.mulf %cst_50, %215 : f32
    %217 = vector.broadcast %216 : f32 to vector<8x128xf32>
    %218 = arith.addf %213, %217 : vector<8x128xf32>
    %219 = vector.extract_strided_slice %174 {offsets = [0, 0, 0], sizes = [1, 8, 128], strides = [1, 1, 1]} : vector<3x8x128xf32> to vector<1x8x128xf32>
    %220 = vector.shape_cast %219 : vector<1x8x128xf32> to vector<8x128xf32>
    %221 = arith.mulf %218, %220 : vector<8x128xf32>
    %c0_51 = arith.constant 0 : index
    %c0_52 = arith.constant 0 : index
    %c0_53 = arith.constant 0 : index
    %c0_54 = arith.constant 0 : index
    %222 = vector.load %arg9[%c0_51, %c0_52, %c0_53, %c0_54] : memref<1x3x8x128xf32, #tpu.memory_space<vmem>>, vector<1x1x8x128xf32>
    %223 = vector.shape_cast %222 : vector<1x1x8x128xf32> to vector<8x128xf32>
    %224 = vector.shape_cast %221 : vector<8x128xf32> to vector<1x1x8x128xf32>
    tpu.vector_store %arg9[%c0_51, %c0_52, %c0_53, %c0_54], %224 {strides = array<i32>} : memref<1x3x8x128xf32, #tpu.memory_space<vmem>>, vector<1x1x8x128xf32>,
    %225 = arith.index_cast %arg0 : i32 to index
    %c4_55 = arith.constant 4 : index
    %226 = memref.load %arg7[%225, %c4_55] : memref<2x27xf32, #tpu.memory_space<smem>>
    %227 = vector.broadcast %226 : f32 to vector<8x128xf32>
    %228 = arith.mulf %147, %227 : vector<8x128xf32>
    %229 = arith.index_cast %arg0 : i32 to index
    %c7_56 = arith.constant 7 : index
    %230 = memref.load %arg7[%229, %c7_56] : memref<2x27xf32, #tpu.memory_space<smem>>
    %231 = vector.broadcast %230 : f32 to vector<8x128xf32>
    %232 = arith.mulf %149, %231 : vector<8x128xf32>
    %233 = arith.addf %228, %232 : vector<8x128xf32>
    %234 = arith.index_cast %arg0 : i32 to index
    %c10 = arith.constant 10 : index
    %235 = memref.load %arg7[%234, %c10] : memref<2x27xf32, #tpu.memory_space<smem>>
    %236 = vector.broadcast %235 : f32 to vector<8x128xf32>
    %237 = arith.mulf %151, %236 : vector<8x128xf32>
    %238 = arith.addf %233, %237 : vector<8x128xf32>
    %239 = arith.index_cast %arg0 : i32 to index
    %c13 = arith.constant 13 : index
    %240 = memref.load %arg7[%239, %c13] : memref<2x27xf32, #tpu.memory_space<smem>>
    %241 = vector.broadcast %240 : f32 to vector<8x128xf32>
    %242 = arith.mulf %154, %241 : vector<8x128xf32>
    %243 = arith.addf %238, %242 : vector<8x128xf32>
    %244 = arith.index_cast %arg0 : i32 to index
    %c16 = arith.constant 16 : index
    %245 = memref.load %arg7[%244, %c16] : memref<2x27xf32, #tpu.memory_space<smem>>
    %246 = vector.broadcast %245 : f32 to vector<8x128xf32>
    %247 = arith.mulf %157, %246 : vector<8x128xf32>
    %248 = arith.addf %243, %247 : vector<8x128xf32>
    %249 = arith.index_cast %arg0 : i32 to index
    %c19 = arith.constant 19 : index
    %250 = memref.load %arg7[%249, %c19] : memref<2x27xf32, #tpu.memory_space<smem>>
    %251 = vector.broadcast %250 : f32 to vector<8x128xf32>
    %252 = arith.mulf %164, %251 : vector<8x128xf32>
    %253 = arith.addf %248, %252 : vector<8x128xf32>
    %254 = arith.index_cast %arg0 : i32 to index
    %c22 = arith.constant 22 : index
    %255 = memref.load %arg7[%254, %c22] : memref<2x27xf32, #tpu.memory_space<smem>>
    %256 = vector.broadcast %255 : f32 to vector<8x128xf32>
    %257 = arith.mulf %167, %256 : vector<8x128xf32>
    %258 = arith.addf %253, %257 : vector<8x128xf32>
    %259 = arith.index_cast %arg0 : i32 to index
    %c25 = arith.constant 25 : index
    %260 = memref.load %arg7[%259, %c25] : memref<2x27xf32, #tpu.memory_space<smem>>
    %261 = vector.broadcast %260 : f32 to vector<8x128xf32>
    %262 = arith.mulf %172, %261 : vector<8x128xf32>
    %263 = arith.addf %258, %262 : vector<8x128xf32>
    %264 = arith.index_cast %arg0 : i32 to index
    %c1_57 = arith.constant 1 : index
    %265 = memref.load %arg7[%264, %c1_57] : memref<2x27xf32, #tpu.memory_space<smem>>
    %cst_58 = arith.constant 0.886226952 : f32
    %266 = arith.mulf %cst_58, %265 : f32
    %267 = vector.broadcast %266 : f32 to vector<8x128xf32>
    %268 = arith.addf %263, %267 : vector<8x128xf32>
    %269 = vector.extract_strided_slice %174 {offsets = [1, 0, 0], sizes = [1, 8, 128], strides = [1, 1, 1]} : vector<3x8x128xf32> to vector<1x8x128xf32>
    %270 = vector.shape_cast %269 : vector<1x8x128xf32> to vector<8x128xf32>
    %271 = arith.mulf %268, %270 : vector<8x128xf32>
    %c0_59 = arith.constant 0 : index
    %c1_60 = arith.constant 1 : index
    %c0_61 = arith.constant 0 : index
    %c0_62 = arith.constant 0 : index
    %272 = vector.load %arg9[%c0_59, %c1_60, %c0_61, %c0_62] : memref<1x3x8x128xf32, #tpu.memory_space<vmem>>, vector<1x1x8x128xf32>
    %273 = vector.shape_cast %272 : vector<1x1x8x128xf32> to vector<8x128xf32>
    %274 = vector.shape_cast %271 : vector<8x128xf32> to vector<1x1x8x128xf32>
    tpu.vector_store %arg9[%c0_59, %c1_60, %c0_61, %c0_62], %274 {strides = array<i32>} : memref<1x3x8x128xf32, #tpu.memory_space<vmem>>, vector<1x1x8x128xf32>,
    %275 = arith.index_cast %arg0 : i32 to index
    %c5_63 = arith.constant 5 : index
    %276 = memref.load %arg7[%275, %c5_63] : memref<2x27xf32, #tpu.memory_space<smem>>
    %277 = vector.broadcast %276 : f32 to vector<8x128xf32>
    %278 = arith.mulf %147, %277 : vector<8x128xf32>
    %279 = arith.index_cast %arg0 : i32 to index
    %c8_64 = arith.constant 8 : index
    %280 = memref.load %arg7[%279, %c8_64] : memref<2x27xf32, #tpu.memory_space<smem>>
    %281 = vector.broadcast %280 : f32 to vector<8x128xf32>
    %282 = arith.mulf %149, %281 : vector<8x128xf32>
    %283 = arith.addf %278, %282 : vector<8x128xf32>
    %284 = arith.index_cast %arg0 : i32 to index
    %c11 = arith.constant 11 : index
    %285 = memref.load %arg7[%284, %c11] : memref<2x27xf32, #tpu.memory_space<smem>>
    %286 = vector.broadcast %285 : f32 to vector<8x128xf32>
    %287 = arith.mulf %151, %286 : vector<8x128xf32>
    %288 = arith.addf %283, %287 : vector<8x128xf32>
    %289 = arith.index_cast %arg0 : i32 to index
    %c14 = arith.constant 14 : index
    %290 = memref.load %arg7[%289, %c14] : memref<2x27xf32, #tpu.memory_space<smem>>
    %291 = vector.broadcast %290 : f32 to vector<8x128xf32>
    %292 = arith.mulf %154, %291 : vector<8x128xf32>
    %293 = arith.addf %288, %292 : vector<8x128xf32>
    %294 = arith.index_cast %arg0 : i32 to index
    %c17 = arith.constant 17 : index
    %295 = memref.load %arg7[%294, %c17] : memref<2x27xf32, #tpu.memory_space<smem>>
    %296 = vector.broadcast %295 : f32 to vector<8x128xf32>
    %297 = arith.mulf %157, %296 : vector<8x128xf32>
    %298 = arith.addf %293, %297 : vector<8x128xf32>
    %299 = arith.index_cast %arg0 : i32 to index
    %c20 = arith.constant 20 : index
    %300 = memref.load %arg7[%299, %c20] : memref<2x27xf32, #tpu.memory_space<smem>>
    %301 = vector.broadcast %300 : f32 to vector<8x128xf32>
    %302 = arith.mulf %164, %301 : vector<8x128xf32>
    %303 = arith.addf %298, %302 : vector<8x128xf32>
    %304 = arith.index_cast %arg0 : i32 to index
    %c23 = arith.constant 23 : index
    %305 = memref.load %arg7[%304, %c23] : memref<2x27xf32, #tpu.memory_space<smem>>
    %306 = vector.broadcast %305 : f32 to vector<8x128xf32>
    %307 = arith.mulf %167, %306 : vector<8x128xf32>
    %308 = arith.addf %303, %307 : vector<8x128xf32>
    %309 = arith.index_cast %arg0 : i32 to index
    %c26 = arith.constant 26 : index
    %310 = memref.load %arg7[%309, %c26] : memref<2x27xf32, #tpu.memory_space<smem>>
    %311 = vector.broadcast %310 : f32 to vector<8x128xf32>
    %312 = arith.mulf %172, %311 : vector<8x128xf32>
    %313 = arith.addf %308, %312 : vector<8x128xf32>
    %314 = arith.index_cast %arg0 : i32 to index
    %c2_65 = arith.constant 2 : index
    %315 = memref.load %arg7[%314, %c2_65] : memref<2x27xf32, #tpu.memory_space<smem>>
    %cst_66 = arith.constant 0.886226952 : f32
    %316 = arith.mulf %cst_66, %315 : f32
    %317 = vector.broadcast %316 : f32 to vector<8x128xf32>
    %318 = arith.addf %313, %317 : vector<8x128xf32>
    %319 = vector.extract_strided_slice %174 {offsets = [2, 0, 0], sizes = [1, 8, 128], strides = [1, 1, 1]} : vector<3x8x128xf32> to vector<1x8x128xf32>
    %320 = vector.shape_cast %319 : vector<1x8x128xf32> to vector<8x128xf32>
    %321 = arith.mulf %318, %320 : vector<8x128xf32>
    %c0_67 = arith.constant 0 : index
    %c2_68 = arith.constant 2 : index
    %c0_69 = arith.constant 0 : index
    %c0_70 = arith.constant 0 : index
    %322 = vector.load %arg9[%c0_67, %c2_68, %c0_69, %c0_70] : memref<1x3x8x128xf32, #tpu.memory_space<vmem>>, vector<1x1x8x128xf32>
    %323 = vector.shape_cast %322 : vector<1x1x8x128xf32> to vector<8x128xf32>
    %324 = vector.shape_cast %321 : vector<8x128xf32> to vector<1x1x8x128xf32>
    tpu.vector_store %arg9[%c0_67, %c2_68, %c0_69, %c0_70], %324 {strides = array<i32>} : memref<1x3x8x128xf32, #tpu.memory_space<vmem>>, vector<1x1x8x128xf32>,
    return
  }
  func.func @transform_0(%arg0: i32, %arg1: i32) -> (i32, i32, i32, i32) {
    %c0_i32 = arith.constant 0 : i32
    %c0_i32_0 = arith.constant 0 : i32
    %c0_i32_1 = arith.constant 0 : i32
    return %arg0, %c0_i32, %c0_i32_0, %arg1 : i32, i32, i32, i32
  }
  func.func @transform_1(%arg0: i32, %arg1: i32) -> (i32, i32, i32, i32) {
    %c0_i32 = arith.constant 0 : i32
    %c0_i32_0 = arith.constant 0 : i32
    %c0_i32_1 = arith.constant 0 : i32
    return %arg0, %c0_i32, %c0_i32_0, %arg1 : i32, i32, i32, i32
  }
  func.func @transform_2(%arg0: i32, %arg1: i32) -> (i32, i32, i32, i32) {
    %c0_i32 = arith.constant 0 : i32
    %c0_i32_0 = arith.constant 0 : i32
    %c0_i32_1 = arith.constant 0 : i32
    return %arg0, %c0_i32, %c0_i32_0, %arg1 : i32, i32, i32, i32
  }
  func.func @transform_3(%arg0: i32, %arg1: i32) -> (i32, i32) {
    %c0_i32 = arith.constant 0 : i32
    %c0_i32_0 = arith.constant 0 : i32
    %c0_i32_1 = arith.constant 0 : i32
    return %c0_i32, %c0_i32_0 : i32, i32
  }
  func.func @transform_4(%arg0: i32, %arg1: i32) -> (i32, i32) {
    %c0_i32 = arith.constant 0 : i32
    %c0_i32_0 = arith.constant 0 : i32
    %c0_i32_1 = arith.constant 0 : i32
    return %c0_i32, %c0_i32_0 : i32, i32
  }
  func.func @transform_5(%arg0: i32, %arg1: i32) -> (i32, i32) {
    %c0_i32 = arith.constant 0 : i32
    %c0_i32_0 = arith.constant 0 : i32
    %c0_i32_1 = arith.constant 0 : i32
    return %c0_i32, %c0_i32_0 : i32, i32
  }
  func.func @transform_6(%arg0: i32, %arg1: i32) -> (i32, i32, i32, i32) {
    %c0_i32 = arith.constant 0 : i32
    %c0_i32_0 = arith.constant 0 : i32
    %c0_i32_1 = arith.constant 0 : i32
    return %arg0, %c0_i32, %c0_i32_0, %arg1 : i32, i32, i32, i32
  }
  func.func @transform_7(%arg0: i32, %arg1: i32) -> (i32, i32, i32, i32) {
    %c0_i32 = arith.constant 0 : i32
    %c0_i32_0 = arith.constant 0 : i32
    %c0_i32_1 = arith.constant 0 : i32
    return %arg0, %c0_i32, %c0_i32_0, %arg1 : i32, i32, i32, i32
  }
}

</mosaic_0001>

<bundles_post_ra>
// kernel: bfm2mesh_forward.3
= control target key start
LH: loop header
LB: loop body
LE: loop exit
PB: predicated region body
PF: predicated region fallthrough
CT: control target
= control target key end

     0   :  { %13 = vsyncpa [#allocation3], 0  ;;  %s5443_s0 = inlined_call_operand.vmem [shape: bf16[8,144], index: 0, kind: input, shape index: {}]   ;;  %s5444_s1 = inlined_call_operand.vmem [shape: bf16[8,80], index: 1, kind: input, shape index: {}]   ;;  %s5445_s2 = inlined_call_operand.hbm [shape: bf16[144,3072], index: 2, kind: input, shape index: {}]   ;;  %s5446_s3 = inlined_call_operand.hbm [shape: bf16[80,3072], index: 3, kind: input, shape index: {}]   ;;  %s5447_s4 = inlined_call_operand.hbm [shape: f32[1,3072], index: 4, kind: input, shape index: {}]   ;;  %s5448_s5 = inlined_call_operand.hbm [shape: f32[1,3072], index: 5, kind: input, shape index: {}]   ;;  %s5449_s6 = inlined_call_operand.vmem [shape: f32[8,3072], index: 6, kind: output, shape index: {0}]   ;;  %s5450_s7 = inlined_call_operand.vmem [shape: f32[8,3072], index: 7, kind: output, shape index: {1}]  }
   0x1   :  { %14 = vsyncpa [#allocation5], 0 }
   0x2   :  { %15 = vsyncpa [#allocation8], 0  ;;  %s37_s26 = sshll.u32 %s5446_s3, 4  ;;  %s5057_s27 = smov [#allocation4]   ;;  %s38_s26 = int_to_ptr.hbm [resolvable:$true] %s37_s26 }
   0x3   :  { %s39_s28 = sshll.u32 %s5057_s27, 4  ;;  %s24_s8 = sshll.u32 %s5445_s2, 4  ;;  %s40_s28 = int_to_ptr.vmem [resolvable:$true] %s39_s28  ;;  %s25_s8 = int_to_ptr.hbm [resolvable:$true] %s24_s8 }
   0x4   :  { %s5058_s9 = smov 1536   ;;  %s5059_s10 = smov 96  }
   0x5   :  { %45 = dma.hbm_to_vmem [thread:$0]  %s38_s26, 15360, %s40_s28, [#allocation5], %s5058_s9, %s5058_s9, %s5059_s10  }
   0x6   :  { %s5060_s11 = smov [#allocation2]   ;;  %s51_s15 = sshll.u32 %s5447_s4, 4  ;;  %s52_s15 = int_to_ptr.hbm [resolvable:$true] %s51_s15 }
   0x7   :  { %s26_s12 = sshll.u32 %s5060_s11, 4  ;;  %s62_s17 = sshll.u32 %s5448_s5, 4  ;;  %s27_s12 = int_to_ptr.vmem [resolvable:$true] %s26_s12  ;;  %s63_s17 = int_to_ptr.hbm [resolvable:$true] %s62_s17 }
   0x8   :  { %32 = dma.hbm_to_vmem [thread:$0]  %s25_s8, 27648, %s27_s12, [#allocation3], %s5058_s9, %s5058_s9, %s5059_s10  }
   0x9   :  { %s5061_s18 = smov [#allocation6]   ;;  %s5062_s2 = smov [#allocation7]  }
   0xa   :  { %s53_s19 = sshll.u32 %s5061_s18, 4  ;;  %s64_s20 = sshll.u32 %s5062_s2, 4  ;;  %s54_s19 = int_to_ptr.vmem [resolvable:$true] %s53_s19  ;;  %s65_s20 = int_to_ptr.vmem [resolvable:$true] %s64_s20 }
   0xb   :  { %56 = dma.hbm_to_vmem [thread:$0]  %s52_s15, 384, %s54_s19, [#allocation5]  }
   0xc   :  { %67 = dma.hbm_to_vmem [thread:$0]  %s63_s17, 384, %s65_s20, [#allocation8]  }
   0xd   :  { %5051 = dma.done.wait [#allocation3], 27648  }
   0xe   :  { %5052 = vsyncadd [#allocation3], 4294939648 }
   0xf   :  { %5053 = dma.done.wait [#allocation5], 15744  }
  0x10   :  { %5054 = vsyncadd [#allocation5], 4294951552 }
  0x11   :  { %5055 = dma.done.wait [#allocation8], 384  }
  0x12   :  { %5056 = vsyncadd [#allocation8], 4294966912  ;;  %v3894_v0 = vld [vmem:[#allocation2 + $0x540] sm:$0xf]  ;;  %v4804_v5 = vld [vmem:[#allocation2 + $0x604] sm:$0xf] }
  0x13   :  { %v4792_v1 = vld [vmem:[#allocation2 + $0x59c] sm:$0xf0]  ;;  %v3992_v6 = vld [vmem:[#allocation2 + $0x660] sm:$0xf0]  ;;  %v3902_v9 = vld [vmem:[#allocation2 + $0x548] sm:$0xf] }
  0x14   :  { %v3990_v2 = vld [vmem:[#allocation2 + $0x600] sm:$0xf]  ;;  %v3895_v3 = vor.u32 %v4792_v1, %v3894_v0  ;;  %v3995_v8 = vor.u32 %v4804_v5, %v3992_v6  ;;  %v4793_v10 = vld [vmem:[#allocation2 + $0x5a4] sm:$0xf0]  ;;  %v4780_v11 = vld [vmem:[#allocation2 + $0x544] sm:$0xf] }
  0x15   :  { %v4816_v4 = vld [vmem:[#allocation2 + $0x65c] sm:$0xf0]  ;;  %v3903_v12 = vor.u32 %v4793_v10, %v3902_v9  ;;  %v3896_v13 = vld [vmem:[#allocation2 + $0x5a0] sm:$0xf0]  ;;  %v3998_v14 = vld [vmem:[#allocation2 + $0x608] sm:$0xf] }
  0x16   :  { %v3991_v7 = vor.u32 %v4816_v4, %v3990_v2  ;;  %1446 = vmatpush.bf16.msra.mxu0 %v3895_v3  ;;  %v4817_v15 = vld [vmem:[#allocation2 + $0x664] sm:$0xf0]  ;;  %1492 = vmatpush.bf16.msra.mxu3 %v3995_v8  ;;  %v3899_v16 = vor.u32 %v4780_v11, %v3896_v13  ;;  %v3798_v18 = vld [vmem:[#allocation2 + $0x480] sm:$0xf]  ;;  %vm1442_vm0 = vcmask 130048   ;;  %vm2869_vm1 = vcmask 654336  }
  0x17   :  { %v3999_v17 = vor.u32 %v4817_v15, %v3998_v14  ;;  %v4768_v19 = vld [vmem:[#allocation2 + $0x4dc] sm:$0xf0]  ;;  %1498 = vmatpush.bf16.msra.mxu1 %v3903_v12  ;;  %v3806_v23 = vld [vmem:[#allocation2 + $0x488] sm:$0xf]  ;;  %v4781_v25 = vld [vmem:[#allocation2 + $0x54c] sm:$0xf] }
  0x18   :  { %1466 = vmatpush.bf16.msra.mxu2 %v3991_v7  ;;  %v5118_v20 = vld [vmem:[%s5443_s0] sm:$0xff]  ;;  %v3799_v21 = vor.u32 %v4768_v19, %v3798_v18  ;;  %v4769_v24 = vld [vmem:[#allocation2 + $0x4e4] sm:$0xf0]  ;;  %v3904_v27 = vld [vmem:[#allocation2 + $0x5a8] sm:$0xf0] }
  0x19   :  { %v358_v22 = vunpack.c.h.b16 %v5118_v20  ;;  %v3807_v26 = vor.u32 %v4769_v24, %v3806_v23  ;;  %v4756_v28 = vld [vmem:[#allocation2 + $0x484] sm:$0xf]  ;;  %v3907_v31 = vor.u32 %v4781_v25, %v3904_v27  ;;  %v3702_v33 = vld [vmem:[#allocation2 + $0x3c0] sm:$0xf]  ;;  %v3710_v35 = vld [vmem:[#allocation2 + $0x3c8] sm:$0xf] }
  0x1a   :  { %1518 = vmatpush.bf16.msrb.mxu3 %v3999_v17  ;;  %v3800_v29 = vld [vmem:[#allocation2 + $0x4e0] sm:$0xf0]  ;;  %1447 = vmatpush.bf16.msra.mxu0 %v3799_v21  ;;  %v4744_v34 = vld [vmem:[#allocation2 + $0x41c] sm:$0xf0]  ;;  %v4745_v37 = vld [vmem:[#allocation2 + $0x424] sm:$0xf0] }
  0x1b   :  { %v5121_v30 = vpack.c.b16 %v358_v22, %v358_v22  ;;  %v3803_v32 = vor.u32 %v4756_v28, %v3800_v29  ;;  %v3703_v36 = vor.u32 %v4744_v34, %v3702_v33  ;;  %v4757_v38 = vld [vmem:[#allocation2 + $0x48c] sm:$0xf]  ;;  %1499 = vmatpush.bf16.msra.mxu1 %v3807_v26  ;;  %v3711_v40 = vor.u32 %v4745_v37, %v3710_v35  ;;  %v4732_v41 = vld [vmem:[#allocation2 + $0x3c4] sm:$0xf]  ;;  %v3606_v43 = vld [vmem:[#allocation2 + $0x300] sm:$0xf] }
  0x1c   :  { %1472 = vmatpush.bf16.msrb.mxu2 %v3899_v16  ;;  %v3808_v39 = vld [vmem:[#allocation2 + $0x4e8] sm:$0xf0]  ;;  %v3704_v42 = vld [vmem:[#allocation2 + $0x420] sm:$0xf0]  ;;  %v4720_v46 = vld [vmem:[#allocation2 + $0x35c] sm:$0xf0] }
  0x1d   :  { %4085 = vmatmul.msk.bf16.vlgmr.msra.gmra.mxu3 %vm1442_vm0, %v5121_v30  ;;  %v3811_v44 = vor.u32 %v4757_v38, %v3808_v39  ;;  %v3707_v45 = vor.u32 %v4732_v41, %v3704_v42  ;;  %v3614_v47 = vld [vmem:[#allocation2 + $0x308] sm:$0xf]  ;;  %v3607_v49 = vor.u32 %v4720_v46, %v3606_v43  ;;  %v4733_v50 = vld [vmem:[#allocation2 + $0x3cc] sm:$0xf]  ;;  %v4708_v52 = vld [vmem:[#allocation2 + $0x304] sm:$0xf]  ;;  %4084 = vmatmul.msk.bf16.vlgmr.msra.gmra.mxu2 %vm1442_vm0, %v5121_v30  ;;  %v357_v42 = vunpack.c.l.b16 %v5118_v20 }
  0x1e   :  { %1524 = vmatpush.bf16.msra.mxu3 %v3907_v31  ;;  %v4721_v48 = vld [vmem:[#allocation2 + $0x364] sm:$0xf0]  ;;  %1448 = vmatpush.bf16.msra.mxu0 %v3703_v36  ;;  %v3712_v51 = vld [vmem:[#allocation2 + $0x428] sm:$0xf0]  ;;  %v3608_v53 = vld [vmem:[#allocation2 + $0x360] sm:$0xf0] }
  0x1f   :  { %v3510_v54 = vld [vmem:[#allocation2 + $0x240] sm:$0xf]  ;;  %1500 = vmatpush.bf16.msra.mxu1 %v3711_v40  ;;  %v3615_v56 = vor.u32 %v4721_v48, %v3614_v47  ;;  %v3715_v57 = vor.u32 %v4733_v50, %v3712_v51  ;;  %v3611_v58 = vor.u32 %v4708_v52, %v3608_v53  ;;  %v3518_v59 = vld [vmem:[#allocation2 + $0x248] sm:$0xf]  ;;  %v4709_v61 = vld [vmem:[#allocation2 + $0x30c] sm:$0xf] }
  0x20   :  { %1473 = vmatpush.bf16.msrb.mxu2 %v3803_v32  ;;  %v4696_v55 = vld [vmem:[#allocation2 + $0x29c] sm:$0xf0]  ;;  %v4697_v60 = vld [vmem:[#allocation2 + $0x2a4] sm:$0xf0]  ;;  %v3616_v63 = vld [vmem:[#allocation2 + $0x368] sm:$0xf0] }
  0x21   :  { %v3511_v62 = vor.u32 %v4696_v55, %v3510_v54  ;;  %v4684_v0 = vld [vmem:[#allocation2 + $0x244] sm:$0xf]  ;;  %v3414_v2 = vld [vmem:[#allocation2 + $0x180] sm:$0xf]  ;;  %v3519_v4 = vor.u32 %v4697_v60, %v3518_v59  ;;  %v3619_v5 = vor.u32 %v4709_v61, %v3616_v63  ;;  %v3422_v7 = vld [vmem:[#allocation2 + $0x188] sm:$0xf]  ;;  %v5130_v54 = vpack.c.b16 %v357_v42, %v357_v42 }
  0x22   :  { %1525 = vmatpush.bf16.msra.mxu3 %v3811_v44  ;;  %1449 = vmatpush.bf16.msra.mxu0 %v3607_v49  ;;  %v3512_v1 = vld [vmem:[#allocation2 + $0x2a0] sm:$0xf0]  ;;  %v4672_v3 = vld [vmem:[#allocation2 + $0x1dc] sm:$0xf0]  ;;  %v4673_v8 = vld [vmem:[#allocation2 + $0x1e4] sm:$0xf0] }
  0x23   :  { %1501 = vmatpush.bf16.msra.mxu1 %v3615_v56  ;;  %v3515_v6 = vor.u32 %v4684_v0, %v3512_v1  ;;  %v4685_v9 = vld [vmem:[#allocation2 + $0x24c] sm:$0xf]  ;;  %v3415_v10 = vor.u32 %v4672_v3, %v3414_v2  ;;  %v4660_v12 = vld [vmem:[#allocation2 + $0x184] sm:$0xf]  ;;  %v3318_v14 = vld [vmem:[#allocation2 + $0xc0] sm:$0xf]  ;;  %v3423_v16 = vor.u32 %v4673_v8, %v3422_v7 }
  0x24   :  { %1474 = vmatpush.bf16.msrb.mxu2 %v3707_v45  ;;  %v3520_v11 = vld [vmem:[#allocation2 + $0x2a8] sm:$0xf0]  ;;  %v3416_v13 = vld [vmem:[#allocation2 + $0x1e0] sm:$0xf0]  ;;  %v4648_v15 = vld [vmem:[#allocation2 + $0x11c] sm:$0xf0] }
  0x25   :  { %v3523_v17 = vor.u32 %v4685_v9, %v3520_v11  ;;  %v3419_v18 = vor.u32 %v4660_v12, %v3416_v13  ;;  %v3326_v19 = vld [vmem:[#allocation2 + $0xc8] sm:$0xf]  ;;  %v4661_v22 = vld [vmem:[#allocation2 + $0x18c] sm:$0xf]  ;;  %v3319_v23 = vor.u32 %v4648_v15, %v3318_v14  ;;  %v4636_v25 = vld [vmem:[#allocation2 + $0xc4] sm:$0xf] }
  0x26   :  { %1526 = vmatpush.bf16.msra.mxu3 %v3715_v57  ;;  %1450 = vmatpush.bf16.msra.mxu0 %v3511_v62  ;;  %v4649_v21 = vld [vmem:[#allocation2 + $0x124] sm:$0xf0]  ;;  %v3424_v24 = vld [vmem:[#allocation2 + $0x1e8] sm:$0xf0]  ;;  %v3320_v26 = vld [vmem:[#allocation2 + $0x120] sm:$0xf0] }
  0x27   :  { %1502 = vmatpush.bf16.msra.mxu1 %v3519_v4  ;;  %v3222_v27 = vld [vmem:[#allocation2] sm:$0xf]  ;;  %v3327_v29 = vor.u32 %v4649_v21, %v3326_v19  ;;  %v4805_v31 = vld [vmem:[#allocation2 + $0x60c] sm:$0xf]  ;;  %v3427_v33 = vor.u32 %v4661_v22, %v3424_v24  ;;  %v3323_v34 = vor.u32 %v4636_v25, %v3320_v26  ;;  %v3230_v35 = vld [vmem:[#allocation2 + $0x8] sm:$0xf] }
  0x28   :  { %1475 = vmatpush.bf16.msrb.mxu2 %v3611_v58  ;;  %v4624_v28 = vld [vmem:[#allocation2 + $0x5c] sm:$0xf0]  ;;  %v4000_v32 = vld [vmem:[#allocation2 + $0x668] sm:$0xf0]  ;;  %v4625_v36 = vld [vmem:[#allocation2 + $0x64] sm:$0xf0] }
  0x29   :  { %v4637_v37 = vld [vmem:[#allocation2 + $0xcc] sm:$0xf]  ;;  %v3223_v38 = vor.u32 %v4624_v28, %v3222_v27  ;;  %v4612_v40 = vld [vmem:[#allocation2 + $0x4] sm:$0xf]  ;;  %v3910_v43 = vld [vmem:[#allocation2 + $0x550] sm:$0xf]  ;;  %v4003_v45 = vor.u32 %v4805_v31, %v4000_v32  ;;  %v3231_v46 = vor.u32 %v4625_v36, %v3230_v35 }
  0x2a   :  { %1527 = vmatpush.bf16.msra.mxu3 %v3619_v5  ;;  %1451 = vmatpush.bf16.msra.mxu0 %v3415_v10  ;;  %v3328_v39 = vld [vmem:[#allocation2 + $0x128] sm:$0xf0]  ;;  %v3224_v41 = vld [vmem:[#allocation2 + $0x60] sm:$0xf0]  ;;  %v4794_v44 = vld [vmem:[#allocation2 + $0x5ac] sm:$0xf0] }
  0x2b   :  { %1503 = vmatpush.bf16.msra.mxu1 %v3423_v16  ;;  %v4782_v47 = vld [vmem:[#allocation2 + $0x554] sm:$0xf]  ;;  %v3331_v49 = vor.u32 %v4637_v37, %v3328_v39  ;;  %v3227_v50 = vor.u32 %v4612_v40, %v3224_v41  ;;  %v4006_v51 = vld [vmem:[#allocation2 + $0x610] sm:$0xf]  ;;  %v3911_v53 = vor.u32 %v4794_v44, %v3910_v43  ;;  %v4613_v55 = vld [vmem:[#allocation2 + $0xc] sm:$0xf] }
  0x2c   :  { %1476 = vmatpush.bf16.msrb.mxu2 %v3515_v6  ;;  %v3912_v48 = vld [vmem:[#allocation2 + $0x5b0] sm:$0xf0]  ;;  %v4818_v52 = vld [vmem:[#allocation2 + $0x66c] sm:$0xf0]  ;;  %v3232_v56 = vld [vmem:[#allocation2 + $0x68] sm:$0xf0] }
  0x2d   :  { %4086 = vmatmul.msk.bf16.vlgmr.msrb.gmra.mxu3 %vm1442_vm0, %v5121_v30  ;;  %v3918_v20 = vld [vmem:[#allocation2 + $0x558] sm:$0xf]  ;;  %v3915_v57 = vor.u32 %v4782_v47, %v3912_v48  ;;  %v3814_v59 = vld [vmem:[#allocation2 + $0x490] sm:$0xf]  ;;  %v4007_v61 = vor.u32 %v4818_v52, %v4006_v51  ;;  %v4758_v62 = vld [vmem:[#allocation2 + $0x494] sm:$0xf]  ;;  %v3235_v1 = vor.u32 %v4613_v55, %v3232_v56 }
  0x2e   :  { %1528 = vmatpush.bf16.msra.mxu3 %v3523_v17  ;;  %1452 = vmatpush.bf16.msra.mxu0 %v3319_v23  ;;  %v4795_v58 = vld [vmem:[#allocation2 + $0x5b4] sm:$0xf0]  ;;  %v4770_v60 = vld [vmem:[#allocation2 + $0x4ec] sm:$0xf0]  ;;  %v3816_v63 = vld [vmem:[#allocation2 + $0x4f0] sm:$0xf0] }
  0x2f   :  { %1504 = vmatpush.bf16.msra.mxu1 %v3327_v29  ;;  %v4806_v0 = vld [vmem:[#allocation2 + $0x614] sm:$0xf]  ;;  %v3919_v3 = vor.u32 %v4795_v58, %v3918_v20  ;;  %v3815_v4 = vor.u32 %v4770_v60, %v3814_v59  ;;  %v3822_v5 = vld [vmem:[#allocation2 + $0x498] sm:$0xf]  ;;  %v3819_v7 = vor.u32 %v4758_v62, %v3816_v63  ;;  %v3718_v9 = vld [vmem:[#allocation2 + $0x3d0] sm:$0xf] }
  0x30   :  { %1477 = vmatpush.bf16.msrb.mxu2 %v3419_v18  ;;  %v4008_v2 = vld [vmem:[#allocation2 + $0x670] sm:$0xf0]  ;;  %v4771_v8 = vld [vmem:[#allocation2 + $0x4f4] sm:$0xf0]  ;;  %v4746_v10 = vld [vmem:[#allocation2 + $0x42c] sm:$0xf0] }
  0x31   :  { %v4011_v6 = vor.u32 %v4806_v0, %v4008_v2  ;;  %v4734_v11 = vld [vmem:[#allocation2 + $0x3d4] sm:$0xf]  ;;  %v3823_v13 = vor.u32 %v4771_v8, %v3822_v5  ;;  %v3719_v14 = vor.u32 %v4746_v10, %v3718_v9  ;;  %v3726_v15 = vld [vmem:[#allocation2 + $0x3d8] sm:$0xf]  ;;  %v3622_v18 = vld [vmem:[#allocation2 + $0x310] sm:$0xf] }
  0x32   :  { %1529 = vmatpush.bf16.msra.mxu3 %v3427_v33  ;;  %1453 = vmatpush.bf16.msra.mxu0 %v3223_v38  ;;  %v3720_v12 = vld [vmem:[#allocation2 + $0x430] sm:$0xf0]  ;;  %v4747_v17 = vld [vmem:[#allocation2 + $0x434] sm:$0xf0]  ;;  %v4722_v19 = vld [vmem:[#allocation2 + $0x36c] sm:$0xf0] }
  0x33   :  { %1505 = vmatpush.bf16.msra.mxu1 %v3231_v46  ;;  %v3723_v16 = vor.u32 %v4734_v11, %v3720_v12  ;;  %v4710_v21 = vld [vmem:[#allocation2 + $0x314] sm:$0xf]  ;;  %v3727_v23 = vor.u32 %v4747_v17, %v3726_v15  ;;  %v3623_v24 = vor.u32 %v4722_v19, %v3622_v18  ;;  %v3630_v25 = vld [vmem:[#allocation2 + $0x318] sm:$0xf]  ;;  %v3526_v28 = vld [vmem:[#allocation2 + $0x250] sm:$0xf] }
  0x34   :  { %1478 = vmatpush.bf16.msrb.mxu2 %v3323_v34  ;;  %v3624_v22 = vld [vmem:[#allocation2 + $0x370] sm:$0xf0]  ;;  %v4723_v27 = vld [vmem:[#allocation2 + $0x374] sm:$0xf0]  ;;  %v4698_v29 = vld [vmem:[#allocation2 + $0x2ac] sm:$0xf0] }
  0x35   :  { %1454 = vmatmul.bf16.vlgmr.msra.gmra.mxu0 %v5130_v54  ;;  %v3627_v26 = vor.u32 %v4710_v21, %v3624_v22  ;;  %v4783_v31 = vld [vmem:[#allocation2 + $0x55c] sm:$0xf]  ;;  %v4686_v33 = vld [vmem:[#allocation2 + $0x254] sm:$0xf]  ;;  %v3631_v35 = vor.u32 %v4723_v27, %v3630_v25  ;;  %v3527_v36 = vor.u32 %v4698_v29, %v3526_v28  ;;  %v3534_v37 = vld [vmem:[#allocation2 + $0x258] sm:$0xf] }
  0x36   :  { %1544 = vmatpush.bf16.msrb.mxu0 %v4003_v45  ;;  %1530 = vmatpush.bf16.msra.mxu3 %v3331_v49  ;;  %v3920_v32 = vld [vmem:[#allocation2 + $0x5b8] sm:$0xf0]  ;;  %v3528_v34 = vld [vmem:[#allocation2 + $0x2b0] sm:$0xf0]  ;;  %v4699_v38 = vld [vmem:[#allocation2 + $0x2b4] sm:$0xf0] }
  0x37   :  { %1506 = vmatmul.bf16.vlgmr.msra.gmra.mxu1 %v5130_v54  ;;  %v3430_v39 = vld [vmem:[#allocation2 + $0x190] sm:$0xf]  ;;  %v3923_v41 = vor.u32 %v4783_v31, %v3920_v32  ;;  %v3531_v42 = vor.u32 %v4686_v33, %v3528_v34  ;;  %v4759_v43 = vld [vmem:[#allocation2 + $0x49c] sm:$0xf]  ;;  %v4662_v45 = vld [vmem:[#allocation2 + $0x194] sm:$0xf]  ;;  %v3535_v47 = vor.u32 %v4699_v38, %v3534_v37 }
  0x38   :  { %1479 = vmatpush.bf16.msrb.mxu2 %v3227_v50  ;;  %1570 = vmatpush.bf16.msrb.mxu1 %v4007_v61  ;;  %v4674_v40 = vld [vmem:[#allocation2 + $0x1ec] sm:$0xf0]  ;;  %v3824_v44 = vld [vmem:[#allocation2 + $0x4f8] sm:$0xf0]  ;;  %v3432_v46 = vld [vmem:[#allocation2 + $0x1f0] sm:$0xf0] }
  0x39   :  { %v3431_v48 = vor.u32 %v4674_v40, %v3430_v39  ;;  %v3438_v49 = vld [vmem:[#allocation2 + $0x198] sm:$0xf]  ;;  %v3334_v51 = vld [vmem:[#allocation2 + $0xd0] sm:$0xf]  ;;  %v3435_v55 = vor.u32 %v4662_v45, %v3432_v46  ;;  %v4735_v56 = vld [vmem:[#allocation2 + $0x3dc] sm:$0xf] }
  0x3a   :  { %1576 = vmatpush.bf16.msra.mxu0 %v3915_v57  ;;  %1531 = vmatpush.bf16.msra.mxu3 %v3235_v1  ;;  %v4675_v50 = vld [vmem:[#allocation2 + $0x1f4] sm:$0xf0]  ;;  %v4650_v52 = vld [vmem:[#allocation2 + $0x12c] sm:$0xf0]  ;;  %v3728_v20 = vld [vmem:[#allocation2 + $0x438] sm:$0xf0] }
  0x3b   :  { %1480 = vmatmul.bf16.vlgmr.msrb.gmra.mxu2 %v5130_v54  ;;  %v4638_v57 = vld [vmem:[#allocation2 + $0xd4] sm:$0xf]  ;;  %v3439_v59 = vor.u32 %v4675_v50, %v3438_v49  ;;  %v3335_v60 = vor.u32 %v4650_v52, %v3334_v51  ;;  %v3342_v61 = vld [vmem:[#allocation2 + $0xd8] sm:$0xf]  ;;  %v3238_v63 = vld [vmem:[#allocation2 + $0x10] sm:$0xf]  ;;  %v3731_v1 = vor.u32 %v4735_v56, %v3728_v20 }
  0x3c   :  { %1550 = vmatpush.bf16.msra.mxu2 %v3911_v53  ;;  %1596 = vmatpush.bf16.msra.mxu1 %v4011_v6  ;;  %v3827_v53 = vor.u32 %v4759_v43, %v3824_v44  ;;  %v3336_v58 = vld [vmem:[#allocation2 + $0x130] sm:$0xf0]  ;;  %v4651_v62 = vld [vmem:[#allocation2 + $0x134] sm:$0xf0]  ;;  %v4626_v0 = vld [vmem:[#allocation2 + $0x6c] sm:$0xf0] }
  0x3d   :  { %1532 = vmatmul.bf16.vlgmr.msra.gmra.mxu3 %v5130_v54  ;;  %v3339_v2 = vor.u32 %v4638_v57, %v3336_v58  ;;  %v4819_v5 = vld [vmem:[#allocation2 + $0x674] sm:$0xf0]  ;;  %v3632_v6 = vld [vmem:[#allocation2 + $0x378] sm:$0xf0]  ;;  %v3240_v8 = vld [vmem:[#allocation2 + $0x70] sm:$0xf0]  ;;  %v3343_v9 = vor.u32 %v4651_v62, %v3342_v61  ;;  %v3239_v10 = vor.u32 %v4626_v0, %v3238_v63 }
  0x3e   :  { %1602 = vmatpush.bf16.msrb.mxu3 %v3919_v3  ;;  %1577 = vmatpush.bf16.msra.mxu0 %v3819_v7  ;;  %v4711_v3 = vld [vmem:[#allocation2 + $0x31c] sm:$0xf]  ;;  %v4614_v7 = vld [vmem:[#allocation2 + $0x14] sm:$0xf]  ;;  %v3246_v11 = vld [vmem:[#allocation2 + $0x18] sm:$0xf] }
  0x3f   :  { %v4807_v12 = vld [vmem:[#allocation2 + $0x61c] sm:$0xf]  ;;  %v4796_v17 = vld [vmem:[#allocation2 + $0x5bc] sm:$0xf0]  ;;  %v3635_v18 = vor.u32 %v4711_v3, %v3632_v6  ;;  %v3243_v19 = vor.u32 %v4614_v7, %v3240_v8  ;;  %v4784_v28 = vld [vmem:[#allocation2 + $0x564] sm:$0xf] }
  0x40   :  { %1551 = vmatpush.bf16.msra.mxu2 %v3815_v4  ;;  %v4014_v4 = vld [vmem:[#allocation2 + $0x618] sm:$0xf]  ;;  %v4687_v21 = vld [vmem:[#allocation2 + $0x25c] sm:$0xf]  ;;  %v4820_v25 = vld [vmem:[#allocation2 + $0x67c] sm:$0xf0] }
  0x41   :  { %v4015_v15 = vor.u32 %v4819_v5, %v4014_v4  ;;  %v3536_v22 = vld [vmem:[#allocation2 + $0x2b8] sm:$0xf0]  ;;  %v3928_v29 = vld [vmem:[#allocation2 + $0x5c0] sm:$0xf0]  ;;  %v3934_v31 = vld [vmem:[#allocation2 + $0x568] sm:$0xf] }
  0x42   :  { %1603 = vmatpush.bf16.msrb.mxu3 %v3823_v13  ;;  %1578 = vmatpush.bf16.msra.mxu0 %v3723_v16  ;;  %v4016_v13 = vld [vmem:[#allocation2 + $0x678] sm:$0xf0]  ;;  %v3926_v16 = vld [vmem:[#allocation2 + $0x560] sm:$0xf]  ;;  %v4797_v32 = vld [vmem:[#allocation2 + $0x5c4] sm:$0xf0]  ;;  %v3931_v37 = vor.u32 %v4784_v28, %v3928_v29 }
  0x43   :  { %v3927_v27 = vor.u32 %v4796_v17, %v3926_v16  ;;  %v3830_v33 = vld [vmem:[#allocation2 + $0x4a0] sm:$0xf]  ;;  %v4663_v38 = vld [vmem:[#allocation2 + $0x19c] sm:$0xf]  ;;  %v3935_v40 = vor.u32 %v4797_v32, %v3934_v31  ;;  %v3832_v43 = vld [vmem:[#allocation2 + $0x500] sm:$0xf0] }
  0x44   :  { %1552 = vmatpush.bf16.msra.mxu2 %v3719_v14  ;;  %v4627_v14 = vld [vmem:[#allocation2 + $0x74] sm:$0xf0]  ;;  %v4772_v34 = vld [vmem:[#allocation2 + $0x4fc] sm:$0xf0]  ;;  %v3440_v39 = vld [vmem:[#allocation2 + $0x1f8] sm:$0xf0] }
  0x45   :  { %4087 = vmatmul.msk.bf16.vlgmr.msrb.gmra.mxu0 %vm1442_vm0, %v5121_v30  ;;  %v3838_v44 = vld [vmem:[#allocation2 + $0x4a8] sm:$0xf]  ;;  %v3734_v46 = vld [vmem:[#allocation2 + $0x3e0] sm:$0xf]  ;;  %v4639_v50 = vld [vmem:[#allocation2 + $0xdc] sm:$0xf] }
  0x46   :  { %1604 = vmatpush.bf16.msrb.mxu3 %v3727_v23  ;;  %1579 = vmatpush.bf16.msra.mxu0 %v3627_v26  ;;  %v4019_v23 = vor.u32 %v4807_v12, %v4016_v13  ;;  %v3247_v26 = vor.u32 %v4627_v14, %v3246_v11  ;;  %v4773_v45 = vld [vmem:[#allocation2 + $0x504] sm:$0xf0]  ;;  %v3344_v51 = vld [vmem:[#allocation2 + $0x138] sm:$0xf0]  ;;  %v3736_v56 = vld [vmem:[#allocation2 + $0x440] sm:$0xf0] }
  0x47   :  { %4088 = vmatmul.msk.bf16.vlgmr.msrb.gmra.mxu1 %vm1442_vm0, %v5121_v30  ;;  %v3839_v52 = vor.u32 %v4773_v45, %v3838_v44  ;;  %v3742_v20 = vld [vmem:[#allocation2 + $0x3e8] sm:$0xf]  ;;  %v3638_v58 = vld [vmem:[#allocation2 + $0x320] sm:$0xf]  ;;  %v4615_v62 = vld [vmem:[#allocation2 + $0x1c] sm:$0xf] }
  0x48   :  { %1553 = vmatpush.bf16.msra.mxu2 %v3623_v24  ;;  %1628 = vmatpush.bf16.msrb.mxu1 %v3923_v41  ;;  %v4022_v24 = vld [vmem:[#allocation2 + $0x620] sm:$0xf]  ;;  %v3831_v41 = vor.u32 %v4772_v34, %v3830_v33  ;;  %v4749_v57 = vld [vmem:[#allocation2 + $0x444] sm:$0xf0]  ;;  %v3248_v63 = vld [vmem:[#allocation2 + $0x78] sm:$0xf0] }
  0x49   :  { %v3743_v0 = vor.u32 %v4749_v57, %v3742_v20  ;;  %v3640_v3 = vld [vmem:[#allocation2 + $0x380] sm:$0xf0]  ;;  %v3646_v4 = vld [vmem:[#allocation2 + $0x328] sm:$0xf]  ;;  %v3542_v6 = vld [vmem:[#allocation2 + $0x260] sm:$0xf]  ;;  %v3251_v8 = vor.u32 %v4615_v62, %v3248_v63 }
  0x4a   :  { %1605 = vmatpush.bf16.msrb.mxu3 %v3631_v35  ;;  %1580 = vmatpush.bf16.msra.mxu0 %v3531_v42  ;;  %v3539_v35 = vor.u32 %v4687_v21, %v3536_v22  ;;  %v4760_v42 = vld [vmem:[#allocation2 + $0x4a4] sm:$0xf]  ;;  %v4725_v5 = vld [vmem:[#allocation2 + $0x384] sm:$0xf0]  ;;  %v4700_v7 = vld [vmem:[#allocation2 + $0x2bc] sm:$0xf0] }
  0x4b   :  { %v3835_v49 = vor.u32 %v4760_v42, %v3832_v43  ;;  %v4785_v12 = vld [vmem:[#allocation2 + $0x56c] sm:$0xf]  ;;  %v3647_v13 = vor.u32 %v4725_v5, %v3646_v4  ;;  %v3543_v14 = vor.u32 %v4700_v7, %v3542_v6  ;;  %v4688_v16 = vld [vmem:[#allocation2 + $0x264] sm:$0xf]  ;;  %v4676_v21 = vld [vmem:[#allocation2 + $0x1fc] sm:$0xf0] }
  0x4c   :  { %1554 = vmatpush.bf16.msra.mxu2 %v3527_v36  ;;  %1629 = vmatpush.bf16.msrb.mxu1 %v3827_v53  ;;  %v4023_v36 = vor.u32 %v4820_v25, %v4022_v24  ;;  %v3544_v17 = vld [vmem:[#allocation2 + $0x2c0] sm:$0xf0]  ;;  %v3550_v22 = vld [vmem:[#allocation2 + $0x268] sm:$0xf]  ;;  %v3840_v28 = vld [vmem:[#allocation2 + $0x508] sm:$0xf0] }
  0x4d   :  { %v3547_v25 = vor.u32 %v4688_v16, %v3544_v17  ;;  %v4664_v29 = vld [vmem:[#allocation2 + $0x1a4] sm:$0xf]  ;;  %v3350_v33 = vld [vmem:[#allocation2 + $0xe0] sm:$0xf]  ;;  %v3358_v45 = vld [vmem:[#allocation2 + $0xe8] sm:$0xf] }
  0x4e   :  { %1606 = vmatpush.bf16.msrb.mxu3 %v3535_v47  ;;  %1581 = vmatpush.bf16.msra.mxu0 %v3435_v55  ;;  %v4748_v47 = vld [vmem:[#allocation2 + $0x43c] sm:$0xf0]  ;;  %v4736_v55 = vld [vmem:[#allocation2 + $0x3e4] sm:$0xf]  ;;  %v4032_v62 = vld [vmem:[#allocation2 + $0x688] sm:$0xf0] }
  0x4f   :  { %v3735_v53 = vor.u32 %v4748_v47, %v3734_v46  ;;  %v3739_v61 = vor.u32 %v4736_v55, %v3736_v56  ;;  %v3448_v31 = vld [vmem:[#allocation2 + $0x200] sm:$0xf0]  ;;  %v4652_v34 = vld [vmem:[#allocation2 + $0x13c] sm:$0xf0]  ;;  %v3648_v56 = vld [vmem:[#allocation2 + $0x388] sm:$0xf0] }
  0x50   :  { %1555 = vmatpush.bf16.msra.mxu2 %v3431_v48  ;;  %1630 = vmatpush.bf16.msrb.mxu1 %v3731_v1  ;;  %v3443_v48 = vor.u32 %v4663_v38, %v3440_v39  ;;  %v3451_v38 = vor.u32 %v4664_v29, %v3448_v31  ;;  %v4737_v39 = vld [vmem:[#allocation2 + $0x3ec] sm:$0xf]  ;;  %v4640_v42 = vld [vmem:[#allocation2 + $0xe4] sm:$0xf]  ;;  %v3254_v46 = vld [vmem:[#allocation2 + $0x20] sm:$0xf] }
  0x51   :  { %v3352_v43 = vld [vmem:[#allocation2 + $0x140] sm:$0xf0]  ;;  %v4628_v47 = vld [vmem:[#allocation2 + $0x7c] sm:$0xf0]  ;;  %v4629_v63 = vld [vmem:[#allocation2 + $0x84] sm:$0xf0] }
  0x52   :  { %1607 = vmatpush.bf16.msrb.mxu3 %v3439_v59  ;;  %1582 = vmatpush.bf16.msra.mxu0 %v3339_v2  ;;  %v4724_v59 = vld [vmem:[#allocation2 + $0x37c] sm:$0xf0]  ;;  %v4712_v2 = vld [vmem:[#allocation2 + $0x324] sm:$0xf]  ;;  %v3255_v55 = vor.u32 %v4628_v47, %v3254_v46  ;;  %v4689_v4 = vld [vmem:[#allocation2 + $0x26c] sm:$0xf] }
  0x53   :  { %v3639_v1 = vor.u32 %v4724_v59, %v3638_v58  ;;  %v3643_v11 = vor.u32 %v4712_v2, %v3640_v3  ;;  %v4616_v20 = vld [vmem:[#allocation2 + $0x24] sm:$0xf]  ;;  %v3262_v59 = vld [vmem:[#allocation2 + $0x28] sm:$0xf]  ;;  %v3552_v5 = vld [vmem:[#allocation2 + $0x2c8] sm:$0xf0] }
  0x54   :  { %1556 = vmatpush.bf16.msra.mxu2 %v3335_v60  ;;  %1631 = vmatpush.bf16.msrb.mxu1 %v3635_v18  ;;  %v3347_v60 = vor.u32 %v4639_v50, %v3344_v51  ;;  %v4821_v50 = vld [vmem:[#allocation2 + $0x684] sm:$0xf0]  ;;  %v3256_v57 = vld [vmem:[#allocation2 + $0x80] sm:$0xf0]  ;;  %v4038_v7 = vld [vmem:[#allocation2 + $0x630] sm:$0xf]  ;;  %v3555_v17 = vor.u32 %v4689_v4, %v3552_v5 }
  0x55   :  { %v3259_v3 = vor.u32 %v4616_v20, %v3256_v57  ;;  %v4774_v16 = vld [vmem:[#allocation2 + $0x50c] sm:$0xf0]  ;;  %v4617_v46 = vld [vmem:[#allocation2 + $0x2c] sm:$0xf]  ;;  %v4810_v57 = vld [vmem:[#allocation2 + $0x634] sm:$0xf] }
  0x56   :  { %1608 = vmatpush.bf16.msrb.mxu3 %v3343_v9  ;;  %1583 = vmatpush.bf16.msra.mxu0 %v3243_v19  ;;  %v4808_v9 = vld [vmem:[#allocation2 + $0x624] sm:$0xf]  ;;  %v3446_v19 = vld [vmem:[#allocation2 + $0x1a0] sm:$0xf]  ;;  %v3750_v29 = vld [vmem:[#allocation2 + $0x3f0] sm:$0xf] }
  0x57   :  { %4089 = vmatmul.msk.bf16.vlgmr.msra.gmra.mxu1 %vm1442_vm0, %v5121_v30  ;;  %v4750_v31 = vld [vmem:[#allocation2 + $0x44c] sm:$0xf0]  ;;  %v3264_v47 = vld [vmem:[#allocation2 + $0x88] sm:$0xf0]  ;;  %v3566_v5 = vld [vmem:[#allocation2 + $0x278] sm:$0xf] }
  0x58   :  { %1557 = vmatpush.bf16.msra.mxu2 %v3239_v10  ;;  %1632 = vmatpush.bf16.msrb.mxu1 %v3539_v35  ;;  %v4024_v10 = vld [vmem:[#allocation2 + $0x680] sm:$0xf0]  ;;  %v3454_v35 = vld [vmem:[#allocation2 + $0x1a8] sm:$0xf]  ;;  %v3267_v20 = vor.u32 %v4617_v46, %v3264_v47  ;;  %v4678_v4 = vld [vmem:[#allocation2 + $0x20c] sm:$0xf0] }
  0x59   :  { %1584 = vmatmul.bf16.vlgmr.msra.gmra.mxu0 %v5130_v54  ;;  %v4027_v18 = vor.u32 %v4808_v9, %v4024_v10  ;;  %v3263_v9 = vor.u32 %v4629_v63, %v3262_v59  ;;  %v3952_v63 = vld [vmem:[#allocation2 + $0x5d8] sm:$0xf0]  ;;  %v4631_v47 = vld [vmem:[#allocation2 + $0x94] sm:$0xf0] }
  0x5a   :  { %1648 = vmatpush.bf16.msrb.mxu0 %v4019_v23  ;;  %1609 = vmatpush.bf16.msrb.mxu3 %v3247_v26  ;;  %v4701_v23 = vld [vmem:[#allocation2 + $0x2c4] sm:$0xf0]  ;;  %v4761_v26 = vld [vmem:[#allocation2 + $0x4ac] sm:$0xf]  ;;  %v4048_v46 = vld [vmem:[#allocation2 + $0x698] sm:$0xf0] }
  0x5b   :  { %1558 = vmatmul.bf16.vlgmr.msra.gmra.mxu2 %v5130_v54  ;;  %v3551_v32 = vor.u32 %v4701_v23, %v3550_v22  ;;  %v3456_v22 = vld [vmem:[#allocation2 + $0x208] sm:$0xf0] }
  0x5c   :  { %1622 = vmatpush.bf16.msrb.mxu2 %v4015_v15  ;;  %1633 = vmatpush.bf16.msrb.mxu1 %v3443_v48  ;;  %v3936_v15 = vld [vmem:[#allocation2 + $0x5c8] sm:$0xf0]  ;;  %v4653_v48 = vld [vmem:[#allocation2 + $0x144] sm:$0xf0] }
  0x5d   :  { %1610 = vmatmul.bf16.vlgmr.msrb.gmra.mxu3 %v5130_v54  ;;  %v3939_v24 = vor.u32 %v4785_v12, %v3936_v15  ;;  %v3359_v58 = vor.u32 %v4653_v48, %v3358_v45  ;;  %v3944_v12 = vld [vmem:[#allocation2 + $0x5d0] sm:$0xf0]  ;;  %v3846_v15 = vld [vmem:[#allocation2 + $0x4b0] sm:$0xf] }
  0x5e   :  { %1674 = vmatpush.bf16.msra.mxu3 %v4023_v36  ;;  %1680 = vmatpush.bf16.msra.mxu0 %v3931_v37  ;;  %v4677_v36 = vld [vmem:[#allocation2 + $0x204] sm:$0xf0]  ;;  %v3843_v37 = vor.u32 %v4761_v26, %v3840_v28  ;;  %v3848_v26 = vld [vmem:[#allocation2 + $0x510] sm:$0xf0]  ;;  %v4775_v28 = vld [vmem:[#allocation2 + $0x514] sm:$0xf0] }
  0x5f   :  { %v3455_v44 = vor.u32 %v4677_v36, %v3454_v35  ;;  %v3360_v35 = vld [vmem:[#allocation2 + $0x148] sm:$0xf0] }
  0x60   :  { %1654 = vmatpush.bf16.msra.mxu2 %v3927_v27  ;;  %1634 = vmatpush.bf16.msrb.mxu1 %v3347_v60  ;;  %v3447_v27 = vor.u32 %v4676_v21, %v3446_v19  ;;  %v4665_v21 = vld [vmem:[#allocation2 + $0x1ac] sm:$0xf] }
  0x62   :  { %1706 = vmatpush.bf16.msrb.mxu3 %v3935_v40  ;;  %1681 = vmatpush.bf16.msra.mxu0 %v3835_v49  ;;  %v3351_v40 = vor.u32 %v4652_v34, %v3350_v33  ;;  %v4030_v49 = vld [vmem:[#allocation2 + $0x628] sm:$0xf]  ;;  %v4641_v34 = vld [vmem:[#allocation2 + $0xec] sm:$0xf] }
  0x63   :  { %v4031_v60 = vor.u32 %v4821_v50, %v4030_v49  ;;  %v4714_v50 = vld [vmem:[#allocation2 + $0x334] sm:$0xf] }
  0x64   :  { %1655 = vmatpush.bf16.msra.mxu2 %v3831_v41  ;;  %1635 = vmatpush.bf16.msrb.mxu1 %v3251_v8  ;;  %v3744_v41 = vld [vmem:[#allocation2 + $0x448] sm:$0xf0]  ;;  %v4822_v8 = vld [vmem:[#allocation2 + $0x68c] sm:$0xf0] }
  0x65   :  { %v3747_v51 = vor.u32 %v4737_v39, %v3744_v41  ;;  %v3752_v39 = vld [vmem:[#allocation2 + $0x450] sm:$0xf0]  ;;  %v4751_v41 = vld [vmem:[#allocation2 + $0x454] sm:$0xf0] }
  0x66   :  { %1707 = vmatpush.bf16.msrb.mxu3 %v3839_v52  ;;  %1682 = vmatpush.bf16.msra.mxu0 %v3739_v61  ;;  %v3355_v52 = vor.u32 %v4640_v42, %v3352_v43  ;;  %v4809_v61 = vld [vmem:[#allocation2 + $0x62c] sm:$0xf]  ;;  %v3654_v42 = vld [vmem:[#allocation2 + $0x330] sm:$0xf] }
  0x67   :  { %1636 = vmatmul.bf16.vlgmr.msrb.gmra.mxu1 %v5130_v54  ;;  %v4035_v6 = vor.u32 %v4809_v61, %v4032_v62  ;;  %v4726_v43 = vld [vmem:[#allocation2 + $0x38c] sm:$0xf0] }
  0x68   :  { %1656 = vmatpush.bf16.msra.mxu2 %v3735_v53  ;;  %1700 = vmatpush.bf16.msra.mxu1 %v4027_v18  ;;  %v4713_v53 = vld [vmem:[#allocation2 + $0x32c] sm:$0xf]  ;;  %v4039_v18 = vor.u32 %v4822_v8, %v4038_v7  ;;  %v3655_v49 = vor.u32 %v4726_v43, %v3654_v42  ;;  %v3278_v43 = vld [vmem:[#allocation2 + $0x38] sm:$0xf] }
  0x69   :  { %4091 = vmatmul.msk.bf16.vlgmr.msrb.gmra.mxu0 %vm1442_vm0, %v5121_v30  ;;  %v3651_v2 = vor.u32 %v4713_v53, %v3648_v56  ;;  %v4727_v53 = vld [vmem:[#allocation2 + $0x394] sm:$0xf0]  ;;  %v4702_v56 = vld [vmem:[#allocation2 + $0x2cc] sm:$0xf0] }
  0x6a   :  { %1708 = vmatpush.bf16.msrb.mxu3 %v3743_v0  ;;  %1683 = vmatpush.bf16.msra.mxu0 %v3643_v11  ;;  %v3942_v0 = vld [vmem:[#allocation2 + $0x570] sm:$0xf]  ;;  %v4786_v11 = vld [vmem:[#allocation2 + $0x574] sm:$0xf] }
  0x6b   :  { %4090 = vmatmul.msk.bf16.vlgmr.msrb.gmra.mxu2 %vm1442_vm0, %v5121_v30  ;;  %v3947_v19 = vor.u32 %v4786_v11, %v3944_v12  ;;  %v3856_v11 = vld [vmem:[#allocation2 + $0x518] sm:$0xf0]  ;;  %v4666_v12 = vld [vmem:[#allocation2 + $0x1b4] sm:$0xf] }
  0x6c   :  { %1657 = vmatpush.bf16.msra.mxu2 %v3639_v1  ;;  %1732 = vmatpush.bf16.msrb.mxu1 %v3939_v24  ;;  %v4798_v1 = vld [vmem:[#allocation2 + $0x5cc] sm:$0xf0]  ;;  %v3847_v24 = vor.u32 %v4774_v16, %v3846_v15 }
  0x6d   :  { %4092 = vmatmul.msk.bf16.vlgmr.msra.gmra.mxu3 %vm1442_vm0, %v5121_v30  ;;  %v3943_v10 = vor.u32 %v4798_v1, %v3942_v0  ;;  %v4690_v0 = vld [vmem:[#allocation2 + $0x274] sm:$0xf]  ;;  %v3366_v15 = vld [vmem:[#allocation2 + $0xf0] sm:$0xf] }
  0x6e   :  { %1709 = vmatpush.bf16.msrb.mxu3 %v3647_v13  ;;  %1684 = vmatpush.bf16.msra.mxu0 %v3547_v25  ;;  %v3950_v13 = vld [vmem:[#allocation2 + $0x578] sm:$0xf]  ;;  %v4762_v25 = vld [vmem:[#allocation2 + $0x4b4] sm:$0xf]  ;;  %v4654_v16 = vld [vmem:[#allocation2 + $0x14c] sm:$0xf0] }
  0x6f   :  { %v3851_v33 = vor.u32 %v4762_v25, %v3848_v26  ;;  %v3560_v1 = vld [vmem:[#allocation2 + $0x2d0] sm:$0xf0] }
  0x70   :  { %1658 = vmatpush.bf16.msra.mxu2 %v3543_v14  ;;  %1733 = vmatpush.bf16.msrb.mxu1 %v3843_v37  ;;  %v4799_v14 = vld [vmem:[#allocation2 + $0x5d4] sm:$0xf0]  ;;  %v3751_v37 = vor.u32 %v4750_v31, %v3750_v29  ;;  %v3563_v8 = vor.u32 %v4690_v0, %v3560_v1  ;;  %v4642_v25 = vld [vmem:[#allocation2 + $0xf4] sm:$0xf]  ;;  %v3270_v29 = vld [vmem:[#allocation2 + $0x30] sm:$0xf] }
  0x71   :  { %v3951_v23 = vor.u32 %v4799_v14, %v3950_v13  ;;  %v3464_v13 = vld [vmem:[#allocation2 + $0x210] sm:$0xf0]  ;;  %v4630_v31 = vld [vmem:[#allocation2 + $0x8c] sm:$0xf0]  ;;  %v4776_v0 = vld [vmem:[#allocation2 + $0x51c] sm:$0xf0] }
  0x72   :  { %1710 = vmatpush.bf16.msrb.mxu3 %v3551_v32  ;;  %1685 = vmatpush.bf16.msra.mxu0 %v3451_v38  ;;  %v3459_v32 = vor.u32 %v4665_v21, %v3456_v22  ;;  %v4738_v38 = vld [vmem:[#allocation2 + $0x3f4] sm:$0xf]  ;;  %v3467_v21 = vor.u32 %v4666_v12, %v3464_v13  ;;  %v4739_v22 = vld [vmem:[#allocation2 + $0x3fc] sm:$0xf]  ;;  %v3766_v12 = vld [vmem:[#allocation2 + $0x400] sm:$0xf] }
  0x73   :  { %v3755_v45 = vor.u32 %v4738_v38, %v3752_v39  ;;  %v3368_v26 = vld [vmem:[#allocation2 + $0x150] sm:$0xf0]  ;;  %v3271_v38 = vor.u32 %v4630_v31, %v3270_v29  ;;  %v3664_v39 = vld [vmem:[#allocation2 + $0x398] sm:$0xf0]  ;;  %v4752_v13 = vld [vmem:[#allocation2 + $0x45c] sm:$0xf0] }
  0x74   :  { %1659 = vmatpush.bf16.msra.mxu2 %v3447_v27  ;;  %1734 = vmatpush.bf16.msrb.mxu1 %v3747_v51  ;;  %v3854_v27 = vld [vmem:[#allocation2 + $0x4b8] sm:$0xf]  ;;  %v3656_v51 = vld [vmem:[#allocation2 + $0x390] sm:$0xf0]  ;;  %v4619_v31 = vld [vmem:[#allocation2 + $0x3c] sm:$0xf] }
  0x75   :  { %v3855_v36 = vor.u32 %v4775_v28, %v3854_v27  ;;  %v3659_v59 = vor.u32 %v4714_v50, %v3656_v51  ;;  %v3374_v28 = vld [vmem:[#allocation2 + $0xf8] sm:$0xf] }
  0x76   :  { %1711 = vmatpush.bf16.msrb.mxu3 %v3455_v44  ;;  %1686 = vmatpush.bf16.msra.mxu0 %v3355_v52  ;;  %v3363_v44 = vor.u32 %v4641_v34, %v3360_v35  ;;  %v3662_v52 = vld [vmem:[#allocation2 + $0x338] sm:$0xf] }
  0x77   :  { %4093 = vmatmul.msk.bf16.vlgmr.msra.gmra.mxu1 %vm1442_vm0, %v5121_v30  ;;  %v3663_v61 = vor.u32 %v4727_v53, %v3662_v52  ;;  %v4823_v34 = vld [vmem:[#allocation2 + $0x694] sm:$0xf0]  ;;  %v4691_v52 = vld [vmem:[#allocation2 + $0x27c] sm:$0xf] }
  0x78   :  { %1660 = vmatpush.bf16.msra.mxu2 %v3351_v40  ;;  %1735 = vmatpush.bf16.msrb.mxu1 %v3651_v2  ;;  %v3758_v40 = vld [vmem:[#allocation2 + $0x3f8] sm:$0xf]  ;;  %v3568_v53 = vld [vmem:[#allocation2 + $0x2d8] sm:$0xf0] }
  0x79   :  { %v3759_v48 = vor.u32 %v4751_v41, %v3758_v40  ;;  %v4618_v40 = vld [vmem:[#allocation2 + $0x34] sm:$0xf]  ;;  %v3571_v1 = vor.u32 %v4691_v52, %v3568_v53  ;;  %v3478_v53 = vld [vmem:[#allocation2 + $0x1c0] sm:$0xf] }
  0x7a   :  { %1712 = vmatpush.bf16.msrb.mxu3 %v3359_v58  ;;  %1687 = vmatpush.bf16.msra.mxu0 %v3259_v3  ;;  %v4040_v58 = vld [vmem:[#allocation2 + $0x690] sm:$0xf0]  ;;  %v3462_v3 = vld [vmem:[#allocation2 + $0x1b0] sm:$0xf] }
  0x7b   :  { %v4043_v2 = vor.u32 %v4810_v57, %v4040_v58  ;;  %v3272_v41 = vld [vmem:[#allocation2 + $0x90] sm:$0xf0]  ;;  %v3279_v57 = vor.u32 %v4631_v47, %v3278_v43  ;;  %v4812_v43 = vld [vmem:[#allocation2 + $0x644] sm:$0xf] }
  0x7c   :  { %1661 = vmatpush.bf16.msra.mxu2 %v3255_v55  ;;  %1736 = vmatpush.bf16.msrb.mxu1 %v3555_v17  ;;  %v3558_v55 = vld [vmem:[#allocation2 + $0x270] sm:$0xf]  ;;  %v3470_v17 = vld [vmem:[#allocation2 + $0x1b8] sm:$0xf]  ;;  %v3275_v51 = vor.u32 %v4618_v40, %v3272_v41  ;;  %v4704_v40 = vld [vmem:[#allocation2 + $0x2dc] sm:$0xf0] }
  0x7d   :  { %1688 = vmatmul.bf16.vlgmr.msra.gmra.mxu0 %v5130_v54  ;;  %v3559_v62 = vor.u32 %v4702_v56, %v3558_v55  ;;  %v4054_v56 = vld [vmem:[#allocation2 + $0x640] sm:$0xf] }
  0x7e   :  { %1752 = vmatpush.bf16.msrb.mxu0 %v4035_v6  ;;  %1713 = vmatpush.bf16.msrb.mxu3 %v3263_v9  ;;  %v4703_v6 = vld [vmem:[#allocation2 + $0x2d4] sm:$0xf0]  ;;  %v4763_v9 = vld [vmem:[#allocation2 + $0x4bc] sm:$0xf] }
  0x7f   :  { %1662 = vmatmul.bf16.vlgmr.msra.gmra.mxu2 %v5130_v54  ;;  %v3567_v14 = vor.u32 %v4703_v6, %v3566_v5  ;;  %v3472_v5 = vld [vmem:[#allocation2 + $0x218] sm:$0xf0] }
  0x80   :  { %1726 = vmatpush.bf16.msrb.mxu2 %v4031_v60  ;;  %1737 = vmatpush.bf16.msrb.mxu1 %v3459_v32  ;;  %v4787_v60 = vld [vmem:[#allocation2 + $0x57c] sm:$0xf]  ;;  %v4655_v32 = vld [vmem:[#allocation2 + $0x154] sm:$0xf0] }
  0x81   :  { %1714 = vmatmul.bf16.vlgmr.msrb.gmra.mxu3 %v5130_v54  ;;  %v3955_v7 = vor.u32 %v4787_v60, %v3952_v63  ;;  %v3375_v42 = vor.u32 %v4655_v32, %v3374_v28  ;;  %v3960_v60 = vld [vmem:[#allocation2 + $0x5e0] sm:$0xf0]  ;;  %v3862_v63 = vld [vmem:[#allocation2 + $0x4c0] sm:$0xf]  ;;  %v3280_v32 = vld [vmem:[#allocation2 + $0x98] sm:$0xf0] }
  0x82   :  { %1778 = vmatpush.bf16.msra.mxu3 %v4039_v18  ;;  %1784 = vmatpush.bf16.msra.mxu0 %v3947_v19  ;;  %v4679_v18 = vld [vmem:[#allocation2 + $0x214] sm:$0xf0]  ;;  %v3859_v19 = vor.u32 %v4763_v9, %v3856_v11  ;;  %v3864_v9 = vld [vmem:[#allocation2 + $0x520] sm:$0xf0]  ;;  %v4777_v11 = vld [vmem:[#allocation2 + $0x524] sm:$0xf0] }
  0x83   :  { %v3471_v27 = vor.u32 %v4679_v18, %v3470_v17  ;;  %v3376_v17 = vld [vmem:[#allocation2 + $0x158] sm:$0xf0] }
  0x84   :  { %1758 = vmatpush.bf16.msra.mxu2 %v3943_v10  ;;  %1738 = vmatpush.bf16.msrb.mxu1 %v3363_v44  ;;  %v3463_v10 = vor.u32 %v4678_v4, %v3462_v3  ;;  %v4667_v4 = vld [vmem:[#allocation2 + $0x1bc] sm:$0xf] }
  0x86   :  { %1810 = vmatpush.bf16.msrb.mxu3 %v3951_v23  ;;  %1785 = vmatpush.bf16.msra.mxu0 %v3851_v33  ;;  %v3367_v23 = vor.u32 %v4654_v16, %v3366_v15  ;;  %v4046_v33 = vld [vmem:[#allocation2 + $0x638] sm:$0xf]  ;;  %v4643_v16 = vld [vmem:[#allocation2 + $0xfc] sm:$0xf] }
  0x87   :  { %v4047_v44 = vor.u32 %v4823_v34, %v4046_v33 }
  0x88   :  { %1759 = vmatpush.bf16.msra.mxu2 %v3847_v24  ;;  %1739 = vmatpush.bf16.msrb.mxu1 %v3267_v20  ;;  %v3760_v24 = vld [vmem:[#allocation2 + $0x458] sm:$0xf0]  ;;  %v4824_v20 = vld [vmem:[#allocation2 + $0x69c] sm:$0xf0] }
  0x89   :  { %v3763_v35 = vor.u32 %v4739_v22, %v3760_v24  ;;  %v3768_v22 = vld [vmem:[#allocation2 + $0x460] sm:$0xf0]  ;;  %v4753_v24 = vld [vmem:[#allocation2 + $0x464] sm:$0xf0] }
  0x8a   :  { %1811 = vmatpush.bf16.msrb.mxu3 %v3855_v36  ;;  %1786 = vmatpush.bf16.msra.mxu0 %v3755_v45  ;;  %v3371_v36 = vor.u32 %v4642_v25, %v3368_v26  ;;  %v4811_v45 = vld [vmem:[#allocation2 + $0x63c] sm:$0xf]  ;;  %v3670_v25 = vld [vmem:[#allocation2 + $0x340] sm:$0xf] }
  0x8b   :  { %1740 = vmatmul.bf16.vlgmr.msrb.gmra.mxu1 %v5130_v54  ;;  %v4051_v55 = vor.u32 %v4811_v45, %v4048_v46  ;;  %v4728_v26 = vld [vmem:[#allocation2 + $0x39c] sm:$0xf0]  ;;  %v4789_v46 = vld [vmem:[#allocation2 + $0x58c] sm:$0xf] }
  0x8c   :  { %1760 = vmatpush.bf16.msra.mxu2 %v3751_v37  ;;  %1804 = vmatpush.bf16.msra.mxu1 %v4043_v2  ;;  %v4715_v37 = vld [vmem:[#allocation2 + $0x33c] sm:$0xf]  ;;  %v4055_v2 = vor.u32 %v4824_v20, %v4054_v56  ;;  %v3671_v34 = vor.u32 %v4728_v26, %v3670_v25  ;;  %v3582_v56 = vld [vmem:[#allocation2 + $0x288] sm:$0xf]  ;;  %v4717_v25 = vld [vmem:[#allocation2 + $0x34c] sm:$0xf] }
  0x8d   :  { %4095 = vmatmul.msk.bf16.vlgmr.msrb.gmra.mxu0 %vm1442_vm0, %v5121_v30  ;;  %v3667_v50 = vor.u32 %v4715_v37, %v3664_v39  ;;  %v3678_v37 = vld [vmem:[#allocation2 + $0x348] sm:$0xf]  ;;  %v3574_v39 = vld [vmem:[#allocation2 + $0x280] sm:$0xf]  ;;  %v3680_v26 = vld [vmem:[#allocation2 + $0x3a8] sm:$0xf0] }
  0x8e   :  { %1812 = vmatpush.bf16.msrb.mxu3 %v3759_v48  ;;  %1787 = vmatpush.bf16.msra.mxu0 %v3659_v59  ;;  %v3958_v48 = vld [vmem:[#allocation2 + $0x580] sm:$0xf]  ;;  %v4788_v59 = vld [vmem:[#allocation2 + $0x584] sm:$0xf]  ;;  %v4705_v20 = vld [vmem:[#allocation2 + $0x2e4] sm:$0xf0] }
  0x8f   :  { %4094 = vmatmul.msk.bf16.vlgmr.msrb.gmra.mxu2 %vm1442_vm0, %v5121_v30  ;;  %v3963_v3 = vor.u32 %v4788_v59, %v3960_v60  ;;  %v4765_v60 = vld [vmem:[#allocation2 + $0x4cc] sm:$0xf] }
  0x90   :  { %1761 = vmatpush.bf16.msra.mxu2 %v3655_v49  ;;  %1836 = vmatpush.bf16.msrb.mxu1 %v3955_v7  ;;  %v4800_v49 = vld [vmem:[#allocation2 + $0x5dc] sm:$0xf0]  ;;  %v3863_v7 = vor.u32 %v4776_v0, %v3862_v63  ;;  %v4668_v63 = vld [vmem:[#allocation2 + $0x1c4] sm:$0xf] }
  0x91   :  { %4096 = vmatmul.msk.bf16.vlgmr.msra.gmra.mxu3 %vm1442_vm0, %v5121_v30  ;;  %v3959_v58 = vor.u32 %v4800_v49, %v3958_v48  ;;  %v3575_v48 = vor.u32 %v4704_v40, %v3574_v39  ;;  %v3968_v49 = vld [vmem:[#allocation2 + $0x5e8] sm:$0xf0]  ;;  %v3480_v0 = vld [vmem:[#allocation2 + $0x220] sm:$0xf0]  ;;  %v4633_v40 = vld [vmem:[#allocation2 + $0xa4] sm:$0xf0] }
  0x92   :  { %1813 = vmatpush.bf16.msrb.mxu3 %v3663_v61  ;;  %1788 = vmatpush.bf16.msra.mxu0 %v3563_v8  ;;  %v3966_v61 = vld [vmem:[#allocation2 + $0x588] sm:$0xf]  ;;  %v4764_v8 = vld [vmem:[#allocation2 + $0x4c4] sm:$0xf]  ;;  %v4064_v39 = vld [vmem:[#allocation2 + $0x6a8] sm:$0xf0] }
  0x93   :  { %v3867_v15 = vor.u32 %v4764_v8, %v3864_v9  ;;  %v3483_v8 = vor.u32 %v4668_v63, %v3480_v0  ;;  %v4741_v9 = vld [vmem:[#allocation2 + $0x40c] sm:$0xf]  ;;  %v4778_v63 = vld [vmem:[#allocation2 + $0x52c] sm:$0xf0] }
  0x94   :  { %1762 = vmatpush.bf16.msra.mxu2 %v3559_v62  ;;  %1837 = vmatpush.bf16.msrb.mxu1 %v3859_v19  ;;  %v4801_v62 = vld [vmem:[#allocation2 + $0x5e4] sm:$0xf0]  ;;  %v3767_v19 = vor.u32 %v4752_v13, %v3766_v12  ;;  %v4644_v12 = vld [vmem:[#allocation2 + $0x104] sm:$0xf] }
  0x95   :  { %v3967_v6 = vor.u32 %v4801_v62, %v3966_v61  ;;  %v3872_v62 = vld [vmem:[#allocation2 + $0x528] sm:$0xf0]  ;;  %v3384_v13 = vld [vmem:[#allocation2 + $0x160] sm:$0xf0] }
  0x96   :  { %1814 = vmatpush.bf16.msrb.mxu3 %v3567_v14  ;;  %1789 = vmatpush.bf16.msra.mxu0 %v3467_v21  ;;  %v3475_v14 = vor.u32 %v4667_v4, %v3472_v5  ;;  %v4740_v21 = vld [vmem:[#allocation2 + $0x404] sm:$0xf]  ;;  %v3486_v5 = vld [vmem:[#allocation2 + $0x1c8] sm:$0xf] }
  0x97   :  { %v3771_v29 = vor.u32 %v4740_v21, %v3768_v22  ;;  %v4062_v21 = vld [vmem:[#allocation2 + $0x648] sm:$0xf] }
  0x98   :  { %1763 = vmatpush.bf16.msra.mxu2 %v3463_v10  ;;  %1838 = vmatpush.bf16.msrb.mxu1 %v3763_v35  ;;  %v3870_v10 = vld [vmem:[#allocation2 + $0x4c8] sm:$0xf]  ;;  %v4716_v35 = vld [vmem:[#allocation2 + $0x344] sm:$0xf] }
  0x99   :  { %v3871_v18 = vor.u32 %v4777_v11, %v3870_v10  ;;  %v3776_v10 = vld [vmem:[#allocation2 + $0x468] sm:$0xf0]  ;;  %v4825_v22 = vld [vmem:[#allocation2 + $0x6a4] sm:$0xf0] }
  0x9a   :  { %1815 = vmatpush.bf16.msrb.mxu3 %v3471_v27  ;;  %1790 = vmatpush.bf16.msra.mxu0 %v3371_v36  ;;  %v3379_v27 = vor.u32 %v4643_v16, %v3376_v17  ;;  %v3672_v36 = vld [vmem:[#allocation2 + $0x3a0] sm:$0xf0]  ;;  %v4657_v16 = vld [vmem:[#allocation2 + $0x164] sm:$0xf0]  ;;  %v3286_v17 = vld [vmem:[#allocation2 + $0x40] sm:$0xf] }
  0x9b   :  { %4097 = vmatmul.msk.bf16.vlgmr.msra.gmra.mxu1 %vm1442_vm0, %v5121_v30  ;;  %v3675_v45 = vor.u32 %v4716_v35, %v3672_v36 }
  0x9c   :  { %1764 = vmatpush.bf16.msra.mxu2 %v3367_v23  ;;  %1839 = vmatpush.bf16.msrb.mxu1 %v3667_v50  ;;  %v3774_v23 = vld [vmem:[#allocation2 + $0x408] sm:$0xf]  ;;  %v4692_v50 = vld [vmem:[#allocation2 + $0x284] sm:$0xf] }
  0x9d   :  { %v3775_v33 = vor.u32 %v4753_v24, %v3774_v23  ;;  %v3779_v23 = vor.u32 %v4741_v9, %v3776_v10  ;;  %v3387_v24 = vor.u32 %v4644_v12, %v3384_v13  ;;  %v3880_v10 = vld [vmem:[#allocation2 + $0x530] sm:$0xf0]  ;;  %v4779_v12 = vld [vmem:[#allocation2 + $0x534] sm:$0xf0]  ;;  %v3782_v13 = vld [vmem:[#allocation2 + $0x410] sm:$0xf] }
  0x9e   :  { %1816 = vmatpush.bf16.msrb.mxu3 %v3375_v42  ;;  %1791 = vmatpush.bf16.msra.mxu0 %v3275_v51  ;;  %v3283_v42 = vor.u32 %v4619_v31, %v3280_v32  ;;  %v3576_v51 = vld [vmem:[#allocation2 + $0x2e0] sm:$0xf0] }
  0x9f   :  { %v3579_v59 = vor.u32 %v4692_v50, %v3576_v51  ;;  %v3584_v50 = vld [vmem:[#allocation2 + $0x2e8] sm:$0xf0] }
  0xa0   :  { %1765 = vmatpush.bf16.msra.mxu2 %v3271_v38  ;;  %1840 = vmatpush.bf16.msrb.mxu1 %v3571_v1  ;;  %v5169_v28 = vpop.f32.mrf.mxu3  ;;  %v4729_v38 = vld [vmem:[#allocation2 + $0x3a4] sm:$0xf0]  ;;  %v5171_v41 = vpop.f32.mrf.mxu2  ;;  %v3583_v1 = vor.u32 %v4705_v20, %v3582_v56 }
  0xa1   :  { %1792 = vmatmul.bf16.vlgmr.msra.gmra.mxu0 %v5130_v54  ;;  %v3679_v47 = vor.u32 %v4729_v38, %v3678_v37  ;;  %v4063_v37 = vor.u32 %v4825_v22, %v4062_v21  ;;  %v4813_v38 = vld [vmem:[#allocation2 + $0x64c] sm:$0xf] }
  0xa2   :  { %1856 = vmatpush.bf16.msrb.mxu0 %v4051_v55  ;;  %1817 = vmatpush.bf16.msrb.mxu3 %v3279_v57  ;;  %v4680_v55 = vld [vmem:[#allocation2 + $0x21c] sm:$0xf0]  ;;  %v4067_v51 = vor.u32 %v4813_v38, %v4064_v39 }
  0xa3   :  { %1766 = vmatmul.bf16.vlgmr.msra.gmra.mxu2 %v5130_v54  ;;  %v3479_v61 = vor.u32 %v4680_v55, %v3478_v53  ;;  %v4826_v53 = vld [vmem:[#allocation2 + $0x6ac] sm:$0xf0] }
  0xa4   :  { %1830 = vmatpush.bf16.msrb.mxu2 %v4047_v44  ;;  %1841 = vmatpush.bf16.msrb.mxu1 %v3475_v14  ;;  %v4056_v44 = vld [vmem:[#allocation2 + $0x6a0] sm:$0xf0]  ;;  %v3390_v14 = vld [vmem:[#allocation2 + $0x108] sm:$0xf] }
  0xa5   :  { %1818 = vmatmul.bf16.vlgmr.msrb.gmra.mxu3 %v5130_v54  ;;  %v4059_v52 = vor.u32 %v4812_v43, %v4056_v44  ;;  %v3391_v35 = vor.u32 %v4657_v16, %v3390_v14  ;;  %v4802_v43 = vld [vmem:[#allocation2 + $0x5ec] sm:$0xf0]  ;;  %v3683_v44 = vor.u32 %v4717_v25, %v3680_v26  ;;  %v4742_v25 = vld [vmem:[#allocation2 + $0x414] sm:$0xf] }
  0xa6   :  { %1882 = vmatpush.bf16.msra.mxu3 %v4055_v2  ;;  %1888 = vmatpush.bf16.msra.mxu0 %v3963_v3  ;;  %v3382_v2 = vld [vmem:[#allocation2 + $0x100] sm:$0xf]  ;;  %v4754_v14 = vld [vmem:[#allocation2 + $0x46c] sm:$0xf0] }
  0xa7   :  { %v4656_v3 = vld [vmem:[#allocation2 + $0x15c] sm:$0xf0] }
  0xa8   :  { %1862 = vmatpush.bf16.msra.mxu2 %v3959_v58  ;;  %1842 = vmatpush.bf16.msrb.mxu1 %v3379_v27  ;;  %v1496_v57 = vpop.f32.mrf.mxu3  ;;  %v3971_v58 = vor.u32 %v4789_v46, %v3968_v49  ;;  %v1470_v4 = vpop.f32.mrf.mxu2  ;;  %v3383_v11 = vor.u32 %v4656_v3, %v3382_v2  ;;  %v4620_v27 = vld [vmem:[#allocation2 + $0x44] sm:$0xf]  ;;  %v4669_v3 = vld [vmem:[#allocation2 + $0x1cc] sm:$0xf] }
  0xa9   :  { %v4790_v57 = vld [vmem:[#allocation2 + $0x594] sm:$0xf] }
  0xaa   :  { %1914 = vmatpush.bf16.msrb.mxu3 %v3967_v6  ;;  %1889 = vmatpush.bf16.msra.mxu0 %v3867_v15  ;;  %v4681_v6 = vld [vmem:[#allocation2 + $0x224] sm:$0xf0] }
  0xab   :  { %v3487_v15 = vor.u32 %v4681_v6, %v3486_v5  ;;  %v3488_v6 = vld [vmem:[#allocation2 + $0x228] sm:$0xf0] }
  0xac   :  { %1863 = vmatpush.bf16.msra.mxu2 %v3863_v7  ;;  %1843 = vmatpush.bf16.msrb.mxu1 %v3283_v42  ;;  %v3875_v7 = vor.u32 %v4765_v60, %v3872_v62  ;;  %v3974_v42 = vld [vmem:[#allocation2 + $0x590] sm:$0xf]  ;;  %v3491_v16 = vor.u32 %v4669_v3, %v3488_v6  ;;  %v4707_v3 = vld [vmem:[#allocation2 + $0x2f4] sm:$0xf0] }
  0xad   :  { %v3975_v20 = vor.u32 %v4802_v43, %v3974_v42  ;;  %v3878_v62 = vld [vmem:[#allocation2 + $0x4d0] sm:$0xf]  ;;  %v3296_v42 = vld [vmem:[#allocation2 + $0xa8] sm:$0xf0] }
  0xae   :  { %1915 = vmatpush.bf16.msrb.mxu3 %v3871_v18  ;;  %1890 = vmatpush.bf16.msra.mxu0 %v3771_v29  ;;  %v4632_v18 = vld [vmem:[#allocation2 + $0x9c] sm:$0xf0]  ;;  %v3879_v9 = vor.u32 %v4778_v63, %v3878_v62  ;;  %v4694_v63 = vld [vmem:[#allocation2 + $0x294] sm:$0xf] }
  0xaf   :  { %1844 = vmatmul.bf16.vlgmr.msrb.gmra.mxu1 %v5130_v54  ;;  %v3287_v31 = vor.u32 %v4632_v18, %v3286_v17 }
  0xb0   :  { %1864 = vmatpush.bf16.msra.mxu2 %v3767_v19  ;;  %1908 = vmatpush.bf16.msra.mxu1 %v4059_v52  ;;  %v5180_v19 = vld [vmem:[#allocation6] sm:$0xff]  ;;  %v1520_v29 = vpop.f32.mrf.mxu3  ;;  %v4070_v52 = vld [vmem:[#allocation2 + $0x650] sm:$0xf] }
  0xb1   :  { %4099 = vmatmul.msk.bf16.vlgmr.msrb.gmra.mxu0 %vm1442_vm0, %v5121_v30  ;;  %v308_v32 = vperm.slane %v5180_v19, 0  ;;  %v310_v36 = vperm.slane %v5180_v19, 2  ;;  %v4071_v2 = vor.u32 %v4826_v53, %v4070_v52  ;;  %v4814_v52 = vld [vmem:[#allocation2 + $0x654] sm:$0xf] }
  0xb2   :  { %1916 = vmatpush.bf16.msrb.mxu3 %v3775_v33  ;;  %1891 = vmatpush.bf16.msra.mxu0 %v3675_v45  ;;  %v3288_v33 = vld [vmem:[#allocation2 + $0xa0] sm:$0xf0]  ;;  %v1455_v45 = vpop.f32.mrf.mxu0  ;;  %v4072_v53 = vld [vmem:[#allocation2 + $0x6b0] sm:$0xf0] }
  0xb3   :  { %4098 = vmatmul.msk.bf16.vlgmr.msrb.gmra.mxu2 %vm1442_vm0, %v5121_v30  ;;  %v3291_v46 = vor.u32 %v4620_v27, %v3288_v33  ;;  %v3783_v27 = vor.u32 %v4754_v14, %v3782_v13  ;;  %v3496_v13 = vld [vmem:[#allocation2 + $0x230] sm:$0xf0]  ;;  %v3502_v14 = vld [vmem:[#allocation2 + $0x1d8] sm:$0xf] }
  0xb4   :  { %1865 = vmatpush.bf16.msra.mxu2 %v3671_v34  ;;  %1940 = vmatpush.bf16.msrb.mxu1 %v3971_v58  ;;  %v3294_v34 = vld [vmem:[#allocation2 + $0x48] sm:$0xf]  ;;  %v1507_v49 = vpop.f32.mrf.mxu1  ;;  %v3976_v58 = vld [vmem:[#allocation2 + $0x5f0] sm:$0xf0] }
  0xb5   :  { %4100 = vmatmul.msk.bf16.vlgmr.msra.gmra.mxu3 %vm1442_vm0, %v5121_v30  ;;  %v1508_v55 = vadd.f32 %v1507_v49, %v310_v36  ;;  %v3295_v56 = vor.u32 %v4633_v40, %v3294_v34  ;;  %v3979_v5 = vor.u32 %v4790_v57, %v3976_v58  ;;  %v4755_v34 = vld [vmem:[#allocation2 + $0x474] sm:$0xf0]  ;;  %v4730_v36 = vld [vmem:[#allocation2 + $0x3ac] sm:$0xf0]  ;;  %v4621_v40 = vld [vmem:[#allocation2 + $0x4c] sm:$0xf] }
  0xb6   :  { %1917 = vmatpush.bf16.msrb.mxu3 %v3679_v47  ;;  %1892 = vmatpush.bf16.msra.mxu0 %v3579_v59  ;;  %v4693_v47 = vld [vmem:[#allocation2 + $0x28c] sm:$0xf]  ;;  %v3982_v59 = vld [vmem:[#allocation2 + $0x598] sm:$0xf]  ;;  %v3590_v49 = vld [vmem:[#allocation2 + $0x290] sm:$0xf] }
  0xb7   :  { %v1521_v0 = vadd.f32 %v1520_v29, %v1508_v55  ;;  %v3784_v29 = vld [vmem:[#allocation2 + $0x470] sm:$0xf0]  ;;  %v4791_v58 = vld [vmem:[#allocation2 + $0x59c] sm:$0xf] }
  0xb8   :  { %1866 = vmatpush.bf16.msra.mxu2 %v3575_v48  ;;  %1941 = vmatpush.bf16.msrb.mxu1 %v3875_v7  ;;  %v1456_v48 = vadd.f32 %v1455_v45, %v308_v32  ;;  %v1522_v4 = vpop.f32.mrf.mxu3  ;;  %v4766_v7 = vld [vmem:[#allocation2 + $0x4d4] sm:$0xf]  ;;  %v311_v32 = vperm.slane %v5180_v19, 3  ;;  %v3787_v39 = vor.u32 %v4742_v25, %v3784_v29  ;;  %v3792_v25 = vld [vmem:[#allocation2 + $0x478] sm:$0xf0] }
  0xb9   :  { %2072 = vst [vmem:[%s5449_s6 + $0x10] sm:$0xff] %v1521_v0  ;;  %v3883_v22 = vor.u32 %v4766_v7, %v3880_v10  ;;  %v4718_v45 = vld [vmem:[#allocation2 + $0x354] sm:$0xf]  ;;  %v3494_v4 = vld [vmem:[#allocation2 + $0x1d0] sm:$0xf] }
  0xba   :  { %1918 = vmatpush.bf16.msrb.mxu3 %v3583_v1  ;;  %1893 = vmatpush.bf16.msra.mxu0 %v3483_v8  ;;  %v1469_v60 = vadd.f32 %v5171_v41, %v1456_v48  ;;  %v3587_v1 = vor.u32 %v4693_v47, %v3584_v50  ;;  %v309_v41 = vperm.slane %v5180_v19, 1  ;;  %v1457_v17 = vpop.f32.mrf.mxu0  ;;  %v4731_v48 = vld [vmem:[#allocation2 + $0x3b4] sm:$0xf0]  ;;  %v4706_v50 = vld [vmem:[#allocation2 + $0x2ec] sm:$0xf0] }
  0xbb   :  { %v3592_v0 = vld [vmem:[#allocation2 + $0x2f0] sm:$0xf0]  ;;  %v4658_v17 = vld [vmem:[#allocation2 + $0x16c] sm:$0xf0] }
  0xbc   :  { %1867 = vmatpush.bf16.msra.mxu2 %v3479_v61  ;;  %1942 = vmatpush.bf16.msrb.mxu1 %v3779_v23  ;;  %v4803_v61 = vld [vmem:[#allocation2 + $0x5f4] sm:$0xf0]  ;;  %2070 = vst [vmem:[%s5449_s6] sm:$0xff] %v1469_v60  ;;  %v1509_v21 = vpop.f32.mrf.mxu1  ;;  %v4645_v23 = vld [vmem:[#allocation2 + $0x10c] sm:$0xf]  ;;  %v3595_v7 = vor.u32 %v4694_v63, %v3592_v0  ;;  %v4646_v29 = vld [vmem:[#allocation2 + $0x114] sm:$0xf] }
  0xbd   :  { %v3983_v8 = vor.u32 %v4803_v61, %v3982_v59  ;;  %v3984_v59 = vld [vmem:[#allocation2 + $0x5f8] sm:$0xf0]  ;;  %v3591_v61 = vor.u32 %v4706_v50, %v3590_v49  ;;  %v4924_v50 = vld [vmem:[#allocation4 + $0x304] sm:$0xf]  ;;  %v312_v63 = vperm.slane %v5180_v19, 4 }
  0xbe   :  { %1919 = vmatpush.bf16.msrb.mxu3 %v3487_v15  ;;  %1894 = vmatpush.bf16.msra.mxu0 %v3387_v24  ;;  %v1481_v15 = vpop.f32.mrf.mxu2  ;;  %v3392_v24 = vld [vmem:[#allocation2 + $0x168] sm:$0xf0]  ;;  %v3987_v6 = vor.u32 %v4791_v58, %v3984_v59  ;;  %v4695_v59 = vld [vmem:[#allocation2 + $0x29c] sm:$0xf]  ;;  %v4494_v0 = vld [vmem:[#allocation4 + $0x300] sm:$0xf] }
  0xbf   :  { %4101 = vmatmul.msk.bf16.vlgmr.msra.gmra.mxu1 %vm1442_vm0, %v5121_v30  ;;  %v1482_v18 = vadd.f32 %v1481_v15, %v309_v41  ;;  %v4683_v15 = vld [vmem:[#allocation2 + $0x234] sm:$0xf0] }
  0xc0   :  { %1868 = vmatpush.bf16.msra.mxu2 %v3383_v11  ;;  %1943 = vmatpush.bf16.msrb.mxu1 %v3683_v44  ;;  %v3886_v11 = vld [vmem:[#allocation2 + $0x4d8] sm:$0xf]  ;;  %v1533_v38 = vpop.f32.mrf.mxu3 }
  0xc1   :  { %v3887_v26 = vor.u32 %v4779_v12, %v3886_v11  ;;  %v1495_v33 = vadd.f32 %v5169_v28, %v1482_v18  ;;  %v3688_v28 = vld [vmem:[#allocation2 + $0x3b0] sm:$0xf0]  ;;  %v1534_v47 = vadd.f32 %v1533_v38, %v311_v32  ;;  %v3406_v32 = vld [vmem:[#allocation2 + $0x118] sm:$0xf] }
  0xc2   :  { %1920 = vmatpush.bf16.msrb.mxu3 %v3391_v35  ;;  %1895 = vmatpush.bf16.msra.mxu0 %v3291_v46  ;;  %v3686_v35 = vld [vmem:[#allocation2 + $0x350] sm:$0xf]  ;;  %v3694_v46 = vld [vmem:[#allocation2 + $0x358] sm:$0xf]  ;;  %v3691_v57 = vor.u32 %v4718_v45, %v3688_v28  ;;  %v4670_v12 = vld [vmem:[#allocation2 + $0x1d4] sm:$0xf] }
  0xc3   :  { %2071 = vst [vmem:[%s5449_s6 + $0x8] sm:$0xff] %v1495_v33  ;;  %v3687_v44 = vor.u32 %v4730_v36, %v3686_v35  ;;  %v3695_v60 = vor.u32 %v4731_v48, %v3694_v46  ;;  %v4659_v33 = vld [vmem:[#allocation2 + $0x174] sm:$0xf0]  ;;  %v4634_v35 = vld [vmem:[#allocation2 + $0xac] sm:$0xf0]  ;;  %v313_v45 = vperm.slane %v5180_v19, 5 }
  0xc4   :  { %1869 = vmatpush.bf16.msra.mxu2 %v3287_v31  ;;  %1944 = vmatpush.bf16.msrb.mxu1 %v3587_v1  ;;  %v3790_v31 = vld [vmem:[#allocation2 + $0x418] sm:$0xf]  ;;  %v4622_v28 = vld [vmem:[#allocation2 + $0x54] sm:$0xf] }
  0xc5   :  { %1896 = vmatmul.bf16.vlgmr.msra.gmra.mxu0 %v5130_v54  ;;  %v3791_v43 = vor.u32 %v4755_v34, %v3790_v31  ;;  %v3598_v1 = vld [vmem:[#allocation2 + $0x298] sm:$0xf]  ;;  %v3400_v31 = vld [vmem:[#allocation2 + $0x170] sm:$0xf0]  ;;  %v3302_v34 = vld [vmem:[#allocation2 + $0x50] sm:$0xf] }
  0xc6   :  { %1960 = vmatpush.bf16.msrb.mxu0 %v4067_v51  ;;  %1921 = vmatpush.bf16.msrb.mxu3 %v3295_v56  ;;  %v3299_v51 = vor.u32 %v4621_v40, %v3296_v42  ;;  %v1483_v55 = vpop.f32.mrf.mxu2  ;;  %v1546_v56 = vpop.f32.mrf.mxu0  ;;  %v3599_v10 = vor.u32 %v4707_v3, %v3598_v1  ;;  %v4078_v36 = vld [vmem:[#allocation2 + $0x658] sm:$0xf]  ;;  %v4719_v40 = vld [vmem:[#allocation2 + $0x35c] sm:$0xf]  ;;  %v3304_v46 = vld [vmem:[#allocation2 + $0xb0] sm:$0xf0] }
  0xc7   :  { %1870 = vmatmul.bf16.vlgmr.msra.gmra.mxu2 %v5130_v54  ;;  %v1547_v62 = vadd.f32 %v1546_v56, %v1534_v47  ;;  %v3696_v42 = vld [vmem:[#allocation2 + $0x3b8] sm:$0xf0]  ;;  %v3310_v47 = vld [vmem:[#allocation2 + $0x58] sm:$0xf]  ;;  %v3307_v58 = vor.u32 %v4622_v28, %v3304_v46  ;;  %v4936_v1 = vld [vmem:[#allocation4 + $0x35c] sm:$0xf0] }
  0xc8   :  { %1934 = vmatpush.bf16.msrb.mxu2 %v4063_v37  ;;  %1945 = vmatpush.bf16.msrb.mxu1 %v3491_v16  ;;  %v3395_v37 = vor.u32 %v4645_v23, %v3392_v24  ;;  %v1535_v41 = vpop.f32.mrf.mxu3  ;;  %v3398_v16 = vld [vmem:[#allocation2 + $0x110] sm:$0xf]  ;;  %v3499_v23 = vor.u32 %v4670_v12, %v3496_v13  ;;  %v4743_v24 = vld [vmem:[#allocation2 + $0x41c] sm:$0xf]  ;;  %v4635_v48 = vld [vmem:[#allocation2 + $0xb4] sm:$0xf0]  ;;  %v3699_v55 = vor.u32 %v4719_v40, %v3696_v42 }
  0xc9   :  { %1922 = vmatmul.bf16.vlgmr.msrb.gmra.mxu3 %v5130_v54  ;;  %2073 = vst [vmem:[%s5449_s6 + $0x18] sm:$0xff] %v1547_v62  ;;  %v3795_v38 = vor.u32 %v4743_v24, %v3792_v25  ;;  %v3311_v62 = vor.u32 %v4635_v48, %v3310_v47  ;;  %v4495_v12 = vor.u32 %v4936_v1, %v4494_v0  ;;  %v4304_v24 = vld [vmem:[#allocation4 + $0x1e0] sm:$0xf0]  ;;  %v4925_v46 = vld [vmem:[#allocation4 + $0x30c] sm:$0xf] }
  0xca   :  { %1986 = vmatpush.bf16.msra.mxu3 %v4071_v2  ;;  %1992 = vmatpush.bf16.msra.mxu0 %v3979_v5  ;;  %v4075_v2 = vor.u32 %v4814_v52, %v4072_v53  ;;  %v4682_v5 = vld [vmem:[#allocation2 + $0x22c] sm:$0xf0]  ;;  %v4815_v52 = vld [vmem:[#allocation2 + $0x65c] sm:$0xf]  ;;  %v4208_v40 = vld [vmem:[#allocation4 + $0x120] sm:$0xf0] }
  0xcb   :  { %v3495_v11 = vor.u32 %v4682_v5, %v3494_v4  ;;  %v4080_v53 = vld [vmem:[#allocation2 + $0x6b8] sm:$0xf0]  ;;  %v4502_v4 = vld [vmem:[#allocation4 + $0x308] sm:$0xf]  ;;  %v4206_v48 = vld [vmem:[#allocation4 + $0xc0] sm:$0xf] }
  0xcc   :  { %1966 = vmatpush.bf16.msra.mxu2 %v3975_v20  ;;  %1946 = vmatpush.bf16.msrb.mxu1 %v3395_v37  ;;  %v5202_v20 = vpop.f32.mrf.mxu1  ;;  %v4827_v37 = vld [vmem:[#allocation2 + $0x6b4] sm:$0xf0]  ;;  %v4083_v3 = vor.u32 %v4815_v52, %v4080_v53  ;;  %v4937_v5 = vld [vmem:[#allocation4 + $0x364] sm:$0xf0]  ;;  %v315_v52 = vperm.slane %v5180_v19, 7 }
  0xcd   :  { %v4079_v49 = vor.u32 %v4827_v37, %v4078_v36  ;;  %v4888_v36 = vld [vmem:[#allocation4 + $0x1dc] sm:$0xf0]  ;;  %v4310_v37 = vld [vmem:[#allocation4 + $0x188] sm:$0xf]  ;;  %v4504_v53 = vld [vmem:[#allocation4 + $0x368] sm:$0xf0] }
  0xce   :  { %2018 = vmatpush.bf16.msrb.mxu3 %v3983_v8  ;;  %1993 = vmatpush.bf16.msra.mxu0 %v3883_v22  ;;  %v4767_v8 = vld [vmem:[#allocation2 + $0x4dc] sm:$0xf]  ;;  %v1548_v21 = vpop.f32.mrf.mxu0 }
  0xcf   :  { %v4913_v21 = vld [vmem:[#allocation4 + $0x2a4] sm:$0xf0] }
  0xd0   :  { %1967 = vmatpush.bf16.msra.mxu2 %v3879_v9  ;;  %1947 = vmatpush.bf16.msrb.mxu1 %v3299_v51  ;;  %v3888_v9 = vld [vmem:[#allocation2 + $0x538] sm:$0xf0]  ;;  %v4496_v51 = vld [vmem:[#allocation4 + $0x360] sm:$0xf0] }
  0xd1   :  { %v3891_v18 = vor.u32 %v4767_v8, %v3888_v9 }
  0xd2   :  { %2019 = vmatpush.bf16.msrb.mxu3 %v3887_v26  ;;  %1994 = vmatpush.bf16.msra.mxu0 %v3787_v39  ;;  %v3503_v26 = vor.u32 %v4683_v15, %v3502_v14  ;;  %v3403_v39 = vor.u32 %v4646_v29, %v3400_v31  ;;  %v4503_v14 = vor.u32 %v4937_v5, %v4502_v4  ;;  %v4398_v15 = vld [vmem:[#allocation4 + $0x240] sm:$0xf]  ;;  %v4647_v29 = vld [vmem:[#allocation2 + $0x11c] sm:$0xf] }
  0xd3   :  { %1948 = vmatmul.bf16.vlgmr.msrb.gmra.mxu1 %v5130_v54  ;;  %v3408_v31 = vld [vmem:[#allocation2 + $0x178] sm:$0xf0]  ;;  %v4110_v4 = vld [vmem:[#allocation4] sm:$0xf] }
  0xd4   :  { %1968 = vmatpush.bf16.msra.mxu2 %v3783_v27  ;;  %2012 = vmatpush.bf16.msra.mxu1 %v4075_v2  ;;  %v1574_v22 = vpop.f32.mrf.mxu1  ;;  %v3399_v27 = vor.u32 %v4658_v17, %v3398_v16  ;;  %v4499_v2 = vor.u32 %v4924_v50, %v4496_v51  ;;  %v4912_v16 = vld [vmem:[#allocation4 + $0x29c] sm:$0xf0]  ;;  %v3411_v42 = vor.u32 %v4647_v29, %v3408_v31  ;;  %v314_v50 = vperm.slane %v5180_v19, 6  ;;  %v4414_v31 = vld [vmem:[#allocation4 + $0x250] sm:$0xf] }
  0xd5   :  { %4103 = vmatmul.msk.bf16.vlgmr.msrb.gmra.mxu0 %vm1442_vm0, %v5121_v30  ;;  %v4840_v5 = vld [vmem:[#allocation4 + $0x5c] sm:$0xf0] }
  0xd6   :  { %2020 = vmatpush.bf16.msrb.mxu3 %v3791_v43  ;;  %1995 = vmatpush.bf16.msra.mxu0 %v3691_v57  ;;  %v3407_v43 = vor.u32 %v4659_v33, %v3406_v32  ;;  %v1585_v56 = vpop.f32.mrf.mxu0  ;;  %v4399_v32 = vor.u32 %v4912_v16, %v4398_v15  ;;  %v4902_v16 = vld [vmem:[#allocation4 + $0x254] sm:$0xf] }
  0xd7   :  { %4102 = vmatmul.msk.bf16.vlgmr.msrb.gmra.mxu2 %vm1442_vm0, %v5121_v30 }
  0xd8   :  { %1969 = vmatpush.bf16.msra.mxu2 %v3687_v44  ;;  %2044 = vmatpush.bf16.msrb.mxu1 %v3987_v6  ;;  %v3303_v44 = vor.u32 %v4634_v35, %v3302_v34  ;;  %v4900_v6 = vld [vmem:[#allocation4 + $0x244] sm:$0xf]  ;;  %v4302_v35 = vld [vmem:[#allocation4 + $0x180] sm:$0xf] }
  0xd9   :  { %4104 = vmatmul.msk.bf16.vlgmr.msra.gmra.mxu3 %vm1442_vm0, %v5121_v30  ;;  %v4303_v28 = vor.u32 %v4888_v36, %v4302_v35 }
  0xda   :  { %2021 = vmatpush.bf16.msrb.mxu3 %v3695_v60  ;;  %1996 = vmatpush.bf16.msra.mxu0 %v3595_v7  ;;  %v3600_v60 = vld [vmem:[#allocation2 + $0x2f8] sm:$0xf0]  ;;  %v4400_v7 = vld [vmem:[#allocation4 + $0x2a0] sm:$0xf0] }
  0xdb   :  { %v3603_v8 = vor.u32 %v4695_v59, %v3600_v60  ;;  %v4403_v17 = vor.u32 %v4900_v6, %v4400_v7  ;;  %v4408_v6 = vld [vmem:[#allocation4 + $0x2a8] sm:$0xf0] }
  0xdc   :  { %1970 = vmatpush.bf16.msra.mxu2 %v3591_v61  ;;  %2045 = vmatpush.bf16.msrb.mxu1 %v3891_v18  ;;  %v1598_v57 = vpop.f32.mrf.mxu1  ;;  %v1586_v61 = vadd.f32 %v1585_v56, %v313_v45  ;;  %v4406_v18 = vld [vmem:[#allocation4 + $0x248] sm:$0xf]  ;;  %v3312_v45 = vld [vmem:[#allocation2 + $0xb8] sm:$0xf0]  ;;  %v4112_v56 = vld [vmem:[#allocation4 + $0x60] sm:$0xf0] }
  0xdd   :  { %v4407_v34 = vor.u32 %v4913_v21, %v4406_v18  ;;  %v4518_v18 = vld [vmem:[#allocation4 + $0x318] sm:$0xf] }
  0xde   :  { %2022 = vmatpush.bf16.msrb.mxu3 %v3599_v10  ;;  %1997 = vmatpush.bf16.msra.mxu0 %v3499_v23  ;;  %v1599_v41 = vadd.f32 %v1598_v57, %v1586_v61  ;;  %v1559_v9 = vpop.f32.mrf.mxu2  ;;  %v4671_v10 = vld [vmem:[#allocation2 + $0x1dc] sm:$0xf]  ;;  %v4876_v23 = vld [vmem:[#allocation4 + $0x184] sm:$0xf]  ;;  %v4214_v57 = vld [vmem:[#allocation4 + $0xc8] sm:$0xf] }
  0xdf   :  { %v1560_v13 = vadd.f32 %v1559_v9, %v312_v63  ;;  %v4926_v61 = vld [vmem:[#allocation4 + $0x314] sm:$0xf]  ;;  %v4938_v9 = vld [vmem:[#allocation4 + $0x36c] sm:$0xf0]  ;;  %v4939_v21 = vld [vmem:[#allocation4 + $0x374] sm:$0xf0] }
  0xe0   :  { %1971 = vmatpush.bf16.msra.mxu2 %v3495_v11  ;;  %2046 = vmatpush.bf16.msrb.mxu1 %v3795_v38  ;;  %v3504_v11 = vld [vmem:[#allocation2 + $0x238] sm:$0xf0]  ;;  %2075 = vst [vmem:[%s5449_s6 + $0x28] sm:$0xff] %v1599_v41  ;;  %v1611_v33 = vpop.f32.mrf.mxu3  ;;  %v4889_v38 = vld [vmem:[#allocation4 + $0x1e4] sm:$0xf0] }
  0xe1   :  { %v1573_v22 = vadd.f32 %v5202_v20, %v1560_v13  ;;  %v3507_v25 = vor.u32 %v4671_v10, %v3504_v11  ;;  %v4307_v20 = vor.u32 %v4876_v23, %v4304_v24  ;;  %v4311_v47 = vor.u32 %v4889_v38, %v4310_v37  ;;  %v4118_v11 = vld [vmem:[#allocation4 + $0x8] sm:$0xf]  ;;  %v4416_v24 = vld [vmem:[#allocation4 + $0x2b0] sm:$0xf0] }
  0xe2   :  { %2023 = vmatpush.bf16.msrb.mxu3 %v3503_v26  ;;  %1998 = vmatpush.bf16.msra.mxu0 %v3403_v39  ;;  %v1587_v26 = vpop.f32.mrf.mxu0  ;;  %v4852_v39 = vld [vmem:[#allocation4 + $0xc4] sm:$0xf]  ;;  %v1612_v10 = vadd.f32 %v1611_v33, %v314_v50  ;;  %v5244_v33 = vld [vmem:[%s5444_s1] sm:$0xf]  ;;  %v4419_v35 = vor.u32 %v4902_v16, %v4416_v24  ;;  %v4326_v50 = vld [vmem:[#allocation4 + $0x198] sm:$0xf] }
  0xe3   :  { %4105 = vmatmul.msk.bf16.vlgmr.msra.gmra.mxu1 %vm1442_vm0, %v5121_v30  ;;  %2074 = vst [vmem:[%s5449_s6 + $0x20] sm:$0xff] %v1573_v22  ;;  %v4211_v51 = vor.u32 %v4852_v39, %v4208_v40  ;;  %v4312_v26 = vld [vmem:[#allocation4 + $0x1e8] sm:$0xf0]  ;;  %v4878_v39 = vld [vmem:[#allocation4 + $0x194] sm:$0xf] }
  0xe4   :  { %1972 = vmatpush.bf16.msra.mxu2 %v3399_v27  ;;  %2047 = vmatpush.bf16.msrb.mxu1 %v3699_v55  ;;  %v1600_v27 = vpop.f32.mrf.mxu1  ;;  %v4828_v55 = vld [vmem:[#allocation4 + $0x4] sm:$0xf]  ;;  %v4320_v40 = vld [vmem:[#allocation4 + $0x1f0] sm:$0xf0]  ;;  %v4126_v16 = vld [vmem:[#allocation4 + $0x10] sm:$0xf] }
  0xe5   :  { %v4115_v41 = vor.u32 %v4828_v55, %v4112_v56  ;;  %v4224_v55 = vld [vmem:[#allocation4 + $0x130] sm:$0xf0]  ;;  %v4829_v56 = vld [vmem:[#allocation4 + $0xc] sm:$0xf] }
  0xe6   :  { %2024 = vmatpush.bf16.msrb.mxu3 %v3407_v43  ;;  %1999 = vmatpush.bf16.msra.mxu0 %v3307_v58  ;;  %v1561_v43 = vpop.f32.mrf.mxu2  ;;  %v4865_v58 = vld [vmem:[#allocation4 + $0x124] sm:$0xf0] }
  0xe7   :  { %v4215_v7 = vor.u32 %v4865_v58, %v4214_v57 }
  0xe8   :  { %1973 = vmatpush.bf16.msra.mxu2 %v3303_v44  ;;  %2048 = vmatpush.bf16.msrb.mxu1 %v3603_v8  ;;  %v4623_v44 = vld [vmem:[#allocation2 + $0x5c] sm:$0xf]  ;;  %v1613_v0 = vpop.f32.mrf.mxu3  ;;  %v4510_v8 = vld [vmem:[#allocation4 + $0x310] sm:$0xf] }
  0xe9   :  { %2000 = vmatmul.bf16.vlgmr.msra.gmra.mxu0 %v5130_v54  ;;  %v3315_v59 = vor.u32 %v4623_v44, %v3312_v45  ;;  %v4511_v27 = vor.u32 %v4938_v9, %v4510_v8  ;;  %v4216_v44 = vld [vmem:[#allocation4 + $0x128] sm:$0xf0]  ;;  %v4318_v45 = vld [vmem:[#allocation4 + $0x190] sm:$0xf] }
  0xea   :  { %2025 = vmatpush.bf16.msrb.mxu3 %v3311_v62  ;;  %2064 = vmatpush.bf16.msrb.mxu0 %v4083_v3  ;;  %v1650_v60 = vpop.f32.mrf.mxu0  ;;  %v4512_v62 = vld [vmem:[#allocation4 + $0x370] sm:$0xf0]  ;;  %v4901_v3 = vld [vmem:[#allocation4 + $0x24c] sm:$0xf]  ;;  %v4866_v0 = vld [vmem:[#allocation4 + $0x12c] sm:$0xf0] }
  0xeb   :  { %1974 = vmatmul.bf16.vlgmr.msra.gmra.mxu2 %v5130_v54  ;;  %v4411_v23 = vor.u32 %v4901_v3, %v4408_v6  ;;  %v4128_v3 = vld [vmem:[#allocation4 + $0x70] sm:$0xf0]  ;;  %v4528_v6 = vld [vmem:[#allocation4 + $0x380] sm:$0xf0] }
  0xec   :  { %2038 = vmatpush.bf16.msrb.mxu2 %v4079_v49  ;;  %2049 = vmatpush.bf16.msrb.mxu1 %v3507_v25  ;;  %v4864_v49 = vld [vmem:[#allocation4 + $0x11c] sm:$0xf0]  ;;  %v1637_v1 = vpop.f32.mrf.mxu1  ;;  %v4877_v25 = vld [vmem:[#allocation4 + $0x18c] sm:$0xf] }
  0xed   :  { %2026 = vmatmul.bf16.vlgmr.msrb.gmra.mxu3 %v5130_v54  ;;  %v4207_v63 = vor.u32 %v4864_v49, %v4206_v48  ;;  %v1638_v19 = vadd.f32 %v1637_v1, %v315_v52  ;;  %v4315_v38 = vor.u32 %v4877_v25, %v4312_v26  ;;  %v4323_v48 = vor.u32 %v4878_v39, %v4320_v40  ;;  %v4941_v39 = vld [vmem:[#allocation4 + $0x384] sm:$0xf0] }
  0xee   :  { %2889 = vmatpush.bf16.msra.mxu3 %v4499_v2  ;;  %2902 = vmatpush.bf16.msra.mxu0 %v4503_v14  ;;  %v4507_v2 = vor.u32 %v4925_v46, %v4504_v53  ;;  %v4515_v14 = vor.u32 %v4926_v61, %v4512_v62  ;;  %v1624_v15 = vpop.f32.mrf.mxu2  ;;  %v5250_v46 = vld [vmem:[#allocation6 + $0x8] sm:$0xff]  ;;  %v4854_v53 = vld [vmem:[#allocation4 + $0xd4] sm:$0xf]  ;;  %v4520_v61 = vld [vmem:[#allocation4 + $0x378] sm:$0xf0] }
  0xef   :  { %v1651_v13 = vadd.f32 %v1650_v60, %v1638_v19  ;;  %v1625_v22 = vadd.f32 %v1624_v15, %v1612_v10  ;;  %v317_v58 = vperm.slane %v5250_v46, 1  ;;  %v4927_v60 = vld [vmem:[#allocation4 + $0x31c] sm:$0xf]  ;;  %v4227_v1 = vor.u32 %v4854_v53, %v4224_v55 }
  0xf0   :  { %2876 = vmatpush.bf16.msra.mxu2 %v4495_v12  ;;  %2050 = vmatpush.bf16.msrb.mxu1 %v3411_v42  ;;  %v4841_v12 = vld [vmem:[#allocation4 + $0x64] sm:$0xf0]  ;;  %v4853_v42 = vld [vmem:[#allocation4 + $0xcc] sm:$0xf]  ;;  %v4523_v10 = vor.u32 %v4927_v60, %v4520_v61  ;;  %v4424_v15 = vld [vmem:[#allocation4 + $0x2b8] sm:$0xf0] }
  0xf1   :  { %2077 = vst [vmem:[%s5449_s6 + $0x38] sm:$0xff] %v1651_v13  ;;  %v4119_v29 = vor.u32 %v4841_v12, %v4118_v11  ;;  %v4219_v52 = vor.u32 %v4853_v42, %v4216_v44  ;;  %v316_v11 = vperm.slane %v5250_v46, 0  ;;  %v4230_v13 = vld [vmem:[#allocation4 + $0xd8] sm:$0xf]  ;;  %v4430_v42 = vld [vmem:[#allocation4 + $0x260] sm:$0xf] }
  0xf2   :  { %2890 = vmatpush.bf16.msra.mxu3 %v4403_v17  ;;  %2903 = vmatpush.bf16.msra.mxu0 %v4407_v34  ;;  %v4111_v17 = vor.u32 %v4840_v5, %v4110_v4  ;;  %2076 = vst [vmem:[%s5449_s6 + $0x30] sm:$0xff] %v1625_v22  ;;  %v4519_v34 = vor.u32 %v4939_v21, %v4518_v18  ;;  %v1652_v36 = vpop.f32.mrf.mxu0  ;;  %v4526_v22 = vld [vmem:[#allocation4 + $0x320] sm:$0xf]  ;;  %v4232_v53 = vld [vmem:[#allocation4 + $0x138] sm:$0xf0] }
  0xf3   :  { %v4134_v36 = vld [vmem:[#allocation4 + $0x18] sm:$0xf] }
  0xf4   :  { %2877 = vmatpush.bf16.msra.mxu2 %v4399_v32  ;;  %2051 = vmatpush.bf16.msrb.mxu1 %v3315_v59  ;;  %v4914_v32 = vld [vmem:[#allocation4 + $0x2ac] sm:$0xf0]  ;;  %v1639_v37 = vpop.f32.mrf.mxu1  ;;  %v4120_v59 = vld [vmem:[#allocation4 + $0x68] sm:$0xf0] }
  0xf5   :  { %v4415_v43 = vor.u32 %v4914_v32, %v4414_v31  ;;  %v4123_v19 = vor.u32 %v4829_v56, %v4120_v59  ;;  %v4879_v31 = vld [vmem:[#allocation4 + $0x19c] sm:$0xf]  ;;  %v4438_v56 = vld [vmem:[#allocation4 + $0x268] sm:$0xf]  ;;  %v4892_v59 = vld [vmem:[#allocation4 + $0x1fc] sm:$0xf0] }
  0xf6   :  { %2891 = vmatpush.bf16.msra.mxu3 %v4307_v20  ;;  %2904 = vmatpush.bf16.msra.mxu0 %v4311_v47  ;;  %v4422_v20 = vld [vmem:[#allocation4 + $0x258] sm:$0xf]  ;;  %v1626_v49 = vpop.f32.mrf.mxu2 }
  0xf7   :  { %2052 = vmatmul.bf16.vlgmr.msrb.gmra.mxu1 %v5130_v54  ;;  %v4915_v54 = vld [vmem:[#allocation4 + $0x2b4] sm:$0xf0] }
  0xf8   :  { %2878 = vmatpush.bf16.msra.mxu2 %v4303_v28  ;;  %2915 = vmatpush.bf16.msra.mxu1 %v4507_v2  ;;  %v4890_v28 = vld [vmem:[#allocation4 + $0x1ec] sm:$0xf0]  ;;  %v4423_v47 = vor.u32 %v4915_v54, %v4422_v20  ;;  %v4830_v2 = vld [vmem:[#allocation4 + $0x14] sm:$0xf]  ;;  %v4843_v20 = vld [vmem:[#allocation4 + $0x74] sm:$0xf0] }
  0xf9   :  { %4107 = vmatmul.msk.bf16.vlgmr.msrb.gmra.mxu0 %vm1442_vm0, %v5121_v30  ;;  %v4319_v57 = vor.u32 %v4890_v28, %v4318_v45  ;;  %v4131_v21 = vor.u32 %v4830_v2, %v4128_v3  ;;  %v4328_v54 = vld [vmem:[#allocation4 + $0x1f8] sm:$0xf0] }
  0xfa   :  { %2892 = vmatpush.bf16.msra.mxu3 %v4211_v51  ;;  %2905 = vmatpush.bf16.msra.mxu0 %v4215_v7  ;;  %v4891_v51 = vld [vmem:[#allocation4 + $0x1f4] sm:$0xf0]  ;;  %v1689_v5 = vpop.f32.mrf.mxu0  ;;  %v4903_v7 = vld [vmem:[#allocation4 + $0x25c] sm:$0xf] }
  0xfb   :  { %4106 = vmatmul.msk.bf16.vlgmr.msrb.gmra.mxu2 %vm1442_vm0, %v5121_v30  ;;  %v5246_v30 = vpop.f32.mrf.mxu3  ;;  %v4327_v62 = vor.u32 %v4891_v51, %v4326_v50  ;;  %v1690_v8 = vadd.f32 %v1689_v5, %v317_v58  ;;  %v4331_v50 = vor.u32 %v4879_v31, %v4328_v54  ;;  %v4336_v51 = vld [vmem:[#allocation4 + $0x200] sm:$0xf0]  ;;  %v4334_v58 = vld [vmem:[#allocation4 + $0x1a0] sm:$0xf]  ;;  %v4831_v2 = vld [vmem:[#allocation4 + $0x1c] sm:$0xf] }
  0xfc   :  { %2879 = vmatpush.bf16.msra.mxu2 %v4207_v63  ;;  %2916 = vmatpush.bf16.msra.mxu1 %v4411_v23  ;;  %v4222_v63 = vld [vmem:[#allocation4 + $0xd0] sm:$0xf]  ;;  %v1702_v9 = vpop.f32.mrf.mxu1  ;;  %v4940_v23 = vld [vmem:[#allocation4 + $0x37c] sm:$0xf0]  ;;  %v4335_v5 = vor.u32 %v4892_v59, %v4334_v58  ;;  %v4440_v31 = vld [vmem:[#allocation4 + $0x2c8] sm:$0xf0] }
  0xfd   :  { %v4223_v12 = vor.u32 %v4866_v0, %v4222_v63  ;;  %v1703_v18 = vadd.f32 %v1702_v9, %v1690_v8  ;;  %v4527_v37 = vor.u32 %v4940_v23, %v4526_v22  ;;  %v4856_v0 = vld [vmem:[#allocation4 + $0xe4] sm:$0xf]  ;;  %v4536_v8 = vld [vmem:[#allocation4 + $0x388] sm:$0xf0]  ;;  %v4448_v54 = vld [vmem:[#allocation4 + $0x2d0] sm:$0xf0] }
  0xfe   :  { %2893 = vmatpush.bf16.msra.mxu3 %v4115_v41  ;;  %2906 = vmatpush.bf16.msra.mxu0 %v4119_v29  ;;  %v4928_v41 = vld [vmem:[#allocation4 + $0x324] sm:$0xf]  ;;  %v4446_v59 = vld [vmem:[#allocation4 + $0x270] sm:$0xf] }
  0xff   :  { %v4531_v25 = vor.u32 %v4928_v41, %v4528_v6  ;;  %v4432_v29 = vld [vmem:[#allocation4 + $0x2c0] sm:$0xf0]  ;;  %2079 = vst [vmem:[%s5449_s6 + $0x48] sm:$0xff] %v1703_v18  ;;  %v4893_v41 = vld [vmem:[#allocation4 + $0x204] sm:$0xf0]  ;;  %v318_v6 = vperm.slane %v5250_v46, 2 }
 0x100   :  { %2880 = vmatpush.bf16.msra.mxu2 %v4111_v17  ;;  %2917 = vmatpush.bf16.msra.mxu1 %v4315_v38  ;;  %v4842_v17 = vld [vmem:[#allocation4 + $0x6c] sm:$0xf0]  ;;  %v4534_v38 = vld [vmem:[#allocation4 + $0x328] sm:$0xf] }
 0x101   :  { %4589 = vmatmul.msk.bf16.vlgmr.msra.gmra.mxu3 %vm2869_vm1, %v5244_v33 }
 0x102   :  { %2941 = vmatpush.bf16.msrb.mxu3 %v4515_v14  ;;  %2954 = vmatpush.bf16.msrb.mxu0 %v4519_v34  ;;  %v4867_v14 = vld [vmem:[#allocation4 + $0x134] sm:$0xf0]  ;;  %v1663_v24 = vpop.f32.mrf.mxu2  ;;  %v4427_v34 = vor.u32 %v4903_v7, %v4424_v15  ;;  %v1691_v44 = vpop.f32.mrf.mxu0  ;;  %v4929_v7 = vld [vmem:[#allocation4 + $0x32c] sm:$0xf] }
 0x103   :  { %v1678_v4 = vpop.f32.mrf.mxu3  ;;  %v4231_v26 = vor.u32 %v4867_v14, %v4230_v13  ;;  %v1664_v32 = vadd.f32 %v1663_v24, %v316_v11  ;;  %v4868_v13 = vld [vmem:[#allocation4 + $0x13c] sm:$0xf0]  ;;  %v4539_v23 = vor.u32 %v4929_v7, %v4536_v8  ;;  %v4544_v24 = vld [vmem:[#allocation4 + $0x390] sm:$0xf0]  ;;  %v4344_v44 = vld [vmem:[#allocation4 + $0x208] sm:$0xf0] }
 0x104   :  { %2928 = vmatpush.bf16.msrb.mxu2 %v4511_v27  ;;  %2918 = vmatpush.bf16.msra.mxu1 %v4219_v52  ;;  %v4904_v27 = vld [vmem:[#allocation4 + $0x264] sm:$0xf]  ;;  %v1704_v49 = vpop.f32.mrf.mxu1  ;;  %v4855_v52 = vld [vmem:[#allocation4 + $0xdc] sm:$0xf]  ;;  %v4858_v7 = vld [vmem:[#allocation4 + $0xf4] sm:$0xf] }
 0x105   :  { %v1677_v40 = vadd.f32 %v5246_v30, %v1664_v32  ;;  %v4435_v28 = vor.u32 %v4904_v27, %v4432_v29  ;;  %v4535_v30 = vor.u32 %v4941_v39, %v4534_v38  ;;  %v4235_v63 = vor.u32 %v4855_v52, %v4232_v53  ;;  %v4136_v4 = vld [vmem:[#allocation4 + $0x78] sm:$0xf0]  ;;  %v4905_v29 = vld [vmem:[#allocation4 + $0x26c] sm:$0xf]  ;;  %v4844_v38 = vld [vmem:[#allocation4 + $0x7c] sm:$0xf0] }
 0x106   :  { %2942 = vmatpush.bf16.msrb.mxu3 %v4419_v35  ;;  %2955 = vmatpush.bf16.msrb.mxu0 %v4423_v47  ;;  %v4127_v35 = vor.u32 %v4842_v17, %v4126_v16  ;;  %v4135_v47 = vor.u32 %v4843_v20, %v4134_v36  ;;  %v4139_v15 = vor.u32 %v4831_v2, %v4136_v4  ;;  %v4832_v16 = vld [vmem:[#allocation4 + $0x24] sm:$0xf]  ;;  %v4906_v20 = vld [vmem:[#allocation4 + $0x274] sm:$0xf]  ;;  %v4845_v49 = vld [vmem:[#allocation4 + $0x84] sm:$0xf0] }
 0x107   :  { %2078 = vst [vmem:[%s5449_s6 + $0x40] sm:$0xff] %v1677_v40  ;;  %v4144_v17 = vld [vmem:[#allocation4 + $0x80] sm:$0xf0]  ;;  %v4943_v52 = vld [vmem:[#allocation4 + $0x394] sm:$0xf0] }
 0x108   :  { %2929 = vmatpush.bf16.msrb.mxu2 %v4415_v43  ;;  %2919 = vmatpush.bf16.msra.mxu1 %v4123_v19  ;;  %v4916_v43 = vld [vmem:[#allocation4 + $0x2bc] sm:$0xf0]  ;;  %v4342_v19 = vld [vmem:[#allocation4 + $0x1a8] sm:$0xf]  ;;  %v4147_v36 = vor.u32 %v4832_v16, %v4144_v17  ;;  %v4248_v2 = vld [vmem:[#allocation4 + $0x148] sm:$0xf0] }
 0x109   :  { %4590 = vmatmul.msk.bf16.vlgmr.msra.gmra.mxu0 %vm2869_vm1, %v5244_v33  ;;  %v4431_v55 = vor.u32 %v4916_v43, %v4430_v42  ;;  %v4343_v18 = vor.u32 %v4893_v41, %v4342_v19  ;;  %v4881_v43 = vld [vmem:[#allocation4 + $0x1ac] sm:$0xf]  ;;  %v4919_v4 = vld [vmem:[#allocation4 + $0x2d4] sm:$0xf0]  ;;  %v4552_v16 = vld [vmem:[#allocation4 + $0x398] sm:$0xf0] }
 0x10a   :  { %2943 = vmatpush.bf16.msrb.mxu3 %v4323_v48  ;;  %2956 = vmatpush.bf16.msrb.mxu0 %v4327_v62  ;;  %v4880_v48 = vld [vmem:[#allocation4 + $0x1a4] sm:$0xf]  ;;  %v1665_v60 = vpop.f32.mrf.mxu2  ;;  %v319_v62 = vperm.slane %v5250_v46, 3  ;;  %v4358_v17 = vld [vmem:[#allocation4 + $0x1b8] sm:$0xf] }
 0x10b   :  { %4588 = vmatmul.msk.bf16.vlgmr.msra.gmra.mxu2 %vm2869_vm1, %v5244_v33  ;;  %4591 = vmatmul.msk.bf16.vlgmr.msra.gmra.mxu1 %vm2869_vm1, %v5244_v33  ;;  %v1715_v45 = vpop.f32.mrf.mxu3  ;;  %v4339_v61 = vor.u32 %v4880_v48, %v4336_v51  ;;  %v4150_v48 = vld [vmem:[#allocation4 + $0x28] sm:$0xf]  ;;  %v4550_v51 = vld [vmem:[#allocation4 + $0x338] sm:$0xf]  ;;  %v4918_v60 = vld [vmem:[#allocation4 + $0x2cc] sm:$0xf0] }
 0x10c   :  { %2930 = vmatpush.bf16.msrb.mxu2 %v4319_v57  ;;  %2967 = vmatpush.bf16.msrb.mxu1 %v4523_v10  ;;  %v4917_v57 = vld [vmem:[#allocation4 + $0x2c4] sm:$0xf0]  ;;  %v1754_v10 = vpop.f32.mrf.mxu0  ;;  %v1741_v14 = vpop.f32.mrf.mxu1  ;;  %v1716_v27 = vadd.f32 %v1715_v45, %v318_v6  ;;  %v4542_v45 = vld [vmem:[#allocation4 + $0x330] sm:$0xf]  ;;  %v4151_v58 = vor.u32 %v4845_v49, %v4150_v48  ;;  %v4447_v19 = vor.u32 %v4918_v60, %v4446_v59  ;;  %v321_v6 = vperm.slane %v5250_v46, 5 }
 0x10d   :  { %v4439_v3 = vor.u32 %v4917_v57, %v4438_v56  ;;  %v1742_v22 = vadd.f32 %v1741_v14, %v319_v62  ;;  %v4451_v57 = vor.u32 %v4906_v20, %v4448_v54  ;;  %v4882_v62 = vld [vmem:[#allocation4 + $0x1b4] sm:$0xf]  ;;  %v4152_v14 = vld [vmem:[#allocation4 + $0x88] sm:$0xf0]  ;;  %v4907_v54 = vld [vmem:[#allocation4 + $0x27c] sm:$0xf] }
 0x10e   :  { %2944 = vmatpush.bf16.msrb.mxu3 %v4227_v1  ;;  %2957 = vmatpush.bf16.msrb.mxu0 %v4231_v26  ;;  %v4240_v1 = vld [vmem:[#allocation4 + $0x140] sm:$0xf0]  ;;  %v4869_v26 = vld [vmem:[#allocation4 + $0x144] sm:$0xf0]  ;;  %v4558_v59 = vld [vmem:[#allocation4 + $0x340] sm:$0xf] }
 0x10f   :  { %v4243_v11 = vor.u32 %v4856_v0, %v4240_v1  ;;  %v4857_v0 = vld [vmem:[#allocation4 + $0xec] sm:$0xf]  ;;  %v4551_v1 = vor.u32 %v4943_v52, %v4550_v51  ;;  %v4908_v49 = vld [vmem:[#allocation4 + $0x284] sm:$0xf]  ;;  %v4944_v60 = vld [vmem:[#allocation4 + $0x39c] sm:$0xf0] }
 0x110   :  { %2931 = vmatpush.bf16.msrb.mxu2 %v4223_v12  ;;  %2968 = vmatpush.bf16.msrb.mxu1 %v4427_v34  ;;  %v4238_v12 = vld [vmem:[#allocation4 + $0xe0] sm:$0xf]  ;;  %v1755_v34 = vadd.f32 %v1754_v10, %v1742_v22  ;;  %v4251_v8 = vor.u32 %v4857_v0, %v4248_v2  ;;  %v4847_v0 = vld [vmem:[#allocation4 + $0x94] sm:$0xf0] }
 0x111   :  { %v4239_v32 = vor.u32 %v4868_v13, %v4238_v12  ;;  %v4894_v12 = vld [vmem:[#allocation4 + $0x20c] sm:$0xf0]  ;;  %v4833_v13 = vld [vmem:[#allocation4 + $0x2c] sm:$0xf] }
 0x112   :  { %2945 = vmatpush.bf16.msrb.mxu3 %v4131_v21  ;;  %2958 = vmatpush.bf16.msrb.mxu0 %v4135_v47  ;;  %v4930_v21 = vld [vmem:[#allocation4 + $0x334] sm:$0xf]  ;;  %2081 = vst [vmem:[%s5449_s6 + $0x58] sm:$0xff] %v1755_v34  ;;  %v4443_v47 = vor.u32 %v4905_v29, %v4440_v31  ;;  %v4155_v31 = vor.u32 %v4833_v13, %v4152_v14  ;;  %v4932_v34 = vld [vmem:[#allocation4 + $0x344] sm:$0xf]  ;;  %v322_v14 = vperm.slane %v5250_v46, 6 }
 0x113   :  { %v1717_v9 = vpop.f32.mrf.mxu3  ;;  %v4547_v40 = vor.u32 %v4930_v21, %v4544_v24 }
 0x114   :  { %2932 = vmatpush.bf16.msrb.mxu2 %v4127_v35  ;;  %2969 = vmatpush.bf16.msrb.mxu1 %v4331_v50  ;;  %v1728_v35 = vpop.f32.mrf.mxu2  ;;  %v4256_v9 = vld [vmem:[#allocation4 + $0x150] sm:$0xf0] }
 0x115   :  { %4593 = vmatmul.msk.bf16.vlgmr.msrb.gmra.mxu3 %vm2869_vm1, %v5244_v33  ;;  %v1729_v39 = vadd.f32 %v1728_v35, %v1716_v27  ;;  %v4560_v35 = vld [vmem:[#allocation4 + $0x3a0] sm:$0xf0] }
 0x116   :  { %2993 = vmatpush.bf16.msra.mxu3 %v4531_v25  ;;  %3006 = vmatpush.bf16.msra.mxu0 %v4535_v30  ;;  %v4246_v25 = vld [vmem:[#allocation4 + $0xe8] sm:$0xf]  ;;  %v1756_v30 = vpop.f32.mrf.mxu0 }
 0x117   :  { %v4247_v42 = vor.u32 %v4869_v26, %v4246_v25  ;;  %2080 = vst [vmem:[%s5449_s6 + $0x50] sm:$0xff] %v1729_v39  ;;  %v4834_v25 = vld [vmem:[#allocation4 + $0x34] sm:$0xf]  ;;  %v4883_v30 = vld [vmem:[#allocation4 + $0x1bc] sm:$0xf] }
 0x118   :  { %2980 = vmatpush.bf16.msra.mxu2 %v4527_v37  ;;  %2970 = vmatpush.bf16.msrb.mxu1 %v4235_v63  ;;  %v4142_v37 = vld [vmem:[#allocation4 + $0x20] sm:$0xf]  ;;  %v4352_v63 = vld [vmem:[#allocation4 + $0x210] sm:$0xf0] }
 0x119   :  { %4594 = vmatmul.msk.bf16.vlgmr.msrb.gmra.mxu0 %vm2869_vm1, %v5244_v33  ;;  %v4143_v50 = vor.u32 %v4844_v38, %v4142_v37  ;;  %v4355_v41 = vor.u32 %v4882_v62, %v4352_v63  ;;  %v4160_v26 = vld [vmem:[#allocation4 + $0x90] sm:$0xf0]  ;;  %v4254_v37 = vld [vmem:[#allocation4 + $0xf0] sm:$0xf]  ;;  %v4166_v63 = vld [vmem:[#allocation4 + $0x38] sm:$0xf] }
 0x11a   :  { %2994 = vmatpush.bf16.msra.mxu3 %v4435_v28  ;;  %3007 = vmatpush.bf16.msra.mxu0 %v4439_v3  ;;  %v4942_v28 = vld [vmem:[#allocation4 + $0x38c] sm:$0xf0]  ;;  %v4454_v3 = vld [vmem:[#allocation4 + $0x278] sm:$0xf] }
 0x11b   :  { %4592 = vmatmul.msk.bf16.vlgmr.msrb.gmra.mxu2 %vm2869_vm1, %v5244_v33  ;;  %v4543_v53 = vor.u32 %v4942_v28, %v4542_v45  ;;  %v5283_v56 = vpop.f32.mrf.mxu3  ;;  %v4455_v10 = vor.u32 %v4919_v4, %v4454_v3  ;;  %v4870_v38 = vld [vmem:[#allocation4 + $0x14c] sm:$0xf0]  ;;  %v4163_v45 = vor.u32 %v4834_v25, %v4160_v26  ;;  %v4566_v3 = vld [vmem:[#allocation4 + $0x348] sm:$0xf]  ;;  %v4835_v25 = vld [vmem:[#allocation4 + $0x3c] sm:$0xf] }
 0x11c   :  { %2981 = vmatpush.bf16.msra.mxu2 %v4431_v55  ;;  %2971 = vmatpush.bf16.msrb.mxu1 %v4139_v15  ;;  %v1743_v55 = vpop.f32.mrf.mxu1  ;;  %v4931_v15 = vld [vmem:[#allocation4 + $0x33c] sm:$0xf]  ;;  %v4255_v48 = vor.u32 %v4870_v38, %v4254_v37  ;;  %v4945_v4 = vld [vmem:[#allocation4 + $0x3a4] sm:$0xf0] }
 0x11d   :  { %v4846_v55 = vld [vmem:[#allocation4 + $0x8c] sm:$0xf0]  ;;  %v4567_v13 = vor.u32 %v4945_v4, %v4566_v3  ;;  %v4168_v26 = vld [vmem:[#allocation4 + $0x98] sm:$0xf0]  ;;  %v4897_v37 = vld [vmem:[#allocation4 + $0x224] sm:$0xf0] }
 0x11e   :  { %2995 = vmatpush.bf16.msra.mxu3 %v4339_v61  ;;  %3008 = vmatpush.bf16.msra.mxu0 %v4343_v18  ;;  %v4347_v61 = vor.u32 %v4881_v43, %v4344_v44  ;;  %v4895_v18 = vld [vmem:[#allocation4 + $0x214] sm:$0xf0]  ;;  %v1793_v22 = vpop.f32.mrf.mxu0 }
 0x11f   :  { %4595 = vmatmul.msk.bf16.vlgmr.msrb.gmra.mxu1 %vm2869_vm1, %v5244_v33  ;;  %v1794_v27 = vadd.f32 %v1793_v22, %v321_v6  ;;  %v4359_v20 = vor.u32 %v4895_v18, %v4358_v17  ;;  %v4871_v43 = vld [vmem:[#allocation4 + $0x154] sm:$0xf0]  ;;  %v4368_v6 = vld [vmem:[#allocation4 + $0x220] sm:$0xf0]  ;;  %v4470_v17 = vld [vmem:[#allocation4 + $0x288] sm:$0xf] }
 0x120   :  { %2982 = vmatpush.bf16.msra.mxu2 %v4335_v5  ;;  %3019 = vmatpush.bf16.msra.mxu1 %v4539_v23  ;;  %v1730_v5 = vpop.f32.mrf.mxu2  ;;  %v4259_v23 = vor.u32 %v4858_v7, %v4256_v9  ;;  %v4859_v7 = vld [vmem:[#allocation4 + $0xfc] sm:$0xf]  ;;  %v4921_v18 = vld [vmem:[#allocation4 + $0x2e4] sm:$0xf0] }
 0x121   :  { %v4264_v9 = vld [vmem:[#allocation4 + $0x158] sm:$0xf0] }
 0x122   :  { %2996 = vmatpush.bf16.msra.mxu3 %v4243_v11  ;;  %3009 = vmatpush.bf16.msra.mxu0 %v4247_v42  ;;  %v4350_v11 = vld [vmem:[#allocation4 + $0x1b0] sm:$0xf]  ;;  %v4262_v42 = vld [vmem:[#allocation4 + $0xf8] sm:$0xf] }
 0x123   :  { %v1782_v21 = vpop.f32.mrf.mxu3  ;;  %v4351_v24 = vor.u32 %v4894_v12, %v4350_v11  ;;  %v4263_v52 = vor.u32 %v4871_v43, %v4262_v42  ;;  %v4920_v11 = vld [vmem:[#allocation4 + $0x2dc] sm:$0xf0]  ;;  %v4836_v42 = vld [vmem:[#allocation4 + $0x44] sm:$0xf] }
 0x124   :  { %2983 = vmatpush.bf16.msra.mxu2 %v4239_v32  ;;  %3020 = vmatpush.bf16.msra.mxu1 %v4443_v47  ;;  %v1806_v29 = vpop.f32.mrf.mxu1  ;;  %v320_v32 = vperm.slane %v5250_v46, 4  ;;  %v4563_v47 = vor.u32 %v4932_v34, %v4560_v35  ;;  %v4267_v21 = vor.u32 %v4859_v7, %v4264_v9  ;;  %v4471_v34 = vor.u32 %v4921_v18, %v4470_v17  ;;  %v4933_v35 = vld [vmem:[#allocation4 + $0x34c] sm:$0xf]  ;;  %v4176_v43 = vld [vmem:[#allocation4 + $0xa0] sm:$0xf0]  ;;  %v5320_v18 = vld [vmem:[#allocation6 + $0x10] sm:$0xff] }
 0x125   :  { %v1807_v39 = vadd.f32 %v1806_v29, %v1794_v27  ;;  %v4366_v27 = vld [vmem:[#allocation4 + $0x1c0] sm:$0xf]  ;;  %v4849_v9 = vld [vmem:[#allocation4 + $0xa4] sm:$0xf0]  ;;  %v4384_v17 = vld [vmem:[#allocation4 + $0x230] sm:$0xf0] }
 0x126   :  { %2997 = vmatpush.bf16.msra.mxu3 %v4147_v36  ;;  %3010 = vmatpush.bf16.msra.mxu0 %v4151_v58  ;;  %v4555_v36 = vor.u32 %v4931_v15, %v4552_v16  ;;  %v4360_v58 = vld [vmem:[#allocation4 + $0x218] sm:$0xf0]  ;;  %v323_v16 = vperm.slane %v5250_v46, 7  ;;  %v4896_v29 = vld [vmem:[#allocation4 + $0x21c] sm:$0xf0] }
 0x127   :  { %2083 = vst [vmem:[%s5449_s6 + $0x68] sm:$0xff] %v1807_v39  ;;  %v4363_v5 = vor.u32 %v4883_v30, %v4360_v58  ;;  %v4171_v39 = vor.u32 %v4835_v25, %v4168_v26  ;;  %v4909_v30 = vld [vmem:[#allocation4 + $0x28c] sm:$0xf]  ;;  %v4278_v58 = vld [vmem:[#allocation4 + $0x108] sm:$0xf] }
 0x128   :  { %2984 = vmatpush.bf16.msra.mxu2 %v4143_v50  ;;  %3021 = vmatpush.bf16.msra.mxu1 %v4347_v61  ;;  %v1767_v44 = vpop.f32.mrf.mxu2  ;;  %v4464_v50 = vld [vmem:[#allocation4 + $0x2e0] sm:$0xf0]  ;;  %v1795_v61 = vpop.f32.mrf.mxu0  ;;  %v4478_v26 = vld [vmem:[#allocation4 + $0x290] sm:$0xf] }
 0x129   :  { %4597 = vmatmul.msk.bf16.vlgmr.msra.gmra.mxu3 %vm2869_vm1, %v5244_v33  ;;  %4598 = vmatmul.msk.bf16.vlgmr.msra.gmra.mxu0 %vm2869_vm1, %v5244_v33  ;;  %v1768_v28 = vadd.f32 %v1767_v44, %v320_v32  ;;  %v4467_v2 = vor.u32 %v4908_v49, %v4464_v50  ;;  %v4934_v44 = vld [vmem:[#allocation4 + $0x354] sm:$0xf]  ;;  %v4872_v49 = vld [vmem:[#allocation4 + $0x15c] sm:$0xf0] }
 0x12a   :  { %3045 = vmatpush.bf16.msrb.mxu3 %v4547_v40  ;;  %3058 = vmatpush.bf16.msrb.mxu0 %v4551_v1  ;;  %v4456_v40 = vld [vmem:[#allocation4 + $0x2d8] sm:$0xf0] }
 0x12b   :  { %4596 = vmatmul.msk.bf16.vlgmr.msra.gmra.mxu2 %vm2869_vm1, %v5244_v33  ;;  %v4459_v51 = vor.u32 %v4907_v54, %v4456_v40  ;;  %v1819_v62 = vpop.f32.mrf.mxu3  ;;  %v4374_v54 = vld [vmem:[#allocation4 + $0x1c8] sm:$0xf]  ;;  %v4367_v40 = vor.u32 %v4896_v29, %v4366_v27  ;;  %v4922_v27 = vld [vmem:[#allocation4 + $0x2ec] sm:$0xf0] }
 0x12c   :  { %3032 = vmatpush.bf16.msrb.mxu2 %v4543_v53  ;;  %3022 = vmatpush.bf16.msra.mxu1 %v4251_v8  ;;  %v4158_v53 = vld [vmem:[#allocation4 + $0x30] sm:$0xf]  ;;  %v1808_v1 = vpop.f32.mrf.mxu1  ;;  %v4167_v8 = vor.u32 %v4847_v0, %v4166_v63  ;;  %v4480_v63 = vld [vmem:[#allocation4 + $0x2f0] sm:$0xf0]  ;;  %v4885_v0 = vld [vmem:[#allocation4 + $0x1cc] sm:$0xf] }
 0x12e   :  { %3046 = vmatpush.bf16.msrb.mxu3 %v4451_v57  ;;  %3059 = vmatpush.bf16.msrb.mxu0 %v4455_v10  ;;  %v1781_v57 = vadd.f32 %v5283_v56, %v1768_v28  ;;  %v4159_v56 = vor.u32 %v4846_v55, %v4158_v53  ;;  %v4462_v10 = vld [vmem:[#allocation4 + $0x280] sm:$0xf]  ;;  %v4472_v53 = vld [vmem:[#allocation4 + $0x2e8] sm:$0xf0] }
 0x12f   :  { %v4463_v22 = vor.u32 %v4920_v11, %v4462_v10  ;;  %v4475_v1 = vor.u32 %v4909_v30, %v4472_v53 }
 0x130   :  { %3033 = vmatpush.bf16.msrb.mxu2 %v4447_v19  ;;  %3023 = vmatpush.bf16.msra.mxu1 %v4155_v31  ;;  %2082 = vst [vmem:[%s5449_s6 + $0x60] sm:$0xff] %v1781_v57  ;;  %v4559_v19 = vor.u32 %v4944_v60, %v4558_v59  ;;  %v1769_v12 = vpop.f32.mrf.mxu2  ;;  %v1858_v32 = vpop.f32.mrf.mxu0  ;;  %v4179_v57 = vor.u32 %v4836_v42, %v4176_v43  ;;  %v4873_v59 = vld [vmem:[#allocation4 + $0x164] sm:$0xf0]  ;;  %v4910_v60 = vld [vmem:[#allocation4 + $0x294] sm:$0xf] }
 0x131   :  { %v4279_v4 = vor.u32 %v4873_v59, %v4278_v58  ;;  %v4483_v10 = vor.u32 %v4910_v60, %v4480_v63  ;;  %v4582_v12 = vld [vmem:[#allocation4 + $0x358] sm:$0xf]  ;;  %v4584_v42 = vld [vmem:[#allocation4 + $0x3b8] sm:$0xf0]  ;;  %v4382_v43 = vld [vmem:[#allocation4 + $0x1d0] sm:$0xf] }
 0x132   :  { %3047 = vmatpush.bf16.msrb.mxu3 %v4355_v41  ;;  %3060 = vmatpush.bf16.msrb.mxu0 %v4359_v20  ;;  %v4884_v41 = vld [vmem:[#allocation4 + $0x1c4] sm:$0xf]  ;;  %v4899_v58 = vld [vmem:[#allocation4 + $0x234] sm:$0xf0]  ;;  %v4911_v59 = vld [vmem:[#allocation4 + $0x29c] sm:$0xf] }
 0x133   :  { %4599 = vmatmul.msk.bf16.vlgmr.msra.gmra.mxu1 %vm2869_vm1, %v5244_v33  ;;  %v4371_v15 = vor.u32 %v4884_v41, %v4368_v6  ;;  %v1821_v31 = vpop.f32.mrf.mxu3  ;;  %v4946_v41 = vld [vmem:[#allocation4 + $0x3ac] sm:$0xf0] }
 0x134   :  { %3034 = vmatpush.bf16.msrb.mxu2 %v4351_v24  ;;  %3071 = vmatpush.bf16.msrb.mxu1 %v4555_v36  ;;  %v4272_v24 = vld [vmem:[#allocation4 + $0x160] sm:$0xf0]  ;;  %v4568_v36 = vld [vmem:[#allocation4 + $0x3a8] sm:$0xf0]  ;;  %v1845_v46 = vpop.f32.mrf.mxu1  ;;  %v325_v31 = vperm.slane %v5320_v18, 1 }
 0x135   :  { %v1846_v38 = vadd.f32 %v1845_v46, %v323_v16  ;;  %v4571_v28 = vor.u32 %v4933_v35, %v4568_v36  ;;  %v4886_v16 = vld [vmem:[#allocation4 + $0x1d4] sm:$0xf]  ;;  %v4486_v36 = vld [vmem:[#allocation4 + $0x298] sm:$0xf]  ;;  %v4874_v63 = vld [vmem:[#allocation4 + $0x16c] sm:$0xf0] }
 0x136   :  { %3048 = vmatpush.bf16.msrb.mxu3 %v4259_v23  ;;  %3061 = vmatpush.bf16.msrb.mxu0 %v4263_v52  ;;  %v4860_v23 = vld [vmem:[#allocation4 + $0x104] sm:$0xf]  ;;  %v4375_v52 = vor.u32 %v4897_v37, %v4374_v54  ;;  %v4387_v29 = vor.u32 %v4886_v16, %v4384_v17  ;;  %v4288_v35 = vld [vmem:[#allocation4 + $0x170] sm:$0xf0]  ;;  %v4923_v46 = vld [vmem:[#allocation4 + $0x2f4] sm:$0xf0] }
 0x137   :  { %v4275_v20 = vor.u32 %v4860_v23, %v4272_v24  ;;  %v1859_v50 = vadd.f32 %v1858_v32, %v1846_v38  ;;  %v4861_v23 = vld [vmem:[#allocation4 + $0x10c] sm:$0xf]  ;;  %v4862_v32 = vld [vmem:[#allocation4 + $0x114] sm:$0xf]  ;;  %v4935_v38 = vld [vmem:[#allocation4 + $0x35c] sm:$0xf] }
 0x138   :  { %3035 = vmatpush.bf16.msrb.mxu2 %v4255_v48  ;;  %3072 = vmatpush.bf16.msrb.mxu1 %v4459_v51  ;;  %v4270_v48 = vld [vmem:[#allocation4 + $0x100] sm:$0xf]  ;;  %v1832_v51 = vpop.f32.mrf.mxu2  ;;  %v1860_v3 = vpop.f32.mrf.mxu0  ;;  %v4280_v24 = vld [vmem:[#allocation4 + $0x168] sm:$0xf0]  ;;  %v4587_v53 = vor.u32 %v4935_v38, %v4584_v42  ;;  %v4851_v16 = vld [vmem:[#allocation4 + $0xb4] sm:$0xf0] }
 0x139   :  { %2085 = vst [vmem:[%s5449_s6 + $0x78] sm:$0xff] %v1859_v50  ;;  %v4837_v54 = vld [vmem:[#allocation4 + $0x4c] sm:$0xf] }
 0x13a   :  { %3049 = vmatpush.bf16.msrb.mxu3 %v4163_v45  ;;  %3062 = vmatpush.bf16.msrb.mxu0 %v4167_v8  ;;  %v1820_v45 = vadd.f32 %v1819_v62, %v322_v14  ;;  %v4271_v62 = vor.u32 %v4872_v49, %v4270_v48  ;;  %v4182_v8 = vld [vmem:[#allocation4 + $0x48] sm:$0xf]  ;;  %v4184_v37 = vld [vmem:[#allocation4 + $0xa8] sm:$0xf0]  ;;  %v324_v48 = vperm.slane %v5320_v18, 0  ;;  %v4487_v49 = vor.u32 %v4923_v46, %v4486_v36 }
 0x13b   :  { %v5318_v7 = vpop.f32.mrf.mxu3  ;;  %v4187_v50 = vor.u32 %v4837_v54, %v4184_v37 }
 0x13c   :  { %3036 = vmatpush.bf16.msrb.mxu2 %v4159_v56  ;;  %3073 = vmatpush.bf16.msrb.mxu1 %v4363_v5  ;;  %v1833_v55 = vadd.f32 %v1832_v51, %v1820_v45  ;;  %v4848_v56 = vld [vmem:[#allocation4 + $0x9c] sm:$0xf0]  ;;  %v4376_v5 = vld [vmem:[#allocation4 + $0x228] sm:$0xf0]  ;;  %v1847_v6 = vpop.f32.mrf.mxu1  ;;  %v4838_v51 = vld [vmem:[#allocation4 + $0x54] sm:$0xf] }
 0x13d   :  { %4601 = vmatmul.msk.bf16.vlgmr.msrb.gmra.mxu3 %vm2869_vm1, %v5244_v33  ;;  %4602 = vmatmul.msk.bf16.vlgmr.msrb.gmra.mxu0 %vm2869_vm1, %v5244_v33  ;;  %v4379_v14 = vor.u32 %v4885_v0, %v4376_v5  ;;  %v4294_v5 = vld [vmem:[#allocation4 + $0x118] sm:$0xf] }
 0x13e   :  { %3097 = vmatpush.bf16.msra.mxu3 %v4563_v47  ;;  %3110 = vmatpush.bf16.msra.mxu0 %v4567_v13  ;;  %v4576_v47 = vld [vmem:[#allocation4 + $0x3b0] sm:$0xf0]  ;;  %2084 = vst [vmem:[%s5449_s6 + $0x70] sm:$0xff] %v1833_v55  ;;  %v4947_v13 = vld [vmem:[#allocation4 + $0x3b4] sm:$0xf0] }
 0x13f   :  { %4600 = vmatmul.msk.bf16.vlgmr.msrb.gmra.mxu2 %vm2869_vm1, %v5244_v33  ;;  %v4579_v61 = vor.u32 %v4934_v44, %v4576_v47  ;;  %v4583_v25 = vor.u32 %v4947_v13, %v4582_v12  ;;  %v4898_v44 = vld [vmem:[#allocation4 + $0x22c] sm:$0xf0]  ;;  %v4291_v47 = vor.u32 %v4862_v32, %v4288_v35  ;;  %v4200_v32 = vld [vmem:[#allocation4 + $0xb8] sm:$0xf0] }
 0x140   :  { %3084 = vmatpush.bf16.msra.mxu2 %v4559_v19  ;;  %3074 = vmatpush.bf16.msrb.mxu1 %v4267_v21  ;;  %v4574_v19 = vld [vmem:[#allocation4 + $0x350] sm:$0xf]  ;;  %v1834_v21 = vpop.f32.mrf.mxu2  ;;  %v4383_v55 = vor.u32 %v4898_v44, %v4382_v43  ;;  %v329_v43 = vperm.slane %v5320_v18, 5 }
 0x141   :  { %v4863_v21 = vld [vmem:[#allocation4 + $0x11c] sm:$0xf] }
 0x142   :  { %3098 = vmatpush.bf16.msra.mxu3 %v4467_v2  ;;  %3111 = vmatpush.bf16.msra.mxu0 %v4471_v34  ;;  %v4174_v2 = vld [vmem:[#allocation4 + $0x40] sm:$0xf]  ;;  %v4283_v34 = vor.u32 %v4861_v23, %v4280_v24  ;;  %v327_v23 = vperm.slane %v5320_v18, 3 }
 0x143   :  { %v4175_v11 = vor.u32 %v4848_v56, %v4174_v2 }
 0x144   :  { %3085 = vmatpush.bf16.msra.mxu2 %v4463_v22  ;;  %3075 = vmatpush.bf16.msrb.mxu1 %v4171_v39  ;;  %v4183_v22 = vor.u32 %v4849_v9, %v4182_v8  ;;  %v1886_v39 = vpop.f32.mrf.mxu3  ;;  %v4392_v9 = vld [vmem:[#allocation4 + $0x238] sm:$0xf0] }
 0x146   :  { %3099 = vmatpush.bf16.msra.mxu3 %v4371_v15  ;;  %3112 = vmatpush.bf16.msra.mxu0 %v4375_v52  ;;  %v4575_v15 = vor.u32 %v4946_v41, %v4574_v19  ;;  %v4192_v52 = vld [vmem:[#allocation4 + $0xb0] sm:$0xf0]  ;;  %v4875_v19 = vld [vmem:[#allocation4 + $0x174] sm:$0xf0]  ;;  %v4887_v41 = vld [vmem:[#allocation4 + $0x1dc] sm:$0xf] }
 0x147   :  { %4603 = vmatmul.msk.bf16.vlgmr.msrb.gmra.mxu1 %vm2869_vm1, %v5244_v33  ;;  %v4295_v12 = vor.u32 %v4875_v19, %v4294_v5  ;;  %v4395_v13 = vor.u32 %v4887_v41, %v4392_v9 }
 0x148   :  { %3086 = vmatpush.bf16.msra.mxu2 %v4367_v40  ;;  %3123 = vmatpush.bf16.msra.mxu1 %v4571_v28  ;;  %v1897_v40 = vpop.f32.mrf.mxu0  ;;  %v1910_v28 = vpop.f32.mrf.mxu1 }
 0x149   :  { %v1898_v45 = vadd.f32 %v1897_v40, %v325_v31  ;;  %v4839_v31 = vld [vmem:[#allocation4 + $0x5c] sm:$0xf] }
 0x14a   :  { %3100 = vmatpush.bf16.msra.mxu3 %v4275_v20  ;;  %3113 = vmatpush.bf16.msra.mxu0 %v4279_v4  ;;  %v4479_v20 = vor.u32 %v4922_v27, %v4478_v26  ;;  %v1871_v60 = vpop.f32.mrf.mxu2  ;;  %v4203_v46 = vor.u32 %v4839_v31, %v4200_v32 }
 0x14b   :  { %v1911_v30 = vadd.f32 %v1910_v28, %v1898_v45  ;;  %v1872_v0 = vadd.f32 %v1871_v60, %v324_v48 }
 0x14c   :  { %3087 = vmatpush.bf16.msra.mxu2 %v4271_v62  ;;  %3124 = vmatpush.bf16.msra.mxu1 %v4475_v1  ;;  %v4286_v62 = vld [vmem:[#allocation4 + $0x110] sm:$0xf]  ;;  %v4195_v1 = vor.u32 %v4838_v51, %v4192_v52  ;;  %v1923_v8 = vpop.f32.mrf.mxu3 }
 0x14d   :  { %2087 = vst [vmem:[%s5449_s6 + $0x88] sm:$0xff] %v1911_v30  ;;  %v1885_v56 = vadd.f32 %v5318_v7, %v1872_v0  ;;  %v4287_v4 = vor.u32 %v4874_v63, %v4286_v62 }
 0x14e   :  { %3101 = vmatpush.bf16.msra.mxu3 %v4179_v57  ;;  %3114 = vmatpush.bf16.msra.mxu0 %v4183_v22  ;;  %v4390_v57 = vld [vmem:[#allocation4 + $0x1d8] sm:$0xf]  ;;  %v4296_v22 = vld [vmem:[#allocation4 + $0x178] sm:$0xf0] }
 0x14f   :  { %v4391_v2 = vor.u32 %v4899_v58, %v4390_v57  ;;  %2086 = vst [vmem:[%s5449_s6 + $0x80] sm:$0xff] %v1885_v56  ;;  %v4299_v26 = vor.u32 %v4863_v21, %v4296_v22  ;;  %v330_v58 = vperm.slane %v5320_v18, 6  ;;  %v2215_v56 = vld [vmem:[#allocation7] sm:$0xff] }
 0x150   :  { %3088 = vmatpush.bf16.msra.mxu2 %v4175_v11  ;;  %3125 = vmatpush.bf16.msra.mxu1 %v4379_v14  ;;  %v1899_v6 = vpop.f32.mrf.mxu0  ;;  %v4850_v11 = vld [vmem:[#allocation4 + $0xac] sm:$0xf0]  ;;  %v1912_v7 = vpop.f32.mrf.mxu1  ;;  %v2224_v9 = vperm.slane %v2215_v56, 3  ;;  %v2225_v32 = vperm.slane %v2215_v56, 4 }
 0x151   :  { %4605 = vmatmul.msk.bf16.vlgmr.msra.gmra.mxu3 %vm2869_vm1, %v5244_v33  ;;  %4606 = vmatmul.msk.bf16.vlgmr.msra.gmra.mxu0 %vm2869_vm1, %v5244_v33 }
 0x152   :  { %3149 = vmatpush.bf16.msrb.mxu3 %v4579_v61  ;;  %3162 = vmatpush.bf16.msrb.mxu0 %v4583_v25  ;;  %v4488_v61 = vld [vmem:[#allocation4 + $0x2f8] sm:$0xf0]  ;;  %v1873_v17 = vpop.f32.mrf.mxu2  ;;  %v326_v25 = vperm.slane %v5320_v18, 2 }
 0x153   :  { %4604 = vmatmul.msk.bf16.vlgmr.msra.gmra.mxu2 %vm2869_vm1, %v5244_v33  ;;  %v4491_v3 = vor.u32 %v4911_v59, %v4488_v61  ;;  %v331_v59 = vperm.slane %v5320_v18, 7  ;;  %v2226_v17 = vperm.slane %v2215_v56, 5 }
 0x154   :  { %3136 = vmatpush.bf16.msrb.mxu2 %v4575_v15  ;;  %3126 = vmatpush.bf16.msra.mxu1 %v4283_v34  ;;  %v4198_v15 = vld [vmem:[#allocation4 + $0x58] sm:$0xf]  ;;  %v1925_v27 = vpop.f32.mrf.mxu3  ;;  %v1924_v36 = vadd.f32 %v1923_v8, %v326_v25  ;;  %v2223_v8 = vperm.slane %v2215_v56, 2 }
 0x155   :  { %v4199_v24 = vor.u32 %v4851_v16, %v4198_v15  ;;  %v2228_v27 = vperm.slane %v2215_v56, 7 }
 0x156   :  { %3150 = vmatpush.bf16.msrb.mxu3 %v4483_v10  ;;  %3163 = vmatpush.bf16.msrb.mxu0 %v4487_v49  ;;  %v4190_v10 = vld [vmem:[#allocation4 + $0x50] sm:$0xf] }
 0x157   :  { %v4191_v14 = vor.u32 %v4850_v11, %v4190_v10 }
 0x158   :  { %3137 = vmatpush.bf16.msrb.mxu2 %v4479_v20  ;;  %3127 = vmatpush.bf16.msra.mxu1 %v4187_v50  ;;  %v1949_v34 = vpop.f32.mrf.mxu1 }
 0x159   :  { %v1950_v35 = vadd.f32 %v1949_v34, %v327_v23 }
 0x15a   :  { %3151 = vmatpush.bf16.msrb.mxu3 %v4387_v29  ;;  %3164 = vmatpush.bf16.msrb.mxu0 %v4391_v2  ;;  %v1962_v29 = vpop.f32.mrf.mxu0  ;;  %v1936_v54 = vpop.f32.mrf.mxu2 }
 0x15b   :  { %4607 = vmatmul.msk.bf16.vlgmr.msra.gmra.mxu1 %vm2869_vm1, %v5244_v33  ;;  %v1963_v20 = vadd.f32 %v1962_v29, %v1950_v35  ;;  %v1937_v37 = vadd.f32 %v1936_v54, %v1924_v36 }
 0x15c   :  { %3175 = vmatpush.bf16.msrb.mxu1 %v4587_v53  ;;  %3138 = vmatpush.bf16.msrb.mxu2 %v4383_v55  ;;  %v1988_v40 = vpop.f32.mrf.mxu3 }
 0x15d   :  { %2089 = vst [vmem:[%s5449_s6 + $0x98] sm:$0xff] %v1963_v20  ;;  %v2216_v20 = vld [vmem:[#allocation7 + $0x8] sm:$0xff] }
 0x15e   :  { %3152 = vmatpush.bf16.msrb.mxu3 %v4291_v47  ;;  %3165 = vmatpush.bf16.msrb.mxu0 %v4295_v12  ;;  %2088 = vst [vmem:[%s5449_s6 + $0x90] sm:$0xff] %v1937_v37  ;;  %v328_v47 = vperm.slane %v5320_v18, 4  ;;  %v2221_v12 = vperm.slane %v2215_v56, 0  ;;  %v2230_v37 = vperm.slane %v2216_v20, 1 }
 0x160   :  { %3176 = vmatpush.bf16.msrb.mxu1 %v4491_v3  ;;  %3139 = vmatpush.bf16.msrb.mxu2 %v4287_v4  ;;  %v1951_v39 = vpop.f32.mrf.mxu1  ;;  %v2222_v4 = vperm.slane %v2215_v56, 1 }
 0x162   :  { %3153 = vmatpush.bf16.msrb.mxu3 %v4195_v1  ;;  %3166 = vmatpush.bf16.msrb.mxu0 %v4199_v24  ;;  %v1964_v38 = vpop.f32.mrf.mxu0  ;;  %v1938_v42 = vpop.f32.mrf.mxu2 }
 0x164   :  { %3177 = vmatpush.bf16.msrb.mxu1 %v4395_v13  ;;  %3140 = vmatpush.bf16.msrb.mxu2 %v4191_v14  ;;  %v1990_v48 = vpop.f32.mrf.mxu3 }
 0x165   :  { %4609 = vmatmul.msk.bf16.vlgmr.msrb.gmra.mxu3 %vm2869_vm1, %v5244_v33  ;;  %v4954_v33 = vld [vmem:[%s5444_s1] sm:$0xf] }
 0x166   :  { %4610 = vmatmul.msk.bf16.vlgmr.msrb.gmra.mxu0 %vm2869_vm1, %v4954_v33 }
 0x167   :  { %4608 = vmatmul.msk.bf16.vlgmr.msrb.gmra.mxu2 %vm2869_vm1, %v4954_v33 }
 0x168   :  { %3178 = vmatpush.bf16.msrb.mxu1 %v4299_v26  ;;  %v2014_v45 = vpop.f32.mrf.mxu1  ;;  %v2227_v26 = vperm.slane %v2215_v56, 6 }
 0x16a   :  { %v2001_v44 = vpop.f32.mrf.mxu0 }
 0x16b   :  { %v2002_v28 = vadd.f32 %v2001_v44, %v329_v43  ;;  %v2231_v43 = vperm.slane %v2216_v20, 2 }
 0x16c   :  { %3179 = vmatpush.bf16.msrb.mxu1 %v4203_v46 }
 0x16d   :  { %v2015_v49 = vadd.f32 %v2014_v45, %v2002_v28  ;;  %v2232_v45 = vperm.slane %v2216_v20, 3 }
 0x16e   :  { %v1975_v50 = vpop.f32.mrf.mxu2 }
 0x16f   :  { %4611 = vmatmul.msk.bf16.vlgmr.msrb.gmra.mxu1 %vm2869_vm1, %v4954_v33  ;;  %2091 = vst [vmem:[%s5449_s6 + $0xa8] sm:$0xff] %v2015_v49  ;;  %v1976_v51 = vadd.f32 %v1975_v50, %v328_v47  ;;  %v2229_v47 = vperm.slane %v2216_v20, 0 }
 0x170   :  { %v2016_v53 = vpop.f32.mrf.mxu1  ;;  %v2027_v55 = vpop.f32.mrf.mxu3 }
 0x171   :  { %v1989_v52 = vadd.f32 %v1988_v40, %v1976_v51  ;;  %v2028_v62 = vadd.f32 %v2027_v55, %v330_v58  ;;  %v2234_v53 = vperm.slane %v2216_v20, 5 }
 0x172   :  { %v2003_v30 = vpop.f32.mrf.mxu0 }
 0x173   :  { %2090 = vst [vmem:[%s5449_s6 + $0xa0] sm:$0xff] %v1989_v52 }
 0x176   :  { %v1977_v57 = vpop.f32.mrf.mxu2 }
 0x178   :  { %v2053_v60 = vpop.f32.mrf.mxu1  ;;  %v2029_v0 = vpop.f32.mrf.mxu3 }
 0x179   :  { %v2054_v63 = vadd.f32 %v2053_v60, %v331_v59  ;;  %v2235_v60 = vperm.slane %v2216_v20, 6  ;;  %v2233_v0 = vperm.slane %v2216_v20, 4 }
 0x17a   :  { %v2066_v61 = vpop.f32.mrf.mxu0 }
 0x17b   :  { %v2067_v1 = vadd.f32 %v2066_v61, %v2054_v63  ;;  %v2236_v63 = vperm.slane %v2216_v20, 7 }
 0x17d   :  { %2093 = vst [vmem:[%s5449_s6 + $0xb8] sm:$0xff] %v2067_v1 }
 0x17e   :  { %v2040_v2 = vpop.f32.mrf.mxu2 }
 0x17f   :  { %v2041_v3 = vadd.f32 %v2040_v2, %v2028_v62 }
 0x180   :  { %v2055_v5 = vpop.f32.mrf.mxu1 }
 0x181   :  { %2092 = vst [vmem:[%s5449_s6 + $0xb0] sm:$0xff] %v2041_v3  ;;  %v2217_v5 = vld [vmem:[#allocation7 + $0x10] sm:$0xff] }
 0x182   :  { %v2068_v18 = vpop.f32.mrf.mxu0 }
 0x184   :  { %v2895_v19 = vpop.f32.mrf.mxu3 }
 0x185   :  { %v2896_v41 = vadd.f32 %v2895_v19, %v2222_v4  ;;  %v2238_v19 = vperm.slane %v2217_v5, 1 }
 0x186   :  { %v2042_v6 = vpop.f32.mrf.mxu2 }
 0x187   :  { %3186 = vst [vmem:[%s5450_s7 + $0x8] sm:$0xff] %v2896_v41 }
 0x188   :  { %v2921_v7 = vpop.f32.mrf.mxu1 }
 0x189   :  { %v2922_v13 = vadd.f32 %v2921_v7, %v2224_v9  ;;  %v2239_v9 = vperm.slane %v2217_v5, 2 }
 0x18a   :  { %v2908_v10 = vpop.f32.mrf.mxu0 }
 0x18b   :  { %v2909_v11 = vadd.f32 %v2908_v10, %v2223_v8  ;;  %3188 = vst [vmem:[%s5450_s7 + $0x18] sm:$0xff] %v2922_v13  ;;  %v2240_v13 = vperm.slane %v2217_v5, 3 }
 0x18c   :  { %v2897_v14 = vpop.f32.mrf.mxu3 }
 0x18d   :  { %3187 = vst [vmem:[%s5450_s7 + $0x10] sm:$0xff] %v2909_v11 }
 0x18e   :  { %v2882_v15 = vpop.f32.mrf.mxu2 }
 0x18f   :  { %v2883_v16 = vadd.f32 %v2882_v15, %v2221_v12  ;;  %v2237_v12 = vperm.slane %v2217_v5, 0 }
 0x190   :  { %v2923_v22 = vpop.f32.mrf.mxu1 }
 0x191   :  { %3185 = vst [vmem:[%s5450_s7] sm:$0xff] %v2883_v16 }
 0x192   :  { %v2910_v21 = vpop.f32.mrf.mxu0 }
 0x196   :  { %v2884_v25 = vpop.f32.mrf.mxu2 }
 0x198   :  { %v2947_v23 = vpop.f32.mrf.mxu3 }
 0x199   :  { %v2948_v24 = vadd.f32 %v2947_v23, %v2226_v17  ;;  %v2242_v23 = vperm.slane %v2217_v5, 5 }
 0x19a   :  { %v2960_v29 = vpop.f32.mrf.mxu0 }
 0x19b   :  { %3190 = vst [vmem:[%s5450_s7 + $0x28] sm:$0xff] %v2948_v24  ;;  %v2961_v31 = vadd.f32 %v2960_v29, %v2227_v26 }
 0x19c   :  { %v2973_v34 = vpop.f32.mrf.mxu1 }
 0x19d   :  { %3191 = vst [vmem:[%s5450_s7 + $0x30] sm:$0xff] %v2961_v31  ;;  %v2974_v33 = vadd.f32 %v2973_v34, %v2228_v27  ;;  %v2243_v27 = vperm.slane %v2217_v5, 6 }
 0x19e   :  { %v2934_v36 = vpop.f32.mrf.mxu2 }
 0x19f   :  { %3192 = vst [vmem:[%s5450_s7 + $0x38] sm:$0xff] %v2974_v33  ;;  %v2935_v46 = vadd.f32 %v2934_v36, %v2225_v32  ;;  %v2241_v32 = vperm.slane %v2217_v5, 4 }
 0x1a0   :  { %v2949_v35 = vpop.f32.mrf.mxu3 }
 0x1a1   :  { %3189 = vst [vmem:[%s5450_s7 + $0x20] sm:$0xff] %v2935_v46  ;;  %v2244_v35 = vperm.slane %v2217_v5, 7 }
 0x1a2   :  { %v2962_v54 = vpop.f32.mrf.mxu0 }
 0x1a4   :  { %v2975_v38 = vpop.f32.mrf.mxu1 }
 0x1a6   :  { %v2936_v40 = vpop.f32.mrf.mxu2 }
 0x1aa   :  { %v3012_v44 = vpop.f32.mrf.mxu0 }
 0x1ab   :  { %v3013_v28 = vadd.f32 %v3012_v44, %v2231_v43 }
 0x1ac   :  { %v2999_v39 = vpop.f32.mrf.mxu3 }
 0x1ad   :  { %v3000_v42 = vadd.f32 %v2999_v39, %v2230_v37  ;;  %3195 = vst [vmem:[%s5450_s7 + $0x50] sm:$0xff] %v3013_v28 }
 0x1ae   :  { %v2986_v51 = vpop.f32.mrf.mxu2 }
 0x1af   :  { %3194 = vst [vmem:[%s5450_s7 + $0x48] sm:$0xff] %v3000_v42  ;;  %v2987_v52 = vadd.f32 %v2986_v51, %v2229_v47 }
 0x1b0   :  { %v3025_v48 = vpop.f32.mrf.mxu1 }
 0x1b1   :  { %v3026_v50 = vadd.f32 %v3025_v48, %v2232_v45  ;;  %3193 = vst [vmem:[%s5450_s7 + $0x40] sm:$0xff] %v2987_v52 }
 0x1b2   :  { %v3014_v30 = vpop.f32.mrf.mxu0 }
 0x1b3   :  { %3196 = vst [vmem:[%s5450_s7 + $0x58] sm:$0xff] %v3026_v50 }
 0x1b4   :  { %v3001_v49 = vpop.f32.mrf.mxu3 }
 0x1b6   :  { %v2988_v57 = vpop.f32.mrf.mxu2 }
 0x1b8   :  { %v3027_v55 = vpop.f32.mrf.mxu1 }
 0x1ba   :  { %v3064_v61 = vpop.f32.mrf.mxu0 }
 0x1bb   :  { %v3065_v62 = vadd.f32 %v3064_v61, %v2235_v60 }
 0x1bd   :  { %3199 = vst [vmem:[%s5450_s7 + $0x70] sm:$0xff] %v3065_v62 }
 0x1c0   :  { %v3051_v58 = vpop.f32.mrf.mxu3 }
 0x1c1   :  { %v3052_v59 = vadd.f32 %v3051_v58, %v2234_v53 }
 0x1c2   :  { %v3038_v2 = vpop.f32.mrf.mxu2  ;;  %v3066_v18 = vpop.f32.mrf.mxu0 }
 0x1c3   :  { %3198 = vst [vmem:[%s5450_s7 + $0x68] sm:$0xff] %v3052_v59  ;;  %v3039_v3 = vadd.f32 %v3038_v2, %v2233_v0 }
 0x1c4   :  { %v3077_v1 = vpop.f32.mrf.mxu1 }
 0x1c5   :  { %v3078_v56 = vadd.f32 %v3077_v1, %v2236_v63  ;;  %3197 = vst [vmem:[%s5450_s7 + $0x60] sm:$0xff] %v3039_v3 }
 0x1c7   :  { %3200 = vst [vmem:[%s5450_s7 + $0x78] sm:$0xff] %v3078_v56 }
 0x1c8   :  { %v3053_v4 = vpop.f32.mrf.mxu3 }
 0x1ca   :  { %v3040_v6 = vpop.f32.mrf.mxu2 }
 0x1cc   :  { %v3079_v41 = vpop.f32.mrf.mxu1 }
 0x1ce   :  { %v3116_v11 = vpop.f32.mrf.mxu0 }
 0x1cf   :  { %v3117_v7 = vadd.f32 %v3116_v11, %v2239_v9 }
 0x1d1   :  { %3203 = vst [vmem:[%s5450_s7 + $0x90] sm:$0xff] %v3117_v7 }
 0x1d4   :  { %v3103_v8 = vpop.f32.mrf.mxu3 }
 0x1d5   :  { %v3104_v10 = vadd.f32 %v3103_v8, %v2238_v19 }
 0x1d6   :  { %v3090_v14 = vpop.f32.mrf.mxu2  ;;  %v3118_v22 = vpop.f32.mrf.mxu0 }
 0x1d7   :  { %3202 = vst [vmem:[%s5450_s7 + $0x88] sm:$0xff] %v3104_v10  ;;  %v3091_v15 = vadd.f32 %v3090_v14, %v2237_v12 }
 0x1d8   :  { %v3129_v16 = vpop.f32.mrf.mxu1 }
 0x1d9   :  { %v3130_v21 = vadd.f32 %v3129_v16, %v2240_v13  ;;  %3201 = vst [vmem:[%s5450_s7 + $0x80] sm:$0xff] %v3091_v15 }
 0x1db   :  { %3204 = vst [vmem:[%s5450_s7 + $0x98] sm:$0xff] %v3130_v21 }
 0x1dc   :  { %v3105_v17 = vpop.f32.mrf.mxu3 }
 0x1de   :  { %v3092_v24 = vpop.f32.mrf.mxu2 }
 0x1e0   :  { %v3131_v25 = vpop.f32.mrf.mxu1 }
 0x1e3   :  { %v3168_v31 = vpop.f32.mrf.mxu0 }
 0x1e4   :  { %v3169_v34 = vadd.f32 %v3168_v31, %v2243_v27 }
 0x1e6   :  { %3207 = vst [vmem:[%s5450_s7 + $0xb0] sm:$0xff] %v3169_v34 }
 0x1e8   :  { %v3155_v26 = vpop.f32.mrf.mxu3 }
 0x1e9   :  { %v3156_v29 = vadd.f32 %v3155_v26, %v2242_v23 }
 0x1ea   :  { %v3142_v33 = vpop.f32.mrf.mxu2 }
 0x1eb   :  { %3206 = vst [vmem:[%s5450_s7 + $0xa8] sm:$0xff] %v3156_v29  ;;  %v3143_v36 = vadd.f32 %v3142_v33, %v2241_v32  ;;  %v3170_v37 = vpop.f32.mrf.mxu0 }
 0x1ec   :  { %v3181_v20 = vpop.f32.mrf.mxu1 }
 0x1ed   :  { %3205 = vst [vmem:[%s5450_s7 + $0xa0] sm:$0xff] %v3143_v36  ;;  %v3182_v54 = vadd.f32 %v3181_v20, %v2244_v35 }
 0x1ef   :  { %3208 = vst [vmem:[%s5450_s7 + $0xb8] sm:$0xff] %v3182_v54 }
 0x1f0   :  { %v3157_v46 = vpop.f32.mrf.mxu3 }
 0x1f2   :  { %v3144_v38 = vpop.f32.mrf.mxu2 }
 0x1f4   :  { %v3183_v39 = vpop.f32.mrf.mxu1 }
 0x1f5   :  { %3217 = vsyncpa [#allocation3], 1 }
 0x1f6   :  { %3218 = vsyncpa [#allocation5], 1 }
 0x1f7   :  { %3219 = vsyncpa [#allocation8], 1 }

// kernel: bfm2mesh_forward.4
= control target key start
LH: loop header
LB: loop body
LE: loop exit
PB: predicated region body
PF: predicated region fallthrough
CT: control target
= control target key end

     0   :  { %s515_s12 = smov 0   ;;  %s517_s13 = smov 0   ;;  %s560_s0 = inlined_call_operand.vmem [shape: f32[2,3,8,128], index: 0, kind: input, shape index: {}]   ;;  %s561_s1 = inlined_call_operand.vmem [shape: f32[2,3,8,128], index: 1, kind: input, shape index: {}]   ;;  %s562_s2 = inlined_call_operand.vmem [shape: f32[2,3,8,128], index: 2, kind: input, shape index: {}]   ;;  %s563_s3 = inlined_call_operand.vmem [shape: f32[2,3,8,128], index: 3, kind: output, shape index: {}]  }
   0x1   :  { %s519_s14 = smov 0  }
   0x2 LB: > { %s25_s15 = sadd.s32 1, %s489_s13  ;;  %p435_p0 = scmp.ge.s32.totalorder %s493_s14, 1  ;;  %s493_s14 = sphi %s519_s14, %s13_s14   ;;  %s489_s13 = sphi %s517_s13, %s565_s13   ;;  %s485_s12 = sphi %s515_s12, %s564_s12  }
   0x3   : > { %p27_p1 = scmp.ge.s32.totalorder %s25_s15, 2  ;;  %p186_p2 = scmp.lt.s32.totalorder %s493_s14, 3 }
   0x5   : > { %s567_s15 = smov (%p27_p1, %s25_s15), 0  ;;  %p187_p3 = pnand %p435_p0, %p186_p2 }
   0x6   : > { %p232_p4 = scmp.lt.s32.totalorder (!%p187_p3), %s485_s12, 1 }
   0x7   : > { %190 = sbr.rel (%p187_p3) target bundleno = 56 (0x38), region = 32 }
   0xc   : > { %s569_s12 = smov (!%p232_p4, %s485_s12), 1 }
   0xd   : > { %s533_s16 = smul.u32 24, %s569_s12 }
   0xf   : > { %s239_s19 = scalar_lea.vmem %s560_s0, %s533_s16  ;;  %s247_s22 = scalar_lea.vmem %s561_s1, %s533_s16 }
  0x10   : > { %s255_s25 = scalar_lea.vmem %s562_s2, %s533_s16  ;;  %v264_v0 = vld [vmem:[%s239_s19] sm:$0xff]  ;;  %v265_v1 = vld [vmem:[%s239_s19 + $0x8] sm:$0xff]  ;;  %v266_v2 = vld [vmem:[%s239_s19 + $0x10] sm:$0xff]  ;;  %s263_s28 = scalar_lea.vmem %s563_s3, %s533_s16 }
  0x11   : > { %v267_v3 = vld [vmem:[%s247_s22] sm:$0xff]  ;;  %v268_v4 = vld [vmem:[%s247_s22 + $0x8] sm:$0xff]  ;;  %v269_v5 = vld [vmem:[%s247_s22 + $0x10] sm:$0xff] }
  0x12   : > { %v270_v6 = vsub.f32 %v264_v0, %v267_v3  ;;  %v271_v7 = vsub.f32 %v265_v1, %v268_v4  ;;  %v272_v8 = vsub.f32 %v266_v2, %v269_v5  ;;  %v273_v9 = vld [vmem:[%s255_s25] sm:$0xff]  ;;  %v274_v10 = vld [vmem:[%s255_s25 + $0x8] sm:$0xff]  ;;  %v275_v11 = vld [vmem:[%s255_s25 + $0x10] sm:$0xff] }
  0x13   : > { %v276_v12 = vsub.f32 %v267_v3, %v273_v9  ;;  %v277_v13 = vsub.f32 %v268_v4, %v274_v10  ;;  %v278_v14 = vsub.f32 %v269_v5, %v275_v11 }
  0x15   : > { %v279_v15 = vmul.f32 %v278_v14, %v271_v7  ;;  %v280_v16 = vmul.f32 %v277_v13, %v272_v8  ;;  %v282_v17 = vmul.f32 %v276_v12, %v272_v8  ;;  %v283_v18 = vmul.f32 %v278_v14, %v270_v6 }
  0x16   : > { %v285_v19 = vmul.f32 %v277_v13, %v270_v6  ;;  %v286_v20 = vmul.f32 %v276_v12, %v271_v7 }
  0x17   : > { %v281_v21 = vsub.f32 %v279_v15, %v280_v16  ;;  %v284_v22 = vsub.f32 %v282_v17, %v283_v18 }
  0x18   : > { %v287_v23 = vsub.f32 %v285_v19, %v286_v20 }
  0x19   : > { %v288_v24 = vmul.f32 %v281_v21, %v281_v21  ;;  %v289_v25 = vmul.f32 %v284_v22, %v284_v22 }
  0x1a   : > { %v291_v26 = vmul.f32 %v287_v23, %v287_v23 }
  0x1b   : > { %v290_v27 = vadd.f32 %v289_v25, %v288_v24 }
  0x1d   : > { %v292_v28 = vadd.f32 %v291_v26, %v290_v27 }
  0x1f   : > { %v293_v29 = vmax.f32 %v292_v28, 1e-24 }
  0x21   : > { %469 = vrsqrt.f32 %v293_v29  ;;  %vm300_vm0 = vweird.f32 %v293_v29 }
  0x27   : > { %v470_v30 = vpop.eup %469 }
  0x28   : > { %v295_v31 = vmul.f32 %v470_v30, %v293_v29  ;;  %vm301_vm1 = vweird.f32 %v470_v30 }
  0x29   : > { %vm302_vm2 = vmor %vm300_vm0, %vm301_vm1 }
  0x2a   : > { %v296_v32 = vmul.f32 %v470_v30, %v295_v31 }
  0x2c   : > { %v297_v33 = vmul.f32 0.5, %v296_v32 }
  0x2e   : > { %v298_v34 = vsub.f32 1.5, %v297_v33 }
  0x30   : > { %v299_v35 = vmul.f32 %v470_v30, %v298_v34 }
  0x32   : > { %v303_v36 = vsel %vm302_vm2, %v470_v30, %v299_v35 }
  0x33   : > { %v304_v37 = vmul.f32 %v303_v36, %v281_v21  ;;  %v306_v38 = vmul.f32 %v303_v36, %v284_v22  ;;  %v309_v39 = vmul.f32 %v303_v36, %v287_v23 }
  0x35   : > { %305 = vst [vmem:[%s263_s28] sm:$0xff] %v304_v37 }
  0x36   : > { %440 = vst [vmem:[%s263_s28 + $0x8] sm:$0xff] %v306_v38 }
  0x37   : > { %441 = vst [vmem:[%s263_s28 + $0x10] sm:$0xff] %v309_v39 }
  0x38 PF: > { %s13_s14 = sadd.s32 1, %s493_s14   ;;  %s564_s12 = smov %s489_s13 }
  0x39   : > { %p10_p5 = scmp.ge.s32.totalorder %s13_s14, 4   ;;  %s565_s13 = smov %s567_s15 }
  0x3b   :  { %12 = sbr.rel (!%p10_p5) target bundleno = 2 (0x2), region = 70 }

// kernel: bfm2mesh_forward.5
= control target key start
LH: loop header
LB: loop body
LE: loop exit
PB: predicated region body
PF: predicated region fallthrough
CT: control target
= control target key end

     0   :  { %s1408_s0 = inlined_call_operand.vmem [shape: f32[2,3,8,128], index: 0, kind: input, shape index: {}]   ;;  %s1409_s1 = inlined_call_operand.vmem [shape: f32[2,3,8,128], index: 1, kind: input, shape index: {}]   ;;  %s1410_s2 = inlined_call_operand.vmem [shape: f32[2,3,8,128], index: 2, kind: input, shape index: {}]   ;;  %s1411_s3 = inlined_call_operand.vmem [shape: f32[2,9], index: 3, kind: input, shape index: {}]   ;;  %s1412_s4 = inlined_call_operand.vmem [shape: f32[2,3], index: 4, kind: input, shape index: {}]   ;;  %s1413_s5 = inlined_call_operand.vmem [shape: f32[2,27], index: 5, kind: input, shape index: {}]   ;;  %s1414_s6 = inlined_call_operand.vmem [shape: f32[2,3,8,128], index: 6, kind: output, shape index: {0}]   ;;  %s1415_s7 = inlined_call_operand.vmem [shape: f32[2,3,8,128], index: 7, kind: output, shape index: {1}]  }
   0x1   :  { %1418 = sst [smem:[#allocation12_spill]] %s1408_s0 }
   0x2   :  { %1419 = sst [smem:[#allocation13_spill]] %s1410_s2 }
   0x3   :  { %1420 = sst [smem:[#allocation14_spill]] %s1411_s3 }
   0x4   :  { %1421 = sst [smem:[#allocation15_spill]] %s1412_s4 }
   0x5   :  { %1422 = sst [smem:[#allocation16_spill]] %s1413_s5 }
   0x6   :  { %1423 = sst [smem:[#allocation17_spill]] %s1414_s6 }
   0x7   :  { %13 = vsyncpa [#allocation3], 0 }
   0x8   :  { %14 = vsyncpa [#allocation5], 0  ;;  %s1098_s24 = smov 0   ;;  %s1100_s25 = smov 0  }
   0x9   :  { %s1102_s26 = smov 0  }
   0xa LB: > { %1424 = sst [smem:[#allocation9_spill]] %s1049_s25  ;;  %s896_s30 = sadd.s32 4294967295, %s1053_s26   ;;  %s1053_s26 = sphi %s1102_s26, %s20_s26   ;;  %s1049_s25 = sphi %s1100_s25, %s1437_s25   ;;  %s1045_s24 = sphi %s1098_s24, %s1436_s24  }
   0xb   : > { %1425 = sst [smem:[#allocation10_spill]] %s1053_s26  ;;  %p898_p0 = scmp.ge.s32.totalorder %s1053_s26, 1 }
   0xc   : > { %s1426_s4 = sld [smem:[#allocation15_spill]]  ;;  %p240_p1 = scmp.lt.s32.totalorder %s1053_s26, 3 }
   0xd   : > { %p1119_p2 = scmp.eq.s32.totalorder %s896_s30, 0  ;;  %s32_s10 = sadd.s32 1, %s1049_s25 }
   0xe   : > { %p1123_p3 = pnand %p898_p0, %p240_p1  ;;  %s1429_s3 = sld [smem:[#allocation14_spill]] }
   0xf   : > { %p34_p6 = scmp.ge.s32.totalorder %s32_s10, 2  ;;  %s1430_s5 = sld [smem:[#allocation16_spill]] }
  0x10   : > { %p933_p4 = pneg %p1123_p3  ;;  %s1055_s17 = smov [#allocation4]  }
  0x11   : > { %s1439_s10 = smov (%p34_p6, %s32_s10), 0  ;;  %s1056_s18 = smov [#allocation2]  }
  0x12   : > { %s262_s29 = sshll.u32 %s1426_s4, 4  ;;  %p934_p5 = pnand %p1119_p2, %p933_p4  ;;  %s263_s29 = int_to_ptr.vmem [resolvable:$true] %s262_s29 }
  0x13   : > { %1431 = sst [smem:[#allocation11_spill]] %s1439_s10  ;;  %s1057_s19 = smov [#allocation6]  }
  0x14   : > { %s252_s13 = sshll.u32 %s1429_s3, 4  ;;  %318 = sbr.rel (%p1123_p3) target bundleno = 108 (0x6c), region = 44  ;;  %s253_s13 = int_to_ptr.vmem [resolvable:$true] %s252_s13 }
  0x15   : > { %s272_s16 = sshll.u32 %s1430_s5, 4  ;;  %s273_s16 = int_to_ptr.vmem [resolvable:$true] %s272_s16 }
  0x16   : > { %939 = dma.vmem_to_smem (!%p934_p5), %s263_s29, 32, %s1055_s17, [#allocation5]  }
  0x17   : > { %936 = dma.vmem_to_smem (!%p934_p5), %s253_s13, 32, %s1056_s18, [#allocation3]  }
  0x18   : > { %942 = dma.vmem_to_smem (!%p934_p5), %s273_s16, 32, %s1057_s19, [#allocation5]  }
  0x19   : > { %1036 = dma.done.wait (%p1119_p2), [#allocation3], 32  }
  0x1a   : > { %1038 = vsyncadd (%p1119_p2), [#allocation3], 4294967264 }
  0x1b   : > { %1040 = dma.done.wait (%p1119_p2), [#allocation5], 64  }
  0x1c   : > { %1042 = vsyncadd (%p1119_p2), [#allocation5], 4294967232 }
  0x1d   : > { %335 = sfence }
  0x1e   : > { %p392_p7 = scmp.lt.s32.totalorder %s1045_s24, 1  ;;  %s1152_s20 = sshll.u32 %s1045_s24, 7 }
  0x1f   : > { %s436_s21 = sld [smem:[#allocation2 + %s1152_s20]]  ;;  %s1156_s22 = sadd.s32 3, %s1152_s20 }
  0x20   : > { %s1441_s24 = smov (!%p392_p7, %s1045_s24), 1  ;;  %s440_s23 = sld [smem:[#allocation2 + %s1156_s22]] }
  0x21   : > { %s1161_s27 = sadd.s32 6, %s1152_s20  ;;  %s1163_s28 = smul.u32 24, %s1441_s24 }
  0x22   : > { %s445_s29 = sld [smem:[#allocation2 + %s1161_s27]]  ;;  %s1208_s17 = sadd.s32 1, %s1152_s20 }
  0x23   : > { %s1167_s30 = sld [smem:[#allocation4 + %s1152_s20]]  ;;  %s1212_s19 = sadd.s32 4, %s1152_s20 }
  0x24   : > { %s1432_s0 = sld [smem:[#allocation12_spill]]  ;;  %s584_s10 = sadd.s32 15, %s1152_s20 }
  0x25   : > { %s1433_s2 = sld [smem:[#allocation13_spill]]  ;;  %v437_v1 = vstv %s436_s21  ;;  %s589_s25 = sadd.s32 18, %s1152_s20 }
  0x26   : > { %v441_v7 = vstv %s440_s23  ;;  %s1195_s24 = sld [smem:[#allocation2 + %s1152_s20]]  ;;  %s1217_s23 = sadd.s32 7, %s1152_s20 }
  0x27   : > { %s1201_s15 = sld [smem:[#allocation2 + %s1156_s22]] }
  0x28   : > { %v446_v13 = vstv %s445_s29  ;;  %s1205_s16 = sld [smem:[#allocation2 + %s1161_s27]] }
  0x29   : > { %s450_s18 = sld [smem:[#allocation2 + %s1208_s17]]  ;;  %v478_v17 = vstv %s1167_s30 }
  0x2a   : > { %s399_s11 = scalar_lea.vmem %s1432_s0, %s1163_s28  ;;  %s454_s21 = sld [smem:[#allocation2 + %s1212_s19]] }
  0x2b   : > { %s415_s14 = scalar_lea.vmem %s1433_s2, %s1163_s28  ;;  %v1177_v0 = vld [vmem:[%s399_s11] sm:$0xff]  ;;  %v1186_v6 = vld [vmem:[%s399_s11 + $0x8] sm:$0xff]  ;;  %v1197_v11 = vld [vmem:[%s399_s11 + $0x10] sm:$0xff]  ;;  %s459_s29 = sld [smem:[#allocation2 + %s1217_s23]] }
  0x2c   : > { %v438_v2 = vmul.f32 %v437_v1, %v1177_v0  ;;  %v1180_v3 = vld [vmem:[%s415_s14] sm:$0xff]  ;;  %v1182_v4 = vld [vmem:[%s415_s14 + $0x8] sm:$0xff]  ;;  %v1184_v5 = vld [vmem:[%s415_s14 + $0x10] sm:$0xff]  ;;  %v442_v12 = vmul.f32 %v441_v7, %v1186_v6  ;;  %v447_v14 = vmul.f32 %v446_v13, %v1197_v11  ;;  %s1434_s6 = sld [smem:[#allocation17_spill]]  ;;  %v515_v45 = vstv %s1195_s24  ;;  %s599_s24 = sadd.s32 24, %s1152_s20 }
  0x2d   : > { %v495_v8 = vmul.f32 %v1180_v3, %v1180_v3  ;;  %v496_v9 = vmul.f32 %v1182_v4, %v1182_v4  ;;  %v498_v10 = vmul.f32 %v1184_v5, %v1184_v5  ;;  %s481_s12 = sld [smem:[#allocation4 + %s1208_s17]]  ;;  %v518_v47 = vstv %s1201_s15 }
  0x2e   : > { %v443_v16 = vadd.f32 %v442_v12, %v438_v2  ;;  %s1228_s30 = sld [smem:[#allocation6 + %s1156_s22]]  ;;  %s1246_s22 = sadd.s32 2, %s1152_s20  ;;  %v522_v48 = vstv %s1205_s16 }
  0x2f   : > { %v497_v15 = vadd.f32 %v496_v9, %v495_v8  ;;  %s1231_s13 = sld [smem:[#allocation6 + %s1161_s27]]  ;;  %v451_v22 = vstv %s450_s18  ;;  %s467_s18 = sadd.s32 5, %s1152_s20 }
  0x30   : > { %v448_v19 = vadd.f32 %v447_v14, %v443_v16  ;;  %s1235_s14 = sld [smem:[#allocation2 + %s1208_s17]]  ;;  %v452_v23 = vmul.f32 %v451_v22, %v1177_v0  ;;  %v455_v24 = vstv %s454_s21  ;;  %s472_s21 = sadd.s32 8, %s1152_s20 }
  0x31   : > { %v499_v18 = vadd.f32 %v498_v10, %v497_v15  ;;  %s1239_s8 = sld [smem:[#allocation2 + %s1212_s19]]  ;;  %v456_v25 = vmul.f32 %v455_v24, %v1186_v6  ;;  %v460_v26 = vstv %s459_s29 }
  0x32   : > { %s1224_s11 = scalar_lea.vmem %s1434_s6, %s1163_s28  ;;  %v479_v21 = vadd.f32 %v478_v17, %v448_v19  ;;  %s1243_s9 = sld [smem:[#allocation2 + %s1217_s23]]  ;;  %v461_v27 = vmul.f32 %v460_v26, %v1197_v11 }
  0x33   : > { %v500_v20 = vmax.f32 %v499_v18, 1e-24  ;;  %s464_s27 = sld [smem:[#allocation2 + %s1246_s22]]  ;;  %v457_v28 = vadd.f32 %v456_v25, %v452_v23  ;;  %v482_v30 = vstv %s481_s12 }
  0x34   : > { %480 = vst [vmem:[%s1224_s11] sm:$0xff] %v479_v21  ;;  %s468_s0 = sld [smem:[#allocation2 + %s467_s18]]  ;;  %v568_v8 = vstv %s1228_s30 }
  0x35   : > { %976 = vrsqrt.f32 %v500_v20  ;;  %s473_s2 = sld [smem:[#allocation2 + %s472_s21]]  ;;  %v462_v32 = vadd.f32 %v461_v27, %v457_v28  ;;  %vm507_vm0 = vweird.f32 %v500_v20  ;;  %v571_v9 = vstv %s1231_s13 }
  0x36   : > { %s1253_s29 = sld [smem:[#allocation4 + %s1246_s22]]  ;;  %v526_v49 = vstv %s1235_s14  ;;  %s622_s14 = sadd.s32 13, %s1152_s20 }
  0x37   : > { %s1256_s3 = sld [smem:[#allocation6 + %s1212_s19]]  ;;  %v483_v34 = vadd.f32 %v482_v30, %v462_v32  ;;  %v529_v52 = vstv %s1239_s8 }
  0x38   : > { %s1259_s4 = sld [smem:[#allocation2 + %s1246_s22]]  ;;  %v533_v53 = vstv %s1243_s9  ;;  %s632_s9 = sadd.s32 19, %s1152_s20 }
  0x39   : > { %v465_v35 = vstv %s464_s27  ;;  %s1261_s5 = sld [smem:[#allocation2 + %s467_s18]]  ;;  %913 = vst [vmem:[%s1224_s11 + $0x8] sm:$0xff] %v483_v34  ;;  %s574_s27 = sadd.s32 9, %s1152_s20 }
  0x3a   : > { %v466_v37 = vmul.f32 %v465_v35, %v1177_v0  ;;  %v469_v38 = vstv %s468_s0  ;;  %s1265_s19 = sld [smem:[#allocation2 + %s472_s21]]  ;;  %s579_s0 = sadd.s32 12, %s1152_s20 }
  0x3b   : > { %v977_v29 = vpop.eup %976  ;;  %s1268_s12 = sld [smem:[#allocation6 + %s1217_s23]]  ;;  %v470_v39 = vmul.f32 %v469_v38, %v1186_v6  ;;  %v474_v40 = vstv %s473_s2 }
  0x3c   : > { %v502_v31 = vmul.f32 %v977_v29, %v500_v20  ;;  %vm508_vm1 = vweird.f32 %v977_v29  ;;  %v475_v42 = vmul.f32 %v474_v40, %v1197_v11  ;;  %s1273_s6 = sld [smem:[#allocation6 + %s467_s18]]  ;;  %v487_v46 = vstv %s1253_s29 }
  0x3d   : > { %vm509_vm2 = vmor %vm507_vm0, %vm508_vm1  ;;  %v471_v43 = vadd.f32 %v470_v39, %v466_v37  ;;  %s1277_s23 = sld [smem:[#allocation6 + %s472_s21]]  ;;  %s594_s21 = sadd.s32 21, %s1152_s20  ;;  %v611_v11 = vstv %s1256_s3 }
  0x3e   : > { %v503_v33 = vmul.f32 %v977_v29, %v502_v31  ;;  %s1282_s2 = sld [smem:[#allocation6 + %s574_s27]]  ;;  %v537_v54 = vstv %s1259_s4  ;;  %s617_s4 = sadd.s32 10, %s1152_s20 }
  0x3f   : > { %v476_v50 = vadd.f32 %v475_v42, %v471_v43  ;;  %s1288_s18 = sld [smem:[#allocation6 + %s579_s0]]  ;;  %v540_v59 = vstv %s1261_s5  ;;  %s642_s0 = sadd.s32 25, %s1152_s20 }
  0x40   : > { %v504_v36 = vmul.f32 0.5, %v503_v33  ;;  %s1294_s26 = sld [smem:[#allocation6 + %s584_s10]]  ;;  %v544_v60 = vstv %s1265_s19  ;;  %s637_s19 = sadd.s32 22, %s1152_s20 }
  0x41   : > { %v488_v58 = vadd.f32 %v487_v46, %v476_v50  ;;  %s1300_s15 = sld [smem:[#allocation6 + %s589_s25]]  ;;  %s627_s25 = sadd.s32 16, %s1152_s20  ;;  %v614_v13 = vstv %s1268_s12 }
  0x42   : > { %v505_v41 = vsub.f32 1.5, %v504_v36  ;;  %s1304_s16 = sld [smem:[#allocation6 + %s594_s21]]  ;;  %v655_v15 = vstv %s1273_s6  ;;  %s661_s3 = sadd.s32 11, %s1152_s20 }
  0x43   : > { %s1307_s10 = sld [smem:[#allocation6 + %s599_s24]]  ;;  %v658_v17 = vstv %s1277_s23  ;;  %s671_s12 = sadd.s32 17, %s1152_s20 }
  0x44   : > { %v506_v44 = vmul.f32 %v977_v29, %v505_v41  ;;  %s1311_s5 = sld [smem:[#allocation6 + %s1152_s20]]  ;;  %v576_v18 = vstv %s1282_s2  ;;  %s676_s2 = sadd.s32 20, %s1152_s20 }
  0x45   : > { %s1314_s8 = sld [smem:[#allocation6 + %s617_s4]]  ;;  %v581_v19 = vstv %s1288_s18  ;;  %s681_s21 = sadd.s32 23, %s1152_s20 }
  0x46   : > { %v510_v51 = vsel %vm509_vm2, %v977_v29, %v506_v44  ;;  %s1321_s29 = sld [smem:[#allocation6 + %s622_s14]]  ;;  %v586_v31 = vstv %s1294_s26 }
  0x47   : > { %v511_v55 = vmul.f32 %v510_v51, %v1180_v3  ;;  %v512_v56 = vmul.f32 %v510_v51, %v1182_v4  ;;  %v513_v57 = vmul.f32 %v510_v51, %v1184_v5  ;;  %v489_v3 = vsub.f32 10.0, %v488_v58  ;;  %s1326_s27 = sld [smem:[#allocation6 + %s627_s25]] }
  0x48   : > { %s1332_s30 = sld [smem:[#allocation6 + %s632_s9]]  ;;  %v591_v33 = vstv %s1300_s15  ;;  %v596_v34 = vstv %s1304_s16  ;;  %s686_s16 = sadd.s32 26, %s1152_s20 }
  0x49   : > { %v516_v61 = vmul.f32 %v515_v45, %v511_v55  ;;  %v519_v62 = vmul.f32 %v518_v47, %v512_v56  ;;  %v523_v63 = vmul.f32 %v522_v48, %v513_v57  ;;  %v527_v0 = vmul.f32 %v526_v49, %v511_v55  ;;  %914 = vst [vmem:[%s1224_s11 + $0x10] sm:$0xff] %v489_v3  ;;  %s1337_s6 = sld [smem:[#allocation6 + %s637_s19]]  ;;  %s666_s11 = sadd.s32 14, %s1152_s20 }
  0x4a   : > { %v530_v1 = vmul.f32 %v529_v52, %v512_v56  ;;  %v534_v2 = vmul.f32 %v533_v53, %v513_v57  ;;  %v538_v4 = vmul.f32 %v537_v54, %v511_v55  ;;  %v541_v6 = vmul.f32 %v540_v59, %v512_v56  ;;  %s1341_s13 = sld [smem:[#allocation6 + %s642_s0]]  ;;  %s431_s19 = scalar_lea.vmem %s1415_s7, %s1163_s28 }
  0x4b   : > { %v520_v5 = vadd.f32 %v519_v62, %v516_v61  ;;  %v545_v7 = vmul.f32 %v544_v60, %v513_v57  ;;  %v601_v35 = vstv %s1307_s10  ;;  %s1347_s23 = sld [smem:[#allocation6 + %s661_s3]]  ;;  %v619_v50 = vstv %s1314_s8 }
  0x4c   : > { %v531_v10 = vadd.f32 %v530_v1, %v527_v0  ;;  %v542_v14 = vadd.f32 %v541_v6, %v538_v4  ;;  %s1350_s18 = sld [smem:[#allocation6 + %s666_s11]]  ;;  %v624_v51 = vstv %s1321_s29 }
  0x4d   : > { %v524_v12 = vadd.f32 %v523_v63, %v520_v5  ;;  %s1355_s26 = sld [smem:[#allocation6 + %s671_s12]]  ;;  %v629_v58 = vstv %s1326_s27 }
  0x4e   : > { %v535_v16 = vadd.f32 %v534_v2, %v531_v10  ;;  %v546_v20 = vadd.f32 %v545_v7, %v542_v14  ;;  %s1358_s24 = sld [smem:[#allocation6 + %s676_s2]]  ;;  %v634_v59 = vstv %s1332_s30 }
  0x4f   : > { %v1335_v21 = vmul.f32 -1.7724539, %v524_v12  ;;  %v550_v22 = vmul.f32 2.4270325, %v524_v12  ;;  %v558_v23 = vmul.f32 -2.4270325, %v524_v12  ;;  %v560_v26 = vmul.f32 %v524_v12, %v524_v12 }
  0x50   : > { %v547_v24 = vmul.f32 -1.7724539, %v535_v16  ;;  %v552_v25 = vmul.f32 -2.4270325, %v535_v16  ;;  %v561_v27 = vmul.f32 %v535_v16, %v535_v16  ;;  %v548_v28 = vmul.f32 1.7724539, %v546_v20 }
  0x51   : > { %v551_v29 = vmul.f32 %v550_v22, %v535_v16  ;;  %v554_v30 = vmul.f32 3.0, %v546_v20  ;;  %v1352_v42 = vmul.f32 %v558_v23, %v546_v20  ;;  %v577_v43 = vmul.f32 %v576_v18, %v1335_v21  ;;  %s1363_s15 = sld [smem:[#allocation6 + %s1208_s17]]  ;;  %s605_s17 = smul.f32 0.88622695, %s1311_s5 }
  0x52   : > { %v562_v32 = vsub.f32 %v560_v26, %v561_v27  ;;  %v553_v36 = vmul.f32 %v552_v25, %v546_v20  ;;  %v569_v38 = vmul.f32 %v568_v8, %v547_v24  ;;  %v572_v39 = vmul.f32 %v571_v9, %v548_v28  ;;  %s1367_s4 = sld [smem:[#allocation6 + %s681_s21]]  ;;  %s407_s5 = scalar_lea.vmem %s1409_s1, %s1163_s28 }
  0x53   : > { %v555_v37 = vmul.f32 %v554_v30, %v546_v20  ;;  %v612_v40 = vmul.f32 %v611_v11, %v547_v24  ;;  %v656_v41 = vmul.f32 %v655_v15, %v547_v24  ;;  %v659_v44 = vmul.f32 %v658_v17, %v548_v28  ;;  %s1372_s20 = sld [smem:[#allocation6 + %s686_s16]] }
  0x54   : > { %v573_v46 = vadd.f32 %v572_v39, %v569_v38  ;;  %v582_v47 = vmul.f32 %v581_v19, %v551_v29  ;;  %v563_v48 = vmul.f32 1.2135162, %v562_v32  ;;  %v615_v49 = vmul.f32 %v614_v13, %v548_v28  ;;  %s1378_s10 = sld [smem:[#allocation6 + %s1246_s22]]  ;;  %v564_v28 = vld [vmem:[%s407_s5] sm:$0xff]  ;;  %v565_v38 = vld [vmem:[%s407_s5 + $0x8] sm:$0xff] }
  0x55   : > { %v915_v45 = vadd.f32 -1.0, %v555_v37  ;;  %v587_v54 = vmul.f32 %v586_v31, %v553_v36  ;;  %v620_v55 = vmul.f32 %v619_v50, %v1335_v21  ;;  %v625_v57 = vmul.f32 %v624_v51, %v551_v29 }
  0x56   : > { %v578_v53 = vadd.f32 %v577_v43, %v573_v46  ;;  %v616_v56 = vadd.f32 %v615_v49, %v612_v40  ;;  %v597_v62 = vmul.f32 %v596_v34, %v1352_v42  ;;  %v602_v63 = vmul.f32 %v601_v35, %v563_v48 }
  0x57   : > { %v557_v52 = vmul.f32 0.7006239, %v915_v45  ;;  %v630_v1 = vmul.f32 %v629_v58, %v553_v36  ;;  %v639_v2 = vstv %s1337_s6  ;;  %v660_v5 = vadd.f32 %v659_v44, %v656_v41  ;;  %s648_s25 = smul.f32 0.88622695, %s1363_s15  ;;  %v566_v45 = vld [vmem:[%s407_s5 + $0x10] sm:$0xff] }
  0x58   : > { %v583_v60 = vadd.f32 %v582_v47, %v578_v53  ;;  %v621_v0 = vadd.f32 %v620_v55, %v616_v56  ;;  %v663_v6 = vstv %s1347_s23  ;;  %v668_v9 = vstv %s1350_s18 }
  0x59   : > { %v592_v61 = vmul.f32 %v591_v33, %v557_v52  ;;  %v635_v4 = vmul.f32 %v634_v59, %v557_v52  ;;  %v664_v8 = vmul.f32 %v663_v6, %v1335_v21  ;;  %v673_v10 = vstv %s1355_s26 }
  0x5a   : > { %v588_v3 = vadd.f32 %v587_v54, %v583_v60  ;;  %v626_v7 = vadd.f32 %v625_v57, %v621_v0  ;;  %v644_v12 = vstv %s1341_s13  ;;  %v669_v13 = vmul.f32 %v668_v9, %v551_v29  ;;  %s692_s8 = smul.f32 0.88622695, %s1378_s10 }
  0x5b   : > { %v678_v14 = vstv %s1358_s24  ;;  %v640_v16 = vmul.f32 %v639_v2, %v1352_v42  ;;  %v665_v17 = vadd.f32 %v664_v8, %v660_v5  ;;  %v674_v18 = vmul.f32 %v673_v10, %v553_v36 }
  0x5c   : > { %v593_v11 = vadd.f32 %v592_v61, %v588_v3  ;;  %v631_v15 = vadd.f32 %v630_v1, %v626_v7  ;;  %v606_v20 = vstv %s605_s17  ;;  %v683_v21 = vstv %s1367_s4 }
  0x5d   : > { %v645_v23 = vmul.f32 %v644_v12, %v563_v48  ;;  %v670_v24 = vadd.f32 %v669_v13, %v665_v17  ;;  %v679_v25 = vmul.f32 %v678_v14, %v557_v52  ;;  %v688_v27 = vstv %s1372_s20 }
  0x5e   : > { %v598_v19 = vadd.f32 %v597_v62, %v593_v11  ;;  %v636_v22 = vadd.f32 %v635_v4, %v631_v15  ;;  %v684_v31 = vmul.f32 %v683_v21, %v1352_v42  ;;  %v649_v33 = vstv %s648_s25 }
  0x5f   : > { %v675_v30 = vadd.f32 %v674_v18, %v670_v24  ;;  %v689_v36 = vmul.f32 %v688_v27, %v563_v48  ;;  %v693_v41 = vstv %s692_s8 }
  0x60   : > { %v603_v26 = vadd.f32 %v602_v63, %v598_v19  ;;  %v641_v29 = vadd.f32 %v640_v16, %v636_v22 }
  0x61   : > { %v680_v35 = vadd.f32 %v679_v25, %v675_v30 }
  0x62   : > { %v607_v32 = vadd.f32 %v606_v20, %v603_v26  ;;  %v646_v34 = vadd.f32 %v645_v23, %v641_v29 }
  0x63   : > { %v685_v40 = vadd.f32 %v684_v31, %v680_v35 }
  0x64   : > { %v608_v37 = vmul.f32 %v607_v32, %v564_v28  ;;  %v650_v39 = vadd.f32 %v649_v33, %v646_v34 }
  0x65   : > { %v690_v44 = vadd.f32 %v689_v36, %v685_v40 }
  0x66   : > { %609 = vst [vmem:[%s431_s19] sm:$0xff] %v608_v37  ;;  %v651_v43 = vmul.f32 %v650_v39, %v565_v38 }
  0x67   : > { %v694_v42 = vadd.f32 %v693_v41, %v690_v44 }
  0x68   : > { %916 = vst [vmem:[%s431_s19 + $0x8] sm:$0xff] %v651_v43 }
  0x69   : > { %v695_v46 = vmul.f32 %v694_v42, %v566_v45 }
  0x6b   : > { %917 = vst [vmem:[%s431_s19 + $0x10] sm:$0xff] %v695_v46 }
  0x6c PF: > { %s1435_s27 = sld [smem:[#allocation10_spill]] }
  0x6d   : > { %s1436_s24 = sld [smem:[#allocation9_spill]] }
  0x6e   : > { %s1437_s25 = sld [smem:[#allocation11_spill]] }
  0x72   : > { %s20_s26 = sadd.s32 1, %s1435_s27  }
  0x73   : > { %p17_p8 = scmp.ge.s32.totalorder %s20_s26, 4  }
  0x75   :  { %19 = sbr.rel (!%p17_p8) target bundleno = 10 (0xa), region = 109 }
  0x7a   :  { %747 = vsyncpa [#allocation3], 1 }
  0x7b   :  { %749 = vsyncpa [#allocation3 + $0x1], 1 }
  0x7c   :  { %750 = vsyncpa [#allocation5], 1 }

</bundles_post_ra>
